<compile_context>
chip_gen: v7x
topology: tpu7x:2x2x1
jax: 0.10.0
libtpu: 0.0.40
codegen_flags: <defaults>
</compile_context>

<pallas_src>
import functools

import jax
import jax.numpy as jnp
from jax.experimental import pallas as pl
from jax.experimental.pallas import tpu as pltpu

# ----------------------------- static geometry ------------------------------
B = 2
CIN, H, W = 4, 16, 16
KH = KW = 3
C1, C2 = 20, 50                      # conv1 / conv2 out channels
H1, W1 = H - 2, W - 2                # 14, 14  conv1 'valid' output
HP1, WP1 = H1 // 2, W1 // 2          # 7, 7    pool1 output
H2, W2 = HP1 - 2, WP1 - 2            # 5, 5    conv2 'valid' output
HP2, WP2 = H2 // 2, W2 // 2          # 2, 2    pool2 output
NHID = 50                            # fc1 out features
NCLS = 2                             # fc2 out features
NFLAT = HP2 * WP2 * C2               # 200 flattened features

# Width-preserving conv slab row counts (rows with w >= W_out are junk and are
# never read by pooling).
L1 = (H1 - 1) * W + W1               # 222
L2 = (H2 - 1) * WP1 + W2             # 33
# Row spans of the dy-max (vertical max) slabs used by the pools.
YS1 = 2 * (HP1 - 1) * W + 2 * (WP1 - 1) + 2    # 206
YS2 = 2 * (HP2 - 1) * WP1 + 2 * (WP2 - 1) + 2  # 18


# ------------------------------- fused kernel -------------------------------
def _make_kernel(bb):
    """Builds the whole-network kernel processing `bb` images per grid step."""

    def kernel(x_ref, w1_ref, b1_ref, w2_ref, b2_ref,
               fc1w_ref, fc1b_ref, fc2w_ref, fc2b_ref,
               o_ref, ym1_ref, p1_ref, ym2_ref):

        def elu(v):
            # ELU(alpha=1); exp only on the clamped (<=0) branch (no overflow).
            return jnp.where(v > 0, v, jnp.exp(jnp.minimum(v, 0.0)) - 1.0)

        def conv3x3(src_ref, base, pitch, rows, w_ref, cin, b_ref):
            """3x3 'valid' conv on a width-preserving (rows, cin) slab.

            The 9 taps are independent matmuls accumulated in vregs (no scratch
            round trips, taps pipeline through the MXU); bias + ELU fused.
            """
            acc = None
            for k in range(KH * KW):
                ky, kx = divmod(k, KW)
                d = jnp.dot(src_ref[pl.ds(base + ky * pitch + kx, rows), :],
                            w_ref[k * cin:(k + 1) * cin, :],
                            preferred_element_type=jnp.float32)
                acc = d if acc is None else acc + d
            return elu(acc + b_ref[...])

        def pool_dx(ym_ref, hp, pitch, width):
            """Stride-2 horizontal max of the pre-computed dy-max slab."""
            r0 = ym_ref[pl.ds(2 * hp * pitch, width, stride=2), :]
            r1 = ym_ref[pl.ds(2 * hp * pitch + 1, width, stride=2), :]
            return jnp.maximum(r0, r1)

        feats = []                                    # per-image (1, NFLAT) rows
        for img in range(bb):
            xb = img * H * W                          # image base row in x_ref
            pb = img * HP1 * WP1                      # image base row in p1_ref

            # ---- conv1 + bias + ELU (value), pool1 -------------------------
            a1 = conv3x3(x_ref, xb, W, L1, w1_ref, CIN, b1_ref)        # (222, C1)
            ym1_ref[...] = jnp.maximum(a1[0:YS1, :], a1[W:W + YS1, :])  # dy-max
            p1_ref[pb:pb + HP1 * WP1, :] = jnp.concatenate(
                [pool_dx(ym1_ref, hp, W, WP1) for hp in range(HP1)], axis=0)

            # ---- conv2 + bias + ELU (value), pool2 -------------------------
            a2 = conv3x3(p1_ref, pb, WP1, L2, w2_ref, C1, b2_ref)      # (33, C2)
            ym2_ref[...] = jnp.maximum(a2[0:YS2, :], a2[WP1:WP1 + YS2, :])
            chunks = []
            for hp in range(HP2):
                m = pool_dx(ym2_ref, hp, WP1, WP2)                     # (WP2, C2)
                for wp in range(WP2):
                    chunks.append(m[wp:wp + 1, :])                     # (1, C2)
            # NHWC flatten order (r = hp*WP2+wp major, channel minor) matches
            # the pre-permuted fc1 weight rows -> no activation transpose.
            feats.append(jnp.concatenate(chunks, axis=1))              # (1, NFLAT)

        feat = feats[0] if bb == 1 else jnp.concatenate(feats, axis=0)  # (bb, NFLAT)

        # ---- fc1 + sigmoid: ONE K=NFLAT matmul ------------------------------
        h = jnp.dot(feat, fc1w_ref[...],
                    preferred_element_type=jnp.float32) + fc1b_ref[...]
        h = 1.0 / (1.0 + jnp.exp(-h))                 # exact sigmoid (EUP exp/div)

        # ---- fc2 + log_softmax ----------------------------------------------
        z = jnp.dot(h, fc2w_ref[...],
                    preferred_element_type=jnp.float32) + fc2b_ref[...]
        z = z - jnp.max(z, axis=-1, keepdims=True)
        o_ref[...] = z - jnp.log(jnp.sum(jnp.exp(z), axis=-1, keepdims=True))

    return kernel


# ------------------------------ host-side wrapper ----------------------------
def _pin(b):                     # weights: same block every grid step
    return (0, 0)


@functools.partial(jax.jit, static_argnames=("images_per_step",))
def network_forward(x_nchw, p, *, images_per_step=1):
    bb = images_per_step
    assert B % bb == 0
    # NCHW -> NHWC -> (B*H*W, CIN): input-feeding glue only, no intermediates.
    x = jnp.transpose(x_nchw, (0, 2, 3, 1)).astype(jnp.float32).reshape(B * H * W, CIN)

    out = pl.pallas_call(
        _make_kernel(bb),
        out_shape=jax.ShapeDtypeStruct((B // bb, bb, NCLS), jnp.float32),
        grid=(B // bb,),
        in_specs=[
            pl.BlockSpec((bb * H * W, CIN), lambda b: (b, 0)),   # x rows, per step
            pl.BlockSpec((KH * KW * CIN, C1), _pin),             # conv1 w (ky,kx,ci)
            pl.BlockSpec((1, C1), _pin),                         # conv1 b
            pl.BlockSpec((KH * KW * C1, C2), _pin),              # conv2 w
            pl.BlockSpec((1, C2), _pin),                         # conv2 b
            pl.BlockSpec((NFLAT, NHID), _pin),                   # fc1 w (NHWC order)
            pl.BlockSpec((1, NHID), _pin),                       # fc1 b
            pl.BlockSpec((NHID, NCLS), _pin),                    # fc2 w
            pl.BlockSpec((1, NCLS), _pin),                       # fc2 b
        ],
        # 3-D output so the block's last two dims always equal the array's
        # (single unmasked write of all rows produced by this grid step).
        out_specs=pl.BlockSpec((None, bb, NCLS), lambda b: (b, 0, 0)),
        scratch_shapes=[
            pltpu.VMEM((YS1, C1), jnp.float32),                  # pool1 dy-max slab
            pltpu.VMEM((bb * HP1 * WP1, C1), jnp.float32),       # pool1 result
            pltpu.VMEM((YS2, C2), jnp.float32),                  # pool2 dy-max slab
        ],
        compiler_params=pltpu.CompilerParams(
            dimension_semantics=("parallel",),    # v7x: 2 TCs split the batch
            vmem_limit_bytes=16 * 1024 * 1024,
        ),
        cost_estimate=pl.CostEstimate(
            flops=2_000_000, transcendentals=13_000, bytes_accessed=100_000),
    )(x, p["conv1_w"], p["conv1_b"], p["conv2_w"], p["conv2_b"],
      p["fc1_w"], p["fc1_b"], p["fc2_w"], p["fc2_b"])
    return out.reshape(B, NCLS)


def images_per_grid_step():
    """v7x has 2 TensorCores -> one image per ('parallel') grid step; single-TC
    v5e/v6e fold the whole batch into one step to kill per-step overhead."""
    try:
        kind = jax.devices()[0].device_kind.lower()
    except Exception:
        return B
    if "v7" in kind or "7x" in kind:
        return 1
    return B


# --------------------------- params (PyTorch layout) -------------------------
def init_params(key):
    """Random params in PyTorch layout: Conv2d (Cout,Cin,KH,KW), Linear (out,in)."""
    ks = jax.random.split(key, 8)
    s = 0.1
    return {
        "conv1_w": s * jax.random.normal(ks[0], (C1, CIN, KH, KW), jnp.float32),
        "conv1_b": s * jax.random.normal(ks[1], (C1,), jnp.float32),
        "conv2_w": s * jax.random.normal(ks[2], (C2, C1, KH, KW), jnp.float32),
        "conv2_b": s * jax.random.normal(ks[3], (C2,), jnp.float32),
        "fc1_w": s * jax.random.normal(ks[4], (NHID, NFLAT), jnp.float32),
        "fc1_b": s * jax.random.normal(ks[5], (NHID,), jnp.float32),
        "fc2_w": s * jax.random.normal(ks[6], (NCLS, NHID), jnp.float32),
        "fc2_b": s * jax.random.normal(ks[7], (NCLS,), jnp.float32),
    }


def prep_params(pt):
    """One-time repack of PyTorch-layout weights into the kernel layout.

    conv w -> (KH*KW*Cin, Cout), row order (ky, kx, cin) (NHWC im2col);
    fc1 w  -> (NFLAT, NHID), rows in NHWC flatten order (r = hp*WP2+wp major,
              channel minor); PyTorch flattens NCHW (in-feature = c*4 + r);
    fc2 w  -> (NHID, NCLS); biases -> (1, N) rows.
    """
    conv1_w = jnp.transpose(pt["conv1_w"], (2, 3, 1, 0)).reshape(KH * KW * CIN, C1)
    conv2_w = jnp.transpose(pt["conv2_w"], (2, 3, 1, 0)).reshape(KH * KW * C1, C2)
    fc1_w = (pt["fc1_w"].reshape(NHID, C2, HP2 * WP2)   # [out, c, r]
             .transpose(2, 1, 0)                        # [r, c, out]
             .reshape(NFLAT, NHID))
    return {
        "conv1_w": conv1_w, "conv1_b": pt["conv1_b"].reshape(1, C1),
        "conv2_w": conv2_w, "conv2_b": pt["conv2_b"].reshape(1, C2),
        "fc1_w": fc1_w, "fc1_b": pt["fc1_b"].reshape(1, NHID),
        "fc2_w": pt["fc2_w"].T, "fc2_b": pt["fc2_b"].reshape(1, NCLS),
    }


# --------------------------- pure-JAX reference ------------------------------
def reference_forward(x, pt):
    hi = jax.lax.Precision.HIGHEST

    def conv(h, w, b):
        y = jax.lax.conv_general_dilated(
            h, w, window_strides=(1, 1), padding="VALID",
            dimension_numbers=("NCHW", "OIHW", "NCHW"), precision=hi)
        return y + b.reshape(1, -1, 1, 1)

    def pool(h):
        return jax.lax.reduce_window(h, -jnp.inf, jax.lax.max,
                                     (1, 1, 2, 2), (1, 1, 2, 2), "VALID")

    elu = lambda v: jnp.where(v > 0, v, jnp.expm1(v))
    h = pool(elu(conv(x, pt["conv1_w"], pt["conv1_b"])))
    h = pool(elu(conv(h, pt["conv2_w"], pt["conv2_b"])))
    h = h.reshape(h.shape[0], -1)                                  # NCHW flatten
    h = jax.nn.sigmoid(jnp.dot(h, pt["fc1_w"].T, precision=hi) + pt["fc1_b"])
    z = jnp.dot(h, pt["fc2_w"].T, precision=hi) + pt["fc2_b"]
    return jax.nn.log_softmax(z, axis=-1)


if __name__ == "__main__":
    key = jax.random.PRNGKey(0)
    k_x, k_p = jax.random.split(key)

    x = jax.random.normal(k_x, (B, CIN, H, W), jnp.float32)
    pt = init_params(k_p)
    params = prep_params(pt)

    bb = images_per_grid_step()
    out = jax.block_until_ready(network_forward(x, params, images_per_step=bb))

    assert out.shape == (B, NCLS), out.shape
    # log_softmax rows must sum to ~1 after exp
    assert jnp.allclose(jnp.exp(out).sum(axis=-1), 1.0, atol=1e-5)
    # cross-check against a pure-JAX/XLA reference of the same network
    ref = reference_forward(x, pt)
    err = float(jnp.max(jnp.abs(out - ref)))
    assert err < 3e-2, f"kernel vs reference mismatch: max abs err {err}"
    print("KERNEL_OK")
</pallas_src>

<mosaic_0001>
module attributes {stable_mosaic.version = 11 : i64} {
  func.func @kernel(%arg0: i32, %arg1: memref<512x4xf32, #tpu.memory_space<vmem>>, %arg2: memref<36x20xf32, #tpu.memory_space<vmem>>, %arg3: memref<1x20xf32, #tpu.memory_space<vmem>>, %arg4: memref<180x50xf32, #tpu.memory_space<vmem>>, %arg5: memref<1x50xf32, #tpu.memory_space<vmem>>, %arg6: memref<200x50xf32, #tpu.memory_space<vmem>>, %arg7: memref<1x50xf32, #tpu.memory_space<vmem>>, %arg8: memref<50x2xf32, #tpu.memory_space<vmem>>, %arg9: memref<1x2xf32, #tpu.memory_space<vmem>>, %arg10: memref<1x2x2xf32, #tpu.memory_space<vmem>>, %arg11: memref<206x20xf32, #tpu.memory_space<vmem>>, %arg12: memref<98x20xf32, #tpu.memory_space<vmem>>, %arg13: memref<18x50xf32, #tpu.memory_space<vmem>>) attributes {dimension_semantics = [#tpu.dimension_semantics<parallel>], iteration_bounds = array<i64: 1>, scalar_prefetch = 0 : i64, scratch_operands = 3 : i64, tpu.core_type = #tpu.core_type<tc>, window_params = [{transform_indices = @transform_0, window_bounds = array<i64: 512, 4>}, {pipeline_mode = #tpu.pipeline_mode<synchronous>, transform_indices = @transform_1, window_bounds = array<i64: 36, 20>}, {pipeline_mode = #tpu.pipeline_mode<synchronous>, transform_indices = @transform_2, window_bounds = array<i64: 1, 20>}, {pipeline_mode = #tpu.pipeline_mode<synchronous>, transform_indices = @transform_3, window_bounds = array<i64: 180, 50>}, {pipeline_mode = #tpu.pipeline_mode<synchronous>, transform_indices = @transform_4, window_bounds = array<i64: 1, 50>}, {pipeline_mode = #tpu.pipeline_mode<synchronous>, transform_indices = @transform_5, window_bounds = array<i64: 200, 50>}, {pipeline_mode = #tpu.pipeline_mode<synchronous>, transform_indices = @transform_6, window_bounds = array<i64: 1, 50>}, {pipeline_mode = #tpu.pipeline_mode<synchronous>, transform_indices = @transform_7, window_bounds = array<i64: 50, 2>}, {pipeline_mode = #tpu.pipeline_mode<synchronous>, transform_indices = @transform_8, window_bounds = array<i64: 1, 2>}, {transform_indices = @transform_9, window_bounds = array<i64: 1, 2, 2>}]} {
    %c0 = arith.constant 0 : index
    %c0_0 = arith.constant 0 : index
    %0 = vector.load %arg1[%c0, %c0_0] : memref<512x4xf32, #tpu.memory_space<vmem>>, vector<222x4xf32>
    %c0_1 = arith.constant 0 : index
    %c0_2 = arith.constant 0 : index
    %1 = vector.load %arg2[%c0_1, %c0_2] : memref<36x20xf32, #tpu.memory_space<vmem>>, vector<4x20xf32>
    %cst = arith.constant dense<0.000000e+00> : vector<222x20xf32>
    %2 = tpu.matmul %0, %1, %cst {dimension_numbers = #tpu.dot_dimension_numbers<[1], [0], [0], [1], [0, 0, 1, 1], [], []>} : vector<222x4xf32>, vector<4x20xf32>, vector<222x20xf32> -> vector<222x20xf32>
    %c1 = arith.constant 1 : index
    %c0_3 = arith.constant 0 : index
    %3 = vector.load %arg1[%c1, %c0_3] : memref<512x4xf32, #tpu.memory_space<vmem>>, vector<222x4xf32>
    %c4 = arith.constant 4 : index
    %c0_4 = arith.constant 0 : index
    %4 = vector.load %arg2[%c4, %c0_4] : memref<36x20xf32, #tpu.memory_space<vmem>>, vector<4x20xf32>
    %cst_5 = arith.constant dense<0.000000e+00> : vector<222x20xf32>
    %5 = tpu.matmul %3, %4, %cst_5 {dimension_numbers = #tpu.dot_dimension_numbers<[1], [0], [0], [1], [0, 0, 1, 1], [], []>} : vector<222x4xf32>, vector<4x20xf32>, vector<222x20xf32> -> vector<222x20xf32>
    %6 = arith.addf %2, %5 : vector<222x20xf32>
    %c2 = arith.constant 2 : index
    %c0_6 = arith.constant 0 : index
    %7 = vector.load %arg1[%c2, %c0_6] : memref<512x4xf32, #tpu.memory_space<vmem>>, vector<222x4xf32>
    %c8 = arith.constant 8 : index
    %c0_7 = arith.constant 0 : index
    %8 = vector.load %arg2[%c8, %c0_7] : memref<36x20xf32, #tpu.memory_space<vmem>>, vector<4x20xf32>
    %cst_8 = arith.constant dense<0.000000e+00> : vector<222x20xf32>
    %9 = tpu.matmul %7, %8, %cst_8 {dimension_numbers = #tpu.dot_dimension_numbers<[1], [0], [0], [1], [0, 0, 1, 1], [], []>} : vector<222x4xf32>, vector<4x20xf32>, vector<222x20xf32> -> vector<222x20xf32>
    %10 = arith.addf %6, %9 : vector<222x20xf32>
    %c16 = arith.constant 16 : index
    %c0_9 = arith.constant 0 : index
    %11 = vector.load %arg1[%c16, %c0_9] : memref<512x4xf32, #tpu.memory_space<vmem>>, vector<222x4xf32>
    %c12 = arith.constant 12 : index
    %c0_10 = arith.constant 0 : index
    %12 = vector.load %arg2[%c12, %c0_10] : memref<36x20xf32, #tpu.memory_space<vmem>>, vector<4x20xf32>
    %cst_11 = arith.constant dense<0.000000e+00> : vector<222x20xf32>
    %13 = tpu.matmul %11, %12, %cst_11 {dimension_numbers = #tpu.dot_dimension_numbers<[1], [0], [0], [1], [0, 0, 1, 1], [], []>} : vector<222x4xf32>, vector<4x20xf32>, vector<222x20xf32> -> vector<222x20xf32>
    %14 = arith.addf %10, %13 : vector<222x20xf32>
    %c17 = arith.constant 17 : index
    %c0_12 = arith.constant 0 : index
    %15 = vector.load %arg1[%c17, %c0_12] : memref<512x4xf32, #tpu.memory_space<vmem>>, vector<222x4xf32>
    %c16_13 = arith.constant 16 : index
    %c0_14 = arith.constant 0 : index
    %16 = vector.load %arg2[%c16_13, %c0_14] : memref<36x20xf32, #tpu.memory_space<vmem>>, vector<4x20xf32>
    %cst_15 = arith.constant dense<0.000000e+00> : vector<222x20xf32>
    %17 = tpu.matmul %15, %16, %cst_15 {dimension_numbers = #tpu.dot_dimension_numbers<[1], [0], [0], [1], [0, 0, 1, 1], [], []>} : vector<222x4xf32>, vector<4x20xf32>, vector<222x20xf32> -> vector<222x20xf32>
    %18 = arith.addf %14, %17 : vector<222x20xf32>
    %c18 = arith.constant 18 : index
    %c0_16 = arith.constant 0 : index
    %19 = vector.load %arg1[%c18, %c0_16] : memref<512x4xf32, #tpu.memory_space<vmem>>, vector<222x4xf32>
    %c20 = arith.constant 20 : index
    %c0_17 = arith.constant 0 : index
    %20 = vector.load %arg2[%c20, %c0_17] : memref<36x20xf32, #tpu.memory_space<vmem>>, vector<4x20xf32>
    %cst_18 = arith.constant dense<0.000000e+00> : vector<222x20xf32>
    %21 = tpu.matmul %19, %20, %cst_18 {dimension_numbers = #tpu.dot_dimension_numbers<[1], [0], [0], [1], [0, 0, 1, 1], [], []>} : vector<222x4xf32>, vector<4x20xf32>, vector<222x20xf32> -> vector<222x20xf32>
    %22 = arith.addf %18, %21 : vector<222x20xf32>
    %c32 = arith.constant 32 : index
    %c0_19 = arith.constant 0 : index
    %23 = vector.load %arg1[%c32, %c0_19] : memref<512x4xf32, #tpu.memory_space<vmem>>, vector<222x4xf32>
    %c24 = arith.constant 24 : index
    %c0_20 = arith.constant 0 : index
    %24 = vector.load %arg2[%c24, %c0_20] : memref<36x20xf32, #tpu.memory_space<vmem>>, vector<4x20xf32>
    %cst_21 = arith.constant dense<0.000000e+00> : vector<222x20xf32>
    %25 = tpu.matmul %23, %24, %cst_21 {dimension_numbers = #tpu.dot_dimension_numbers<[1], [0], [0], [1], [0, 0, 1, 1], [], []>} : vector<222x4xf32>, vector<4x20xf32>, vector<222x20xf32> -> vector<222x20xf32>
    %26 = arith.addf %22, %25 : vector<222x20xf32>
    %c33 = arith.constant 33 : index
    %c0_22 = arith.constant 0 : index
    %27 = vector.load %arg1[%c33, %c0_22] : memref<512x4xf32, #tpu.memory_space<vmem>>, vector<222x4xf32>
    %c28 = arith.constant 28 : index
    %c0_23 = arith.constant 0 : index
    %28 = vector.load %arg2[%c28, %c0_23] : memref<36x20xf32, #tpu.memory_space<vmem>>, vector<4x20xf32>
    %cst_24 = arith.constant dense<0.000000e+00> : vector<222x20xf32>
    %29 = tpu.matmul %27, %28, %cst_24 {dimension_numbers = #tpu.dot_dimension_numbers<[1], [0], [0], [1], [0, 0, 1, 1], [], []>} : vector<222x4xf32>, vector<4x20xf32>, vector<222x20xf32> -> vector<222x20xf32>
    %30 = arith.addf %26, %29 : vector<222x20xf32>
    %c34 = arith.constant 34 : index
    %c0_25 = arith.constant 0 : index
    %31 = vector.load %arg1[%c34, %c0_25] : memref<512x4xf32, #tpu.memory_space<vmem>>, vector<222x4xf32>
    %c32_26 = arith.constant 32 : index
    %c0_27 = arith.constant 0 : index
    %32 = vector.load %arg2[%c32_26, %c0_27] : memref<36x20xf32, #tpu.memory_space<vmem>>, vector<4x20xf32>
    %cst_28 = arith.constant dense<0.000000e+00> : vector<222x20xf32>
    %33 = tpu.matmul %31, %32, %cst_28 {dimension_numbers = #tpu.dot_dimension_numbers<[1], [0], [0], [1], [0, 0, 1, 1], [], []>} : vector<222x4xf32>, vector<4x20xf32>, vector<222x20xf32> -> vector<222x20xf32>
    %34 = arith.addf %30, %33 : vector<222x20xf32>
    %c0_29 = arith.constant 0 : index
    %c0_30 = arith.constant 0 : index
    %35 = vector.load %arg3[%c0_29, %c0_30] : memref<1x20xf32, #tpu.memory_space<vmem>>, vector<1x20xf32>
    %36 = vector.broadcast %35 : vector<1x20xf32> to vector<222x20xf32>
    %37 = arith.addf %34, %36 : vector<222x20xf32>
    %cst_31 = arith.constant 0.000000e+00 : f32
    %38 = vector.broadcast %cst_31 : f32 to vector<222x20xf32>
    %39 = arith.cmpf ogt, %37, %38 : vector<222x20xf32>
    %cst_32 = arith.constant 0.000000e+00 : f32
    %40 = vector.broadcast %cst_32 : f32 to vector<222x20xf32>
    %41 = arith.minimumf %37, %40 : vector<222x20xf32>
    %42 = math.exp %41 : vector<222x20xf32>
    %cst_33 = arith.constant 1.000000e+00 : f32
    %43 = vector.broadcast %cst_33 : f32 to vector<222x20xf32>
    %44 = arith.subf %42, %43 : vector<222x20xf32>
    %45 = arith.select %39, %37, %44 : vector<222x20xi1>, vector<222x20xf32>
    %46 = vector.extract_strided_slice %45 {offsets = [0, 0], sizes = [206, 20], strides = [1, 1]} : vector<222x20xf32> to vector<206x20xf32>
    %47 = vector.extract_strided_slice %45 {offsets = [16, 0], sizes = [206, 20], strides = [1, 1]} : vector<222x20xf32> to vector<206x20xf32>
    %48 = arith.maximumf %46, %47 : vector<206x20xf32>
    %c0_34 = arith.constant 0 : index
    %c0_35 = arith.constant 0 : index
    %49 = vector.load %arg11[%c0_34, %c0_35] : memref<206x20xf32, #tpu.memory_space<vmem>>, vector<206x20xf32>
    tpu.vector_store %arg11[%c0_34, %c0_35], %48 {strides = array<i32>} : memref<206x20xf32, #tpu.memory_space<vmem>>, vector<206x20xf32>,
    %c0_36 = arith.constant 0 : index
    %c0_37 = arith.constant 0 : index
    %50 = tpu.strided_load %arg11[%c0_36, %c0_37] {strides = array<i32: 2, 1>} : memref<206x20xf32, #tpu.memory_space<vmem>>, vector<7x20xf32>
    %c1_38 = arith.constant 1 : index
    %c0_39 = arith.constant 0 : index
    %51 = tpu.strided_load %arg11[%c1_38, %c0_39] {strides = array<i32: 2, 1>} : memref<206x20xf32, #tpu.memory_space<vmem>>, vector<7x20xf32>
    %52 = arith.maximumf %50, %51 : vector<7x20xf32>
    %c32_40 = arith.constant 32 : index
    %c0_41 = arith.constant 0 : index
    %53 = tpu.strided_load %arg11[%c32_40, %c0_41] {strides = array<i32: 2, 1>} : memref<206x20xf32, #tpu.memory_space<vmem>>, vector<7x20xf32>
    %c33_42 = arith.constant 33 : index
    %c0_43 = arith.constant 0 : index
    %54 = tpu.strided_load %arg11[%c33_42, %c0_43] {strides = array<i32: 2, 1>} : memref<206x20xf32, #tpu.memory_space<vmem>>, vector<7x20xf32>
    %55 = arith.maximumf %53, %54 : vector<7x20xf32>
    %c64 = arith.constant 64 : index
    %c0_44 = arith.constant 0 : index
    %56 = tpu.strided_load %arg11[%c64, %c0_44] {strides = array<i32: 2, 1>} : memref<206x20xf32, #tpu.memory_space<vmem>>, vector<7x20xf32>
    %c65 = arith.constant 65 : index
    %c0_45 = arith.constant 0 : index
    %57 = tpu.strided_load %arg11[%c65, %c0_45] {strides = array<i32: 2, 1>} : memref<206x20xf32, #tpu.memory_space<vmem>>, vector<7x20xf32>
    %58 = arith.maximumf %56, %57 : vector<7x20xf32>
    %c96 = arith.constant 96 : index
    %c0_46 = arith.constant 0 : index
    %59 = tpu.strided_load %arg11[%c96, %c0_46] {strides = array<i32: 2, 1>} : memref<206x20xf32, #tpu.memory_space<vmem>>, vector<7x20xf32>
    %c97 = arith.constant 97 : index
    %c0_47 = arith.constant 0 : index
    %60 = tpu.strided_load %arg11[%c97, %c0_47] {strides = array<i32: 2, 1>} : memref<206x20xf32, #tpu.memory_space<vmem>>, vector<7x20xf32>
    %61 = arith.maximumf %59, %60 : vector<7x20xf32>
    %c128 = arith.constant 128 : index
    %c0_48 = arith.constant 0 : index
    %62 = tpu.strided_load %arg11[%c128, %c0_48] {strides = array<i32: 2, 1>} : memref<206x20xf32, #tpu.memory_space<vmem>>, vector<7x20xf32>
    %c129 = arith.constant 129 : index
    %c0_49 = arith.constant 0 : index
    %63 = tpu.strided_load %arg11[%c129, %c0_49] {strides = array<i32: 2, 1>} : memref<206x20xf32, #tpu.memory_space<vmem>>, vector<7x20xf32>
    %64 = arith.maximumf %62, %63 : vector<7x20xf32>
    %c160 = arith.constant 160 : index
    %c0_50 = arith.constant 0 : index
    %65 = tpu.strided_load %arg11[%c160, %c0_50] {strides = array<i32: 2, 1>} : memref<206x20xf32, #tpu.memory_space<vmem>>, vector<7x20xf32>
    %c161 = arith.constant 161 : index
    %c0_51 = arith.constant 0 : index
    %66 = tpu.strided_load %arg11[%c161, %c0_51] {strides = array<i32: 2, 1>} : memref<206x20xf32, #tpu.memory_space<vmem>>, vector<7x20xf32>
    %67 = arith.maximumf %65, %66 : vector<7x20xf32>
    %c192 = arith.constant 192 : index
    %c0_52 = arith.constant 0 : index
    %68 = tpu.strided_load %arg11[%c192, %c0_52] {strides = array<i32: 2, 1>} : memref<206x20xf32, #tpu.memory_space<vmem>>, vector<7x20xf32>
    %c193 = arith.constant 193 : index
    %c0_53 = arith.constant 0 : index
    %69 = tpu.strided_load %arg11[%c193, %c0_53] {strides = array<i32: 2, 1>} : memref<206x20xf32, #tpu.memory_space<vmem>>, vector<7x20xf32>
    %70 = arith.maximumf %68, %69 : vector<7x20xf32>
    %71 = tpu.concatenate %52, %55, %58, %61, %64, %67, %70 in 0 : vector<7x20xf32>, vector<7x20xf32>, vector<7x20xf32>, vector<7x20xf32>, vector<7x20xf32>, vector<7x20xf32>, vector<7x20xf32> -> vector<49x20xf32>
    %c0_54 = arith.constant 0 : index
    %c0_55 = arith.constant 0 : index
    %72 = vector.load %arg12[%c0_54, %c0_55] : memref<98x20xf32, #tpu.memory_space<vmem>>, vector<49x20xf32>
    tpu.vector_store %arg12[%c0_54, %c0_55], %71 {strides = array<i32>} : memref<98x20xf32, #tpu.memory_space<vmem>>, vector<49x20xf32>,
    %c0_56 = arith.constant 0 : index
    %c0_57 = arith.constant 0 : index
    %73 = vector.load %arg12[%c0_56, %c0_57] : memref<98x20xf32, #tpu.memory_space<vmem>>, vector<33x20xf32>
    %c0_58 = arith.constant 0 : index
    %c0_59 = arith.constant 0 : index
    %74 = vector.load %arg4[%c0_58, %c0_59] : memref<180x50xf32, #tpu.memory_space<vmem>>, vector<20x50xf32>
    %cst_60 = arith.constant dense<0.000000e+00> : vector<33x50xf32>
    %75 = tpu.matmul %73, %74, %cst_60 {dimension_numbers = #tpu.dot_dimension_numbers<[1], [0], [0], [1], [0, 0, 1, 1], [], []>} : vector<33x20xf32>, vector<20x50xf32>, vector<33x50xf32> -> vector<33x50xf32>
    %c1_61 = arith.constant 1 : index
    %c0_62 = arith.constant 0 : index
    %76 = vector.load %arg12[%c1_61, %c0_62] : memref<98x20xf32, #tpu.memory_space<vmem>>, vector<33x20xf32>
    %c20_63 = arith.constant 20 : index
    %c0_64 = arith.constant 0 : index
    %77 = vector.load %arg4[%c20_63, %c0_64] : memref<180x50xf32, #tpu.memory_space<vmem>>, vector<20x50xf32>
    %cst_65 = arith.constant dense<0.000000e+00> : vector<33x50xf32>
    %78 = tpu.matmul %76, %77, %cst_65 {dimension_numbers = #tpu.dot_dimension_numbers<[1], [0], [0], [1], [0, 0, 1, 1], [], []>} : vector<33x20xf32>, vector<20x50xf32>, vector<33x50xf32> -> vector<33x50xf32>
    %79 = arith.addf %75, %78 : vector<33x50xf32>
    %c2_66 = arith.constant 2 : index
    %c0_67 = arith.constant 0 : index
    %80 = vector.load %arg12[%c2_66, %c0_67] : memref<98x20xf32, #tpu.memory_space<vmem>>, vector<33x20xf32>
    %c40 = arith.constant 40 : index
    %c0_68 = arith.constant 0 : index
    %81 = vector.load %arg4[%c40, %c0_68] : memref<180x50xf32, #tpu.memory_space<vmem>>, vector<20x50xf32>
    %cst_69 = arith.constant dense<0.000000e+00> : vector<33x50xf32>
    %82 = tpu.matmul %80, %81, %cst_69 {dimension_numbers = #tpu.dot_dimension_numbers<[1], [0], [0], [1], [0, 0, 1, 1], [], []>} : vector<33x20xf32>, vector<20x50xf32>, vector<33x50xf32> -> vector<33x50xf32>
    %83 = arith.addf %79, %82 : vector<33x50xf32>
    %c7 = arith.constant 7 : index
    %c0_70 = arith.constant 0 : index
    %84 = vector.load %arg12[%c7, %c0_70] : memref<98x20xf32, #tpu.memory_space<vmem>>, vector<33x20xf32>
    %c60 = arith.constant 60 : index
    %c0_71 = arith.constant 0 : index
    %85 = vector.load %arg4[%c60, %c0_71] : memref<180x50xf32, #tpu.memory_space<vmem>>, vector<20x50xf32>
    %cst_72 = arith.constant dense<0.000000e+00> : vector<33x50xf32>
    %86 = tpu.matmul %84, %85, %cst_72 {dimension_numbers = #tpu.dot_dimension_numbers<[1], [0], [0], [1], [0, 0, 1, 1], [], []>} : vector<33x20xf32>, vector<20x50xf32>, vector<33x50xf32> -> vector<33x50xf32>
    %87 = arith.addf %83, %86 : vector<33x50xf32>
    %c8_73 = arith.constant 8 : index
    %c0_74 = arith.constant 0 : index
    %88 = vector.load %arg12[%c8_73, %c0_74] : memref<98x20xf32, #tpu.memory_space<vmem>>, vector<33x20xf32>
    %c80 = arith.constant 80 : index
    %c0_75 = arith.constant 0 : index
    %89 = vector.load %arg4[%c80, %c0_75] : memref<180x50xf32, #tpu.memory_space<vmem>>, vector<20x50xf32>
    %cst_76 = arith.constant dense<0.000000e+00> : vector<33x50xf32>
    %90 = tpu.matmul %88, %89, %cst_76 {dimension_numbers = #tpu.dot_dimension_numbers<[1], [0], [0], [1], [0, 0, 1, 1], [], []>} : vector<33x20xf32>, vector<20x50xf32>, vector<33x50xf32> -> vector<33x50xf32>
    %91 = arith.addf %87, %90 : vector<33x50xf32>
    %c9 = arith.constant 9 : index
    %c0_77 = arith.constant 0 : index
    %92 = vector.load %arg12[%c9, %c0_77] : memref<98x20xf32, #tpu.memory_space<vmem>>, vector<33x20xf32>
    %c100 = arith.constant 100 : index
    %c0_78 = arith.constant 0 : index
    %93 = vector.load %arg4[%c100, %c0_78] : memref<180x50xf32, #tpu.memory_space<vmem>>, vector<20x50xf32>
    %cst_79 = arith.constant dense<0.000000e+00> : vector<33x50xf32>
    %94 = tpu.matmul %92, %93, %cst_79 {dimension_numbers = #tpu.dot_dimension_numbers<[1], [0], [0], [1], [0, 0, 1, 1], [], []>} : vector<33x20xf32>, vector<20x50xf32>, vector<33x50xf32> -> vector<33x50xf32>
    %95 = arith.addf %91, %94 : vector<33x50xf32>
    %c14 = arith.constant 14 : index
    %c0_80 = arith.constant 0 : index
    %96 = vector.load %arg12[%c14, %c0_80] : memref<98x20xf32, #tpu.memory_space<vmem>>, vector<33x20xf32>
    %c120 = arith.constant 120 : index
    %c0_81 = arith.constant 0 : index
    %97 = vector.load %arg4[%c120, %c0_81] : memref<180x50xf32, #tpu.memory_space<vmem>>, vector<20x50xf32>
    %cst_82 = arith.constant dense<0.000000e+00> : vector<33x50xf32>
    %98 = tpu.matmul %96, %97, %cst_82 {dimension_numbers = #tpu.dot_dimension_numbers<[1], [0], [0], [1], [0, 0, 1, 1], [], []>} : vector<33x20xf32>, vector<20x50xf32>, vector<33x50xf32> -> vector<33x50xf32>
    %99 = arith.addf %95, %98 : vector<33x50xf32>
    %c15 = arith.constant 15 : index
    %c0_83 = arith.constant 0 : index
    %100 = vector.load %arg12[%c15, %c0_83] : memref<98x20xf32, #tpu.memory_space<vmem>>, vector<33x20xf32>
    %c140 = arith.constant 140 : index
    %c0_84 = arith.constant 0 : index
    %101 = vector.load %arg4[%c140, %c0_84] : memref<180x50xf32, #tpu.memory_space<vmem>>, vector<20x50xf32>
    %cst_85 = arith.constant dense<0.000000e+00> : vector<33x50xf32>
    %102 = tpu.matmul %100, %101, %cst_85 {dimension_numbers = #tpu.dot_dimension_numbers<[1], [0], [0], [1], [0, 0, 1, 1], [], []>} : vector<33x20xf32>, vector<20x50xf32>, vector<33x50xf32> -> vector<33x50xf32>
    %103 = arith.addf %99, %102 : vector<33x50xf32>
    %c16_86 = arith.constant 16 : index
    %c0_87 = arith.constant 0 : index
    %104 = vector.load %arg12[%c16_86, %c0_87] : memref<98x20xf32, #tpu.memory_space<vmem>>, vector<33x20xf32>
    %c160_88 = arith.constant 160 : index
    %c0_89 = arith.constant 0 : index
    %105 = vector.load %arg4[%c160_88, %c0_89] : memref<180x50xf32, #tpu.memory_space<vmem>>, vector<20x50xf32>
    %cst_90 = arith.constant dense<0.000000e+00> : vector<33x50xf32>
    %106 = tpu.matmul %104, %105, %cst_90 {dimension_numbers = #tpu.dot_dimension_numbers<[1], [0], [0], [1], [0, 0, 1, 1], [], []>} : vector<33x20xf32>, vector<20x50xf32>, vector<33x50xf32> -> vector<33x50xf32>
    %107 = arith.addf %103, %106 : vector<33x50xf32>
    %c0_91 = arith.constant 0 : index
    %c0_92 = arith.constant 0 : index
    %108 = vector.load %arg5[%c0_91, %c0_92] : memref<1x50xf32, #tpu.memory_space<vmem>>, vector<1x50xf32>
    %109 = vector.broadcast %108 : vector<1x50xf32> to vector<33x50xf32>
    %110 = arith.addf %107, %109 : vector<33x50xf32>
    %cst_93 = arith.constant 0.000000e+00 : f32
    %111 = vector.broadcast %cst_93 : f32 to vector<33x50xf32>
    %112 = arith.cmpf ogt, %110, %111 : vector<33x50xf32>
    %cst_94 = arith.constant 0.000000e+00 : f32
    %113 = vector.broadcast %cst_94 : f32 to vector<33x50xf32>
    %114 = arith.minimumf %110, %113 : vector<33x50xf32>
    %115 = math.exp %114 : vector<33x50xf32>
    %cst_95 = arith.constant 1.000000e+00 : f32
    %116 = vector.broadcast %cst_95 : f32 to vector<33x50xf32>
    %117 = arith.subf %115, %116 : vector<33x50xf32>
    %118 = arith.select %112, %110, %117 : vector<33x50xi1>, vector<33x50xf32>
    %119 = vector.extract_strided_slice %118 {offsets = [0, 0], sizes = [18, 50], strides = [1, 1]} : vector<33x50xf32> to vector<18x50xf32>
    %120 = vector.extract_strided_slice %118 {offsets = [7, 0], sizes = [18, 50], strides = [1, 1]} : vector<33x50xf32> to vector<18x50xf32>
    %121 = arith.maximumf %119, %120 : vector<18x50xf32>
    %c0_96 = arith.constant 0 : index
    %c0_97 = arith.constant 0 : index
    %122 = vector.load %arg13[%c0_96, %c0_97] : memref<18x50xf32, #tpu.memory_space<vmem>>, vector<18x50xf32>
    tpu.vector_store %arg13[%c0_96, %c0_97], %121 {strides = array<i32>} : memref<18x50xf32, #tpu.memory_space<vmem>>, vector<18x50xf32>,
    %c0_98 = arith.constant 0 : index
    %c0_99 = arith.constant 0 : index
    %123 = tpu.strided_load %arg13[%c0_98, %c0_99] {strides = array<i32: 2, 1>} : memref<18x50xf32, #tpu.memory_space<vmem>>, vector<2x50xf32>
    %c1_100 = arith.constant 1 : index
    %c0_101 = arith.constant 0 : index
    %124 = tpu.strided_load %arg13[%c1_100, %c0_101] {strides = array<i32: 2, 1>} : memref<18x50xf32, #tpu.memory_space<vmem>>, vector<2x50xf32>
    %125 = arith.maximumf %123, %124 : vector<2x50xf32>
    %126 = vector.extract_strided_slice %125 {offsets = [0, 0], sizes = [1, 50], strides = [1, 1]} : vector<2x50xf32> to vector<1x50xf32>
    %127 = vector.extract_strided_slice %125 {offsets = [1, 0], sizes = [1, 50], strides = [1, 1]} : vector<2x50xf32> to vector<1x50xf32>
    %c14_102 = arith.constant 14 : index
    %c0_103 = arith.constant 0 : index
    %128 = tpu.strided_load %arg13[%c14_102, %c0_103] {strides = array<i32: 2, 1>} : memref<18x50xf32, #tpu.memory_space<vmem>>, vector<2x50xf32>
    %c15_104 = arith.constant 15 : index
    %c0_105 = arith.constant 0 : index
    %129 = tpu.strided_load %arg13[%c15_104, %c0_105] {strides = array<i32: 2, 1>} : memref<18x50xf32, #tpu.memory_space<vmem>>, vector<2x50xf32>
    %130 = arith.maximumf %128, %129 : vector<2x50xf32>
    %131 = vector.extract_strided_slice %130 {offsets = [0, 0], sizes = [1, 50], strides = [1, 1]} : vector<2x50xf32> to vector<1x50xf32>
    %132 = vector.extract_strided_slice %130 {offsets = [1, 0], sizes = [1, 50], strides = [1, 1]} : vector<2x50xf32> to vector<1x50xf32>
    %133 = tpu.concatenate %126, %127, %131, %132 in 1 : vector<1x50xf32>, vector<1x50xf32>, vector<1x50xf32>, vector<1x50xf32> -> vector<1x200xf32>
    %c256 = arith.constant 256 : index
    %c0_106 = arith.constant 0 : index
    %134 = vector.load %arg1[%c256, %c0_106] : memref<512x4xf32, #tpu.memory_space<vmem>>, vector<222x4xf32>
    %c0_107 = arith.constant 0 : index
    %c0_108 = arith.constant 0 : index
    %135 = vector.load %arg2[%c0_107, %c0_108] : memref<36x20xf32, #tpu.memory_space<vmem>>, vector<4x20xf32>
    %cst_109 = arith.constant dense<0.000000e+00> : vector<222x20xf32>
    %136 = tpu.matmul %134, %135, %cst_109 {dimension_numbers = #tpu.dot_dimension_numbers<[1], [0], [0], [1], [0, 0, 1, 1], [], []>} : vector<222x4xf32>, vector<4x20xf32>, vector<222x20xf32> -> vector<222x20xf32>
    %c257 = arith.constant 257 : index
    %c0_110 = arith.constant 0 : index
    %137 = vector.load %arg1[%c257, %c0_110] : memref<512x4xf32, #tpu.memory_space<vmem>>, vector<222x4xf32>
    %c4_111 = arith.constant 4 : index
    %c0_112 = arith.constant 0 : index
    %138 = vector.load %arg2[%c4_111, %c0_112] : memref<36x20xf32, #tpu.memory_space<vmem>>, vector<4x20xf32>
    %cst_113 = arith.constant dense<0.000000e+00> : vector<222x20xf32>
    %139 = tpu.matmul %137, %138, %cst_113 {dimension_numbers = #tpu.dot_dimension_numbers<[1], [0], [0], [1], [0, 0, 1, 1], [], []>} : vector<222x4xf32>, vector<4x20xf32>, vector<222x20xf32> -> vector<222x20xf32>
    %140 = arith.addf %136, %139 : vector<222x20xf32>
    %c258 = arith.constant 258 : index
    %c0_114 = arith.constant 0 : index
    %141 = vector.load %arg1[%c258, %c0_114] : memref<512x4xf32, #tpu.memory_space<vmem>>, vector<222x4xf32>
    %c8_115 = arith.constant 8 : index
    %c0_116 = arith.constant 0 : index
    %142 = vector.load %arg2[%c8_115, %c0_116] : memref<36x20xf32, #tpu.memory_space<vmem>>, vector<4x20xf32>
    %cst_117 = arith.constant dense<0.000000e+00> : vector<222x20xf32>
    %143 = tpu.matmul %141, %142, %cst_117 {dimension_numbers = #tpu.dot_dimension_numbers<[1], [0], [0], [1], [0, 0, 1, 1], [], []>} : vector<222x4xf32>, vector<4x20xf32>, vector<222x20xf32> -> vector<222x20xf32>
    %144 = arith.addf %140, %143 : vector<222x20xf32>
    %c272 = arith.constant 272 : index
    %c0_118 = arith.constant 0 : index
    %145 = vector.load %arg1[%c272, %c0_118] : memref<512x4xf32, #tpu.memory_space<vmem>>, vector<222x4xf32>
    %c12_119 = arith.constant 12 : index
    %c0_120 = arith.constant 0 : index
    %146 = vector.load %arg2[%c12_119, %c0_120] : memref<36x20xf32, #tpu.memory_space<vmem>>, vector<4x20xf32>
    %cst_121 = arith.constant dense<0.000000e+00> : vector<222x20xf32>
    %147 = tpu.matmul %145, %146, %cst_121 {dimension_numbers = #tpu.dot_dimension_numbers<[1], [0], [0], [1], [0, 0, 1, 1], [], []>} : vector<222x4xf32>, vector<4x20xf32>, vector<222x20xf32> -> vector<222x20xf32>
    %148 = arith.addf %144, %147 : vector<222x20xf32>
    %c273 = arith.constant 273 : index
    %c0_122 = arith.constant 0 : index
    %149 = vector.load %arg1[%c273, %c0_122] : memref<512x4xf32, #tpu.memory_space<vmem>>, vector<222x4xf32>
    %c16_123 = arith.constant 16 : index
    %c0_124 = arith.constant 0 : index
    %150 = vector.load %arg2[%c16_123, %c0_124] : memref<36x20xf32, #tpu.memory_space<vmem>>, vector<4x20xf32>
    %cst_125 = arith.constant dense<0.000000e+00> : vector<222x20xf32>
    %151 = tpu.matmul %149, %150, %cst_125 {dimension_numbers = #tpu.dot_dimension_numbers<[1], [0], [0], [1], [0, 0, 1, 1], [], []>} : vector<222x4xf32>, vector<4x20xf32>, vector<222x20xf32> -> vector<222x20xf32>
    %152 = arith.addf %148, %151 : vector<222x20xf32>
    %c274 = arith.constant 274 : index
    %c0_126 = arith.constant 0 : index
    %153 = vector.load %arg1[%c274, %c0_126] : memref<512x4xf32, #tpu.memory_space<vmem>>, vector<222x4xf32>
    %c20_127 = arith.constant 20 : index
    %c0_128 = arith.constant 0 : index
    %154 = vector.load %arg2[%c20_127, %c0_128] : memref<36x20xf32, #tpu.memory_space<vmem>>, vector<4x20xf32>
    %cst_129 = arith.constant dense<0.000000e+00> : vector<222x20xf32>
    %155 = tpu.matmul %153, %154, %cst_129 {dimension_numbers = #tpu.dot_dimension_numbers<[1], [0], [0], [1], [0, 0, 1, 1], [], []>} : vector<222x4xf32>, vector<4x20xf32>, vector<222x20xf32> -> vector<222x20xf32>
    %156 = arith.addf %152, %155 : vector<222x20xf32>
    %c288 = arith.constant 288 : index
    %c0_130 = arith.constant 0 : index
    %157 = vector.load %arg1[%c288, %c0_130] : memref<512x4xf32, #tpu.memory_space<vmem>>, vector<222x4xf32>
    %c24_131 = arith.constant 24 : index
    %c0_132 = arith.constant 0 : index
    %158 = vector.load %arg2[%c24_131, %c0_132] : memref<36x20xf32, #tpu.memory_space<vmem>>, vector<4x20xf32>
    %cst_133 = arith.constant dense<0.000000e+00> : vector<222x20xf32>
    %159 = tpu.matmul %157, %158, %cst_133 {dimension_numbers = #tpu.dot_dimension_numbers<[1], [0], [0], [1], [0, 0, 1, 1], [], []>} : vector<222x4xf32>, vector<4x20xf32>, vector<222x20xf32> -> vector<222x20xf32>
    %160 = arith.addf %156, %159 : vector<222x20xf32>
    %c289 = arith.constant 289 : index
    %c0_134 = arith.constant 0 : index
    %161 = vector.load %arg1[%c289, %c0_134] : memref<512x4xf32, #tpu.memory_space<vmem>>, vector<222x4xf32>
    %c28_135 = arith.constant 28 : index
    %c0_136 = arith.constant 0 : index
    %162 = vector.load %arg2[%c28_135, %c0_136] : memref<36x20xf32, #tpu.memory_space<vmem>>, vector<4x20xf32>
    %cst_137 = arith.constant dense<0.000000e+00> : vector<222x20xf32>
    %163 = tpu.matmul %161, %162, %cst_137 {dimension_numbers = #tpu.dot_dimension_numbers<[1], [0], [0], [1], [0, 0, 1, 1], [], []>} : vector<222x4xf32>, vector<4x20xf32>, vector<222x20xf32> -> vector<222x20xf32>
    %164 = arith.addf %160, %163 : vector<222x20xf32>
    %c290 = arith.constant 290 : index
    %c0_138 = arith.constant 0 : index
    %165 = vector.load %arg1[%c290, %c0_138] : memref<512x4xf32, #tpu.memory_space<vmem>>, vector<222x4xf32>
    %c32_139 = arith.constant 32 : index
    %c0_140 = arith.constant 0 : index
    %166 = vector.load %arg2[%c32_139, %c0_140] : memref<36x20xf32, #tpu.memory_space<vmem>>, vector<4x20xf32>
    %cst_141 = arith.constant dense<0.000000e+00> : vector<222x20xf32>
    %167 = tpu.matmul %165, %166, %cst_141 {dimension_numbers = #tpu.dot_dimension_numbers<[1], [0], [0], [1], [0, 0, 1, 1], [], []>} : vector<222x4xf32>, vector<4x20xf32>, vector<222x20xf32> -> vector<222x20xf32>
    %168 = arith.addf %164, %167 : vector<222x20xf32>
    %c0_142 = arith.constant 0 : index
    %c0_143 = arith.constant 0 : index
    %169 = vector.load %arg3[%c0_142, %c0_143] : memref<1x20xf32, #tpu.memory_space<vmem>>, vector<1x20xf32>
    %170 = vector.broadcast %169 : vector<1x20xf32> to vector<222x20xf32>
    %171 = arith.addf %168, %170 : vector<222x20xf32>
    %cst_144 = arith.constant 0.000000e+00 : f32
    %172 = vector.broadcast %cst_144 : f32 to vector<222x20xf32>
    %173 = arith.cmpf ogt, %171, %172 : vector<222x20xf32>
    %cst_145 = arith.constant 0.000000e+00 : f32
    %174 = vector.broadcast %cst_145 : f32 to vector<222x20xf32>
    %175 = arith.minimumf %171, %174 : vector<222x20xf32>
    %176 = math.exp %175 : vector<222x20xf32>
    %cst_146 = arith.constant 1.000000e+00 : f32
    %177 = vector.broadcast %cst_146 : f32 to vector<222x20xf32>
    %178 = arith.subf %176, %177 : vector<222x20xf32>
    %179 = arith.select %173, %171, %178 : vector<222x20xi1>, vector<222x20xf32>
    %180 = vector.extract_strided_slice %179 {offsets = [0, 0], sizes = [206, 20], strides = [1, 1]} : vector<222x20xf32> to vector<206x20xf32>
    %181 = vector.extract_strided_slice %179 {offsets = [16, 0], sizes = [206, 20], strides = [1, 1]} : vector<222x20xf32> to vector<206x20xf32>
    %182 = arith.maximumf %180, %181 : vector<206x20xf32>
    %c0_147 = arith.constant 0 : index
    %c0_148 = arith.constant 0 : index
    %183 = vector.load %arg11[%c0_147, %c0_148] : memref<206x20xf32, #tpu.memory_space<vmem>>, vector<206x20xf32>
    tpu.vector_store %arg11[%c0_147, %c0_148], %182 {strides = array<i32>} : memref<206x20xf32, #tpu.memory_space<vmem>>, vector<206x20xf32>,
    %c0_149 = arith.constant 0 : index
    %c0_150 = arith.constant 0 : index
    %184 = tpu.strided_load %arg11[%c0_149, %c0_150] {strides = array<i32: 2, 1>} : memref<206x20xf32, #tpu.memory_space<vmem>>, vector<7x20xf32>
    %c1_151 = arith.constant 1 : index
    %c0_152 = arith.constant 0 : index
    %185 = tpu.strided_load %arg11[%c1_151, %c0_152] {strides = array<i32: 2, 1>} : memref<206x20xf32, #tpu.memory_space<vmem>>, vector<7x20xf32>
    %186 = arith.maximumf %184, %185 : vector<7x20xf32>
    %c32_153 = arith.constant 32 : index
    %c0_154 = arith.constant 0 : index
    %187 = tpu.strided_load %arg11[%c32_153, %c0_154] {strides = array<i32: 2, 1>} : memref<206x20xf32, #tpu.memory_space<vmem>>, vector<7x20xf32>
    %c33_155 = arith.constant 33 : index
    %c0_156 = arith.constant 0 : index
    %188 = tpu.strided_load %arg11[%c33_155, %c0_156] {strides = array<i32: 2, 1>} : memref<206x20xf32, #tpu.memory_space<vmem>>, vector<7x20xf32>
    %189 = arith.maximumf %187, %188 : vector<7x20xf32>
    %c64_157 = arith.constant 64 : index
    %c0_158 = arith.constant 0 : index
    %190 = tpu.strided_load %arg11[%c64_157, %c0_158] {strides = array<i32: 2, 1>} : memref<206x20xf32, #tpu.memory_space<vmem>>, vector<7x20xf32>
    %c65_159 = arith.constant 65 : index
    %c0_160 = arith.constant 0 : index
    %191 = tpu.strided_load %arg11[%c65_159, %c0_160] {strides = array<i32: 2, 1>} : memref<206x20xf32, #tpu.memory_space<vmem>>, vector<7x20xf32>
    %192 = arith.maximumf %190, %191 : vector<7x20xf32>
    %c96_161 = arith.constant 96 : index
    %c0_162 = arith.constant 0 : index
    %193 = tpu.strided_load %arg11[%c96_161, %c0_162] {strides = array<i32: 2, 1>} : memref<206x20xf32, #tpu.memory_space<vmem>>, vector<7x20xf32>
    %c97_163 = arith.constant 97 : index
    %c0_164 = arith.constant 0 : index
    %194 = tpu.strided_load %arg11[%c97_163, %c0_164] {strides = array<i32: 2, 1>} : memref<206x20xf32, #tpu.memory_space<vmem>>, vector<7x20xf32>
    %195 = arith.maximumf %193, %194 : vector<7x20xf32>
    %c128_165 = arith.constant 128 : index
    %c0_166 = arith.constant 0 : index
    %196 = tpu.strided_load %arg11[%c128_165, %c0_166] {strides = array<i32: 2, 1>} : memref<206x20xf32, #tpu.memory_space<vmem>>, vector<7x20xf32>
    %c129_167 = arith.constant 129 : index
    %c0_168 = arith.constant 0 : index
    %197 = tpu.strided_load %arg11[%c129_167, %c0_168] {strides = array<i32: 2, 1>} : memref<206x20xf32, #tpu.memory_space<vmem>>, vector<7x20xf32>
    %198 = arith.maximumf %196, %197 : vector<7x20xf32>
    %c160_169 = arith.constant 160 : index
    %c0_170 = arith.constant 0 : index
    %199 = tpu.strided_load %arg11[%c160_169, %c0_170] {strides = array<i32: 2, 1>} : memref<206x20xf32, #tpu.memory_space<vmem>>, vector<7x20xf32>
    %c161_171 = arith.constant 161 : index
    %c0_172 = arith.constant 0 : index
    %200 = tpu.strided_load %arg11[%c161_171, %c0_172] {strides = array<i32: 2, 1>} : memref<206x20xf32, #tpu.memory_space<vmem>>, vector<7x20xf32>
    %201 = arith.maximumf %199, %200 : vector<7x20xf32>
    %c192_173 = arith.constant 192 : index
    %c0_174 = arith.constant 0 : index
    %202 = tpu.strided_load %arg11[%c192_173, %c0_174] {strides = array<i32: 2, 1>} : memref<206x20xf32, #tpu.memory_space<vmem>>, vector<7x20xf32>
    %c193_175 = arith.constant 193 : index
    %c0_176 = arith.constant 0 : index
    %203 = tpu.strided_load %arg11[%c193_175, %c0_176] {strides = array<i32: 2, 1>} : memref<206x20xf32, #tpu.memory_space<vmem>>, vector<7x20xf32>
    %204 = arith.maximumf %202, %203 : vector<7x20xf32>
    %205 = tpu.concatenate %186, %189, %192, %195, %198, %201, %204 in 0 : vector<7x20xf32>, vector<7x20xf32>, vector<7x20xf32>, vector<7x20xf32>, vector<7x20xf32>, vector<7x20xf32>, vector<7x20xf32> -> vector<49x20xf32>
    %c49 = arith.constant 49 : index
    %c0_177 = arith.constant 0 : index
    %206 = vector.load %arg12[%c49, %c0_177] : memref<98x20xf32, #tpu.memory_space<vmem>>, vector<49x20xf32>
    tpu.vector_store %arg12[%c49, %c0_177], %205 {strides = array<i32>} : memref<98x20xf32, #tpu.memory_space<vmem>>, vector<49x20xf32>,
    %c49_178 = arith.constant 49 : index
    %c0_179 = arith.constant 0 : index
    %207 = vector.load %arg12[%c49_178, %c0_179] : memref<98x20xf32, #tpu.memory_space<vmem>>, vector<33x20xf32>
    %c0_180 = arith.constant 0 : index
    %c0_181 = arith.constant 0 : index
    %208 = vector.load %arg4[%c0_180, %c0_181] : memref<180x50xf32, #tpu.memory_space<vmem>>, vector<20x50xf32>
    %cst_182 = arith.constant dense<0.000000e+00> : vector<33x50xf32>
    %209 = tpu.matmul %207, %208, %cst_182 {dimension_numbers = #tpu.dot_dimension_numbers<[1], [0], [0], [1], [0, 0, 1, 1], [], []>} : vector<33x20xf32>, vector<20x50xf32>, vector<33x50xf32> -> vector<33x50xf32>
    %c50 = arith.constant 50 : index
    %c0_183 = arith.constant 0 : index
    %210 = vector.load %arg12[%c50, %c0_183] : memref<98x20xf32, #tpu.memory_space<vmem>>, vector<33x20xf32>
    %c20_184 = arith.constant 20 : index
    %c0_185 = arith.constant 0 : index
    %211 = vector.load %arg4[%c20_184, %c0_185] : memref<180x50xf32, #tpu.memory_space<vmem>>, vector<20x50xf32>
    %cst_186 = arith.constant dense<0.000000e+00> : vector<33x50xf32>
    %212 = tpu.matmul %210, %211, %cst_186 {dimension_numbers = #tpu.dot_dimension_numbers<[1], [0], [0], [1], [0, 0, 1, 1], [], []>} : vector<33x20xf32>, vector<20x50xf32>, vector<33x50xf32> -> vector<33x50xf32>
    %213 = arith.addf %209, %212 : vector<33x50xf32>
    %c51 = arith.constant 51 : index
    %c0_187 = arith.constant 0 : index
    %214 = vector.load %arg12[%c51, %c0_187] : memref<98x20xf32, #tpu.memory_space<vmem>>, vector<33x20xf32>
    %c40_188 = arith.constant 40 : index
    %c0_189 = arith.constant 0 : index
    %215 = vector.load %arg4[%c40_188, %c0_189] : memref<180x50xf32, #tpu.memory_space<vmem>>, vector<20x50xf32>
    %cst_190 = arith.constant dense<0.000000e+00> : vector<33x50xf32>
    %216 = tpu.matmul %214, %215, %cst_190 {dimension_numbers = #tpu.dot_dimension_numbers<[1], [0], [0], [1], [0, 0, 1, 1], [], []>} : vector<33x20xf32>, vector<20x50xf32>, vector<33x50xf32> -> vector<33x50xf32>
    %217 = arith.addf %213, %216 : vector<33x50xf32>
    %c56 = arith.constant 56 : index
    %c0_191 = arith.constant 0 : index
    %218 = vector.load %arg12[%c56, %c0_191] : memref<98x20xf32, #tpu.memory_space<vmem>>, vector<33x20xf32>
    %c60_192 = arith.constant 60 : index
    %c0_193 = arith.constant 0 : index
    %219 = vector.load %arg4[%c60_192, %c0_193] : memref<180x50xf32, #tpu.memory_space<vmem>>, vector<20x50xf32>
    %cst_194 = arith.constant dense<0.000000e+00> : vector<33x50xf32>
    %220 = tpu.matmul %218, %219, %cst_194 {dimension_numbers = #tpu.dot_dimension_numbers<[1], [0], [0], [1], [0, 0, 1, 1], [], []>} : vector<33x20xf32>, vector<20x50xf32>, vector<33x50xf32> -> vector<33x50xf32>
    %221 = arith.addf %217, %220 : vector<33x50xf32>
    %c57 = arith.constant 57 : index
    %c0_195 = arith.constant 0 : index
    %222 = vector.load %arg12[%c57, %c0_195] : memref<98x20xf32, #tpu.memory_space<vmem>>, vector<33x20xf32>
    %c80_196 = arith.constant 80 : index
    %c0_197 = arith.constant 0 : index
    %223 = vector.load %arg4[%c80_196, %c0_197] : memref<180x50xf32, #tpu.memory_space<vmem>>, vector<20x50xf32>
    %cst_198 = arith.constant dense<0.000000e+00> : vector<33x50xf32>
    %224 = tpu.matmul %222, %223, %cst_198 {dimension_numbers = #tpu.dot_dimension_numbers<[1], [0], [0], [1], [0, 0, 1, 1], [], []>} : vector<33x20xf32>, vector<20x50xf32>, vector<33x50xf32> -> vector<33x50xf32>
    %225 = arith.addf %221, %224 : vector<33x50xf32>
    %c58 = arith.constant 58 : index
    %c0_199 = arith.constant 0 : index
    %226 = vector.load %arg12[%c58, %c0_199] : memref<98x20xf32, #tpu.memory_space<vmem>>, vector<33x20xf32>
    %c100_200 = arith.constant 100 : index
    %c0_201 = arith.constant 0 : index
    %227 = vector.load %arg4[%c100_200, %c0_201] : memref<180x50xf32, #tpu.memory_space<vmem>>, vector<20x50xf32>
    %cst_202 = arith.constant dense<0.000000e+00> : vector<33x50xf32>
    %228 = tpu.matmul %226, %227, %cst_202 {dimension_numbers = #tpu.dot_dimension_numbers<[1], [0], [0], [1], [0, 0, 1, 1], [], []>} : vector<33x20xf32>, vector<20x50xf32>, vector<33x50xf32> -> vector<33x50xf32>
    %229 = arith.addf %225, %228 : vector<33x50xf32>
    %c63 = arith.constant 63 : index
    %c0_203 = arith.constant 0 : index
    %230 = vector.load %arg12[%c63, %c0_203] : memref<98x20xf32, #tpu.memory_space<vmem>>, vector<33x20xf32>
    %c120_204 = arith.constant 120 : index
    %c0_205 = arith.constant 0 : index
    %231 = vector.load %arg4[%c120_204, %c0_205] : memref<180x50xf32, #tpu.memory_space<vmem>>, vector<20x50xf32>
    %cst_206 = arith.constant dense<0.000000e+00> : vector<33x50xf32>
    %232 = tpu.matmul %230, %231, %cst_206 {dimension_numbers = #tpu.dot_dimension_numbers<[1], [0], [0], [1], [0, 0, 1, 1], [], []>} : vector<33x20xf32>, vector<20x50xf32>, vector<33x50xf32> -> vector<33x50xf32>
    %233 = arith.addf %229, %232 : vector<33x50xf32>
    %c64_207 = arith.constant 64 : index
    %c0_208 = arith.constant 0 : index
    %234 = vector.load %arg12[%c64_207, %c0_208] : memref<98x20xf32, #tpu.memory_space<vmem>>, vector<33x20xf32>
    %c140_209 = arith.constant 140 : index
    %c0_210 = arith.constant 0 : index
    %235 = vector.load %arg4[%c140_209, %c0_210] : memref<180x50xf32, #tpu.memory_space<vmem>>, vector<20x50xf32>
    %cst_211 = arith.constant dense<0.000000e+00> : vector<33x50xf32>
    %236 = tpu.matmul %234, %235, %cst_211 {dimension_numbers = #tpu.dot_dimension_numbers<[1], [0], [0], [1], [0, 0, 1, 1], [], []>} : vector<33x20xf32>, vector<20x50xf32>, vector<33x50xf32> -> vector<33x50xf32>
    %237 = arith.addf %233, %236 : vector<33x50xf32>
    %c65_212 = arith.constant 65 : index
    %c0_213 = arith.constant 0 : index
    %238 = vector.load %arg12[%c65_212, %c0_213] : memref<98x20xf32, #tpu.memory_space<vmem>>, vector<33x20xf32>
    %c160_214 = arith.constant 160 : index
    %c0_215 = arith.constant 0 : index
    %239 = vector.load %arg4[%c160_214, %c0_215] : memref<180x50xf32, #tpu.memory_space<vmem>>, vector<20x50xf32>
    %cst_216 = arith.constant dense<0.000000e+00> : vector<33x50xf32>
    %240 = tpu.matmul %238, %239, %cst_216 {dimension_numbers = #tpu.dot_dimension_numbers<[1], [0], [0], [1], [0, 0, 1, 1], [], []>} : vector<33x20xf32>, vector<20x50xf32>, vector<33x50xf32> -> vector<33x50xf32>
    %241 = arith.addf %237, %240 : vector<33x50xf32>
    %c0_217 = arith.constant 0 : index
    %c0_218 = arith.constant 0 : index
    %242 = vector.load %arg5[%c0_217, %c0_218] : memref<1x50xf32, #tpu.memory_space<vmem>>, vector<1x50xf32>
    %243 = vector.broadcast %242 : vector<1x50xf32> to vector<33x50xf32>
    %244 = arith.addf %241, %243 : vector<33x50xf32>
    %cst_219 = arith.constant 0.000000e+00 : f32
    %245 = vector.broadcast %cst_219 : f32 to vector<33x50xf32>
    %246 = arith.cmpf ogt, %244, %245 : vector<33x50xf32>
    %cst_220 = arith.constant 0.000000e+00 : f32
    %247 = vector.broadcast %cst_220 : f32 to vector<33x50xf32>
    %248 = arith.minimumf %244, %247 : vector<33x50xf32>
    %249 = math.exp %248 : vector<33x50xf32>
    %cst_221 = arith.constant 1.000000e+00 : f32
    %250 = vector.broadcast %cst_221 : f32 to vector<33x50xf32>
    %251 = arith.subf %249, %250 : vector<33x50xf32>
    %252 = arith.select %246, %244, %251 : vector<33x50xi1>, vector<33x50xf32>
    %253 = vector.extract_strided_slice %252 {offsets = [0, 0], sizes = [18, 50], strides = [1, 1]} : vector<33x50xf32> to vector<18x50xf32>
    %254 = vector.extract_strided_slice %252 {offsets = [7, 0], sizes = [18, 50], strides = [1, 1]} : vector<33x50xf32> to vector<18x50xf32>
    %255 = arith.maximumf %253, %254 : vector<18x50xf32>
    %c0_222 = arith.constant 0 : index
    %c0_223 = arith.constant 0 : index
    %256 = vector.load %arg13[%c0_222, %c0_223] : memref<18x50xf32, #tpu.memory_space<vmem>>, vector<18x50xf32>
    tpu.vector_store %arg13[%c0_222, %c0_223], %255 {strides = array<i32>} : memref<18x50xf32, #tpu.memory_space<vmem>>, vector<18x50xf32>,
    %c0_224 = arith.constant 0 : index
    %c0_225 = arith.constant 0 : index
    %257 = tpu.strided_load %arg13[%c0_224, %c0_225] {strides = array<i32: 2, 1>} : memref<18x50xf32, #tpu.memory_space<vmem>>, vector<2x50xf32>
    %c1_226 = arith.constant 1 : index
    %c0_227 = arith.constant 0 : index
    %258 = tpu.strided_load %arg13[%c1_226, %c0_227] {strides = array<i32: 2, 1>} : memref<18x50xf32, #tpu.memory_space<vmem>>, vector<2x50xf32>
    %259 = arith.maximumf %257, %258 : vector<2x50xf32>
    %260 = vector.extract_strided_slice %259 {offsets = [0, 0], sizes = [1, 50], strides = [1, 1]} : vector<2x50xf32> to vector<1x50xf32>
    %261 = vector.extract_strided_slice %259 {offsets = [1, 0], sizes = [1, 50], strides = [1, 1]} : vector<2x50xf32> to vector<1x50xf32>
    %c14_228 = arith.constant 14 : index
    %c0_229 = arith.constant 0 : index
    %262 = tpu.strided_load %arg13[%c14_228, %c0_229] {strides = array<i32: 2, 1>} : memref<18x50xf32, #tpu.memory_space<vmem>>, vector<2x50xf32>
    %c15_230 = arith.constant 15 : index
    %c0_231 = arith.constant 0 : index
    %263 = tpu.strided_load %arg13[%c15_230, %c0_231] {strides = array<i32: 2, 1>} : memref<18x50xf32, #tpu.memory_space<vmem>>, vector<2x50xf32>
    %264 = arith.maximumf %262, %263 : vector<2x50xf32>
    %265 = vector.extract_strided_slice %264 {offsets = [0, 0], sizes = [1, 50], strides = [1, 1]} : vector<2x50xf32> to vector<1x50xf32>
    %266 = vector.extract_strided_slice %264 {offsets = [1, 0], sizes = [1, 50], strides = [1, 1]} : vector<2x50xf32> to vector<1x50xf32>
    %267 = tpu.concatenate %260, %261, %265, %266 in 1 : vector<1x50xf32>, vector<1x50xf32>, vector<1x50xf32>, vector<1x50xf32> -> vector<1x200xf32>
    %268 = tpu.concatenate %133, %267 in 0 : vector<1x200xf32>, vector<1x200xf32> -> vector<2x200xf32>
    %c0_232 = arith.constant 0 : index
    %c0_233 = arith.constant 0 : index
    %269 = vector.load %arg6[%c0_232, %c0_233] : memref<200x50xf32, #tpu.memory_space<vmem>>, vector<200x50xf32>
    %cst_234 = arith.constant dense<0.000000e+00> : vector<2x50xf32>
    %270 = tpu.matmul %268, %269, %cst_234 {dimension_numbers = #tpu.dot_dimension_numbers<[1], [0], [0], [1], [0, 0, 1, 1], [], []>} : vector<2x200xf32>, vector<200x50xf32>, vector<2x50xf32> -> vector<2x50xf32>
    %c0_235 = arith.constant 0 : index
    %c0_236 = arith.constant 0 : index
    %271 = vector.load %arg7[%c0_235, %c0_236] : memref<1x50xf32, #tpu.memory_space<vmem>>, vector<1x50xf32>
    %272 = vector.broadcast %271 : vector<1x50xf32> to vector<2x50xf32>
    %273 = arith.addf %270, %272 : vector<2x50xf32>
    %cst_237 = arith.constant 0.000000e+00 : f32
    %274 = vector.broadcast %cst_237 : f32 to vector<2x50xf32>
    %275 = arith.subf %274, %273 : vector<2x50xf32>
    %276 = math.exp %275 : vector<2x50xf32>
    %cst_238 = arith.constant 1.000000e+00 : f32
    %277 = vector.broadcast %cst_238 : f32 to vector<2x50xf32>
    %278 = arith.addf %277, %276 : vector<2x50xf32>
    %cst_239 = arith.constant 1.000000e+00 : f32
    %279 = vector.broadcast %cst_239 : f32 to vector<2x50xf32>
    %280 = arith.divf %279, %278 : vector<2x50xf32>
    %c0_240 = arith.constant 0 : index
    %c0_241 = arith.constant 0 : index
    %281 = vector.load %arg8[%c0_240, %c0_241] : memref<50x2xf32, #tpu.memory_space<vmem>>, vector<50x2xf32>
    %cst_242 = arith.constant dense<0.000000e+00> : vector<2x2xf32>
    %282 = tpu.matmul %280, %281, %cst_242 {dimension_numbers = #tpu.dot_dimension_numbers<[1], [0], [0], [1], [0, 0, 1, 1], [], []>} : vector<2x50xf32>, vector<50x2xf32>, vector<2x2xf32> -> vector<2x2xf32>
    %c0_243 = arith.constant 0 : index
    %c0_244 = arith.constant 0 : index
    %283 = vector.load %arg9[%c0_243, %c0_244] : memref<1x2xf32, #tpu.memory_space<vmem>>, vector<1x2xf32>
    %284 = vector.broadcast %283 : vector<1x2xf32> to vector<2x2xf32>
    %285 = arith.addf %282, %284 : vector<2x2xf32>
    %cst_245 = arith.constant dense<0xFF800000> : vector<2xf32>
    %286 = vector.multi_reduction <maximumf>, %285, %cst_245 [1] : vector<2x2xf32> to vector<2xf32>
    %287 = vector.shape_cast %286 : vector<2xf32> to vector<2x1xf32>
    %288 = vector.broadcast %287 : vector<2x1xf32> to vector<2x2xf32>
    %289 = arith.subf %285, %288 : vector<2x2xf32>
    %290 = math.exp %289 : vector<2x2xf32>
    %cst_246 = arith.constant dense<0.000000e+00> : vector<2xf32>
    %291 = vector.multi_reduction <add>, %290, %cst_246 [1] : vector<2x2xf32> to vector<2xf32>
    %292 = vector.shape_cast %291 : vector<2xf32> to vector<2x1xf32>
    %293 = math.log %292 : vector<2x1xf32>
    %294 = vector.broadcast %293 : vector<2x1xf32> to vector<2x2xf32>
    %295 = arith.subf %289, %294 : vector<2x2xf32>
    %c0_247 = arith.constant 0 : index
    %c0_248 = arith.constant 0 : index
    %c0_249 = arith.constant 0 : index
    %296 = vector.load %arg10[%c0_247, %c0_248, %c0_249] : memref<1x2x2xf32, #tpu.memory_space<vmem>>, vector<1x2x2xf32>
    %297 = vector.shape_cast %296 : vector<1x2x2xf32> to vector<2x2xf32>
    %298 = vector.shape_cast %295 : vector<2x2xf32> to vector<1x2x2xf32>
    tpu.vector_store %arg10[%c0_247, %c0_248, %c0_249], %298 {strides = array<i32>} : memref<1x2x2xf32, #tpu.memory_space<vmem>>, vector<1x2x2xf32>,
    return
  }
  func.func @transform_0(%arg0: i32) -> (i32, i32) {
    %c0_i32 = arith.constant 0 : i32
    %c0_i32_0 = arith.constant 0 : i32
    return %arg0, %c0_i32 : i32, i32
  }
  func.func @transform_1(%arg0: i32) -> (i32, i32) {
    %c0_i32 = arith.constant 0 : i32
    %c0_i32_0 = arith.constant 0 : i32
    %c0_i32_1 = arith.constant 0 : i32
    return %c0_i32, %c0_i32_0 : i32, i32
  }
  func.func @transform_2(%arg0: i32) -> (i32, i32) {
    %c0_i32 = arith.constant 0 : i32
    %c0_i32_0 = arith.constant 0 : i32
    %c0_i32_1 = arith.constant 0 : i32
    return %c0_i32, %c0_i32_0 : i32, i32
  }
  func.func @transform_3(%arg0: i32) -> (i32, i32) {
    %c0_i32 = arith.constant 0 : i32
    %c0_i32_0 = arith.constant 0 : i32
    %c0_i32_1 = arith.constant 0 : i32
    return %c0_i32, %c0_i32_0 : i32, i32
  }
  func.func @transform_4(%arg0: i32) -> (i32, i32) {
    %c0_i32 = arith.constant 0 : i32
    %c0_i32_0 = arith.constant 0 : i32
    %c0_i32_1 = arith.constant 0 : i32
    return %c0_i32, %c0_i32_0 : i32, i32
  }
  func.func @transform_5(%arg0: i32) -> (i32, i32) {
    %c0_i32 = arith.constant 0 : i32
    %c0_i32_0 = arith.constant 0 : i32
    %c0_i32_1 = arith.constant 0 : i32
    return %c0_i32, %c0_i32_0 : i32, i32
  }
  func.func @transform_6(%arg0: i32) -> (i32, i32) {
    %c0_i32 = arith.constant 0 : i32
    %c0_i32_0 = arith.constant 0 : i32
    %c0_i32_1 = arith.constant 0 : i32
    return %c0_i32, %c0_i32_0 : i32, i32
  }
  func.func @transform_7(%arg0: i32) -> (i32, i32) {
    %c0_i32 = arith.constant 0 : i32
    %c0_i32_0 = arith.constant 0 : i32
    %c0_i32_1 = arith.constant 0 : i32
    return %c0_i32, %c0_i32_0 : i32, i32
  }
  func.func @transform_8(%arg0: i32) -> (i32, i32) {
    %c0_i32 = arith.constant 0 : i32
    %c0_i32_0 = arith.constant 0 : i32
    %c0_i32_1 = arith.constant 0 : i32
    return %c0_i32, %c0_i32_0 : i32, i32
  }
  func.func @transform_9(%arg0: i32) -> (i32, i32, i32) {
    %c0_i32 = arith.constant 0 : i32
    %c0_i32_0 = arith.constant 0 : i32
    %c0_i32_1 = arith.constant 0 : i32
    return %arg0, %c0_i32, %c0_i32_0 : i32, i32, i32
  }
}

</mosaic_0001>

<bundles_post_ra>
// kernel: network_forward.1
= control target key start
LH: loop header
LB: loop body
LE: loop exit
PB: predicated region body
PF: predicated region fallthrough
CT: control target
= control target key end

     0   :  { %vm176_vm0 = vcmask 1043456   ;;  %vm91_vm1 = vcmask 31744   ;;  %s15893_s0 = inlined_call_operand.vmem [shape: f32[512,4], index: 0, kind: input, shape index: {}]   ;;  %s15894_s1 = inlined_call_operand.vmem [shape: f32[36,20], index: 1, kind: input, shape index: {}]   ;;  %s15895_s2 = inlined_call_operand.vmem [shape: f32[1,20], index: 2, kind: input, shape index: {}]   ;;  %s15896_s3 = inlined_call_operand.vmem [shape: f32[180,50], index: 3, kind: input, shape index: {}]   ;;  %s15897_s4 = inlined_call_operand.vmem [shape: f32[1,50], index: 4, kind: input, shape index: {}]   ;;  %s15898_s5 = inlined_call_operand.vmem [shape: f32[200,50], index: 5, kind: input, shape index: {}]   ;;  %s15899_s6 = inlined_call_operand.vmem [shape: f32[1,50], index: 6, kind: input, shape index: {}]   ;;  %s15900_s7 = inlined_call_operand.vmem [shape: f32[50,2], index: 7, kind: input, shape index: {}]   ;;  %s15901_s8 = inlined_call_operand.vmem [shape: f32[1,2], index: 8, kind: input, shape index: {}]   ;;  %s15902_s9 = inlined_call_operand.hbm [shape: f32[1,2,2], index: 9, kind: output, shape index: {}]  }
   0x1   :  { %v90_v0 = vld [vmem:[%s15894_s1 + $0x4] sm:$0xf]  ;;  %v63_v2 = vld [vmem:[%s15893_s0 + $0x9] sm:$0xff]  ;;  %v61_v3 = vld [vmem:[%s15894_s1] sm:$0xf] }
   0x2   :  { %v62_v1 = vld [vmem:[%s15893_s0 + $0x1] sm:$0xff]  ;;  %10743 = vmatprep.subr.msk.mxu0 %vm176_vm0, %v90_v0  ;;  %v12723_v4 = vld [vmem:[%s15893_s0 + $0x11] sm:$0xff]  ;;  %v12734_v5 = vld [vmem:[%s15893_s0 + $0x19] sm:$0xff] }
   0x3   :  { %10745 = vmatprep.mubr.msk.f32.mxu0 %vm91_vm1, %v62_v1  ;;  %10744 = vmatpush3.msk.msra.mxu0 %vm176_vm0, %v90_v0  ;;  %v12739_v6 = vld [vmem:[%s15893_s0 + $0x21] sm:$0xff]  ;;  %v12748_v7 = vld [vmem:[%s15893_s0 + $0x29] sm:$0xff]  ;;  %v12753_v8 = vld [vmem:[%s15893_s0 + $0x31] sm:$0xff] }
   0x4   :  { %10746 = vmatmul.mubr.msk.f32.vlgmr.msra.gmra.mrb[0].mxu0 %vm91_vm1, %v63_v2  ;;  %10787 = vmatprep.subr.msk.mxu0 %vm176_vm0, %v61_v3  ;;  %v705_v9 = vld [vmem:[%s15894_s1 + $0x8] sm:$0xf]  ;;  %v12766_v10 = vld [vmem:[%s15893_s0 + $0x39] sm:$0xff]  ;;  %v12785_v13 = vld [vmem:[%s15893_s0 + $0x51] sm:$0xff] }
   0x5   :  { %10788 = vmatpush3.msk.msra.mxu0 %vm176_vm0, %v61_v3  ;;  %10748 = vmatprep.mubr.msk.f32.mxu0 %vm91_vm1, %v12723_v4  ;;  %v12771_v11 = vld [vmem:[%s15893_s0 + $0x41] sm:$0xff]  ;;  %v12780_v12 = vld [vmem:[%s15893_s0 + $0x49] sm:$0xff]  ;;  %v12794_v14 = vld [vmem:[%s15893_s0 + $0x59] sm:$0xff] }
   0x6   :  { %10831 = vmatprep.subr.msk.mxu0 %vm176_vm0, %v705_v9  ;;  %v12799_v15 = vld [vmem:[%s15893_s0 + $0x61] sm:$0xff]  ;;  %v12808_v16 = vld [vmem:[%s15893_s0 + $0x69] sm:$0xff]  ;;  %v12813_v17 = vld [vmem:[%s15893_s0 + $0x71] sm:$0xff] }
   0x8   :  { %10749 = vmatmul.mubr.msk.f32.gmra.mrb[2].mxu0 %vm91_vm1, %v12734_v5 }
   0x9   :  { %10751 = vmatprep.mubr.msk.f32.mxu0 %vm91_vm1, %v12739_v6 }
   0xc   :  { %10752 = vmatmul.mubr.msk.f32.gmra.mrb[4].mxu0 %vm91_vm1, %v12748_v7 }
   0xd   :  { %10754 = vmatprep.mubr.msk.f32.mxu0 %vm91_vm1, %v12753_v8 }
  0x10   :  { %10755 = vmatmul.mubr.msk.f32.gmra.mrb[6].mxu0 %vm91_vm1, %v12766_v10 }
  0x11   :  { %10757 = vmatprep.mubr.msk.f32.mxu0 %vm91_vm1, %v12771_v11 }
  0x14   :  { %10758 = vmatmul.mubr.msk.f32.gmra.mrb[8].mxu0 %vm91_vm1, %v12780_v12 }
  0x15   :  { %10760 = vmatprep.mubr.msk.f32.mxu0 %vm91_vm1, %v12785_v13 }
  0x18   :  { %10761 = vmatmul.mubr.msk.f32.gmra.mrb[10].mxu0 %vm91_vm1, %v12794_v14 }
  0x19   :  { %10763 = vmatprep.mubr.msk.f32.mxu0 %vm91_vm1, %v12799_v15 }
  0x1c   :  { %10764 = vmatmul.mubr.msk.f32.gmra.mrb[12].mxu0 %vm91_vm1, %v12808_v16 }
  0x1d   :  { %14 = vsyncpa [#allocation6], 0  ;;  %10766 = vmatprep.mubr.msk.f32.mxu0 %vm91_vm1, %v12813_v17  ;;  %v12822_v18 = vld [vmem:[%s15893_s0 + $0x79] sm:$0xff]  ;;  %v12827_v19 = vld [vmem:[%s15893_s0 + $0x81] sm:$0xff]  ;;  %vm12651_vm2 = vmmov 0   ;;  %vm3349_vm3 = vcmask 162816  }
  0x1e   :  { %v12836_v20 = vld [vmem:[%s15893_s0 + $0x89] sm:$0xff]  ;;  %v12841_v21 = vld [vmem:[%s15893_s0 + $0x91] sm:$0xff]  ;;  %v12850_v22 = vld [vmem:[%s15893_s0 + $0x99] sm:$0xff]  ;;  %s12653_s14 = smov 100   ;;  %s12654_s15 = smov 22  }
  0x1f   :  { %v12855_v23 = vld [vmem:[%s15893_s0 + $0xa1] sm:$0xff]  ;;  %v12864_v24 = vld [vmem:[%s15893_s0 + $0xa9] sm:$0xff]  ;;  %v12869_v25 = vld [vmem:[%s15893_s0 + $0xb1] sm:$0xff] }
  0x20   :  { %10767 = vmatmul.mubr.msk.f32.gmra.mrb[14].mxu0 %vm91_vm1, %v12822_v18  ;;  %v12878_v26 = vld [vmem:[%s15893_s0 + $0xb9] sm:$0xff]  ;;  %v12883_v27 = vld [vmem:[%s15893_s0 + $0xc1] sm:$0xff]  ;;  %v12892_v28 = vld [vmem:[%s15893_s0 + $0xc9] sm:$0xff] }
  0x21   :  { %10769 = vmatprep.mubr.msk.f32.mxu0 %vm91_vm1, %v12827_v19  ;;  %v12897_v29 = vld [vmem:[%s15893_s0 + $0xd1] sm:$0xff]  ;;  %v89_v30 = vld [vmem:[%s15893_s0 + $0xd9] sm:$0x3f]  ;;  %v33_v31 = vld [vmem:[%s15893_s0] sm:$0xff] }
  0x22   :  { %v34_v32 = vld [vmem:[%s15893_s0 + $0x8] sm:$0xff]  ;;  %v12917_v33 = vld [vmem:[%s15893_s0 + $0x10] sm:$0xff]  ;;  %v12929_v35 = vld [vmem:[%s15893_s0 + $0x18] sm:$0xff] }
  0x23   :  { %v1054_v34 = vld [vmem:[%s15894_s1 + $0xc] sm:$0xf]  ;;  %v12934_v36 = vld [vmem:[%s15893_s0 + $0x20] sm:$0xff]  ;;  %v12949_v38 = vld [vmem:[%s15893_s0 + $0x30] sm:$0xff] }
  0x24   :  { %10770 = vmatmul.mubr.msk.f32.gmra.mrb[16].mxu0 %vm91_vm1, %v12836_v20  ;;  %v12944_v37 = vld [vmem:[%s15893_s0 + $0x28] sm:$0xff]  ;;  %v12958_v39 = vld [vmem:[%s15893_s0 + $0x38] sm:$0xff]  ;;  %v12963_v40 = vld [vmem:[%s15893_s0 + $0x40] sm:$0xff] }
  0x25   :  { %10772 = vmatprep.mubr.msk.f32.mxu0 %vm91_vm1, %v12841_v21  ;;  %v12972_v41 = vld [vmem:[%s15893_s0 + $0x48] sm:$0xff]  ;;  %v12977_v42 = vld [vmem:[%s15893_s0 + $0x50] sm:$0xff]  ;;  %v12986_v43 = vld [vmem:[%s15893_s0 + $0x58] sm:$0xff] }
  0x26   :  { %v12991_v44 = vld [vmem:[%s15893_s0 + $0x60] sm:$0xff]  ;;  %v13000_v45 = vld [vmem:[%s15893_s0 + $0x68] sm:$0xff]  ;;  %v13005_v46 = vld [vmem:[%s15893_s0 + $0x70] sm:$0xff] }
  0x27   :  { %v13014_v47 = vld [vmem:[%s15893_s0 + $0x78] sm:$0xff]  ;;  %v13019_v48 = vld [vmem:[%s15893_s0 + $0x80] sm:$0xff]  ;;  %v13028_v49 = vld [vmem:[%s15893_s0 + $0x88] sm:$0xff] }
  0x28   :  { %10773 = vmatmul.mubr.msk.f32.gmra.mrb[18].mxu0 %vm91_vm1, %v12850_v22  ;;  %v13033_v50 = vld [vmem:[%s15893_s0 + $0x90] sm:$0xff]  ;;  %v13042_v51 = vld [vmem:[%s15893_s0 + $0x98] sm:$0xff]  ;;  %v13047_v52 = vld [vmem:[%s15893_s0 + $0xa0] sm:$0xff] }
  0x29   :  { %10775 = vmatprep.mubr.msk.f32.mxu0 %vm91_vm1, %v12855_v23  ;;  %v13056_v53 = vld [vmem:[%s15893_s0 + $0xa8] sm:$0xff]  ;;  %v13061_v54 = vld [vmem:[%s15893_s0 + $0xb0] sm:$0xff]  ;;  %v13070_v55 = vld [vmem:[%s15893_s0 + $0xb8] sm:$0xff] }
  0x2a   :  { %v13075_v56 = vld [vmem:[%s15893_s0 + $0xc0] sm:$0xff]  ;;  %v13084_v57 = vld [vmem:[%s15893_s0 + $0xc8] sm:$0xff]  ;;  %v13089_v58 = vld [vmem:[%s15893_s0 + $0xd0] sm:$0xff] }
  0x2b   :  { %v60_v59 = vld [vmem:[%s15893_s0 + $0xd8] sm:$0x3f]  ;;  %v677_v60 = vld [vmem:[%s15893_s0 + $0x2] sm:$0xff]  ;;  %v678_v61 = vld [vmem:[%s15893_s0 + $0xa] sm:$0xff] }
  0x2c   :  { %10776 = vmatmul.mubr.msk.f32.gmra.mrb[20].mxu0 %vm91_vm1, %v12864_v24  ;;  %v13109_v62 = vld [vmem:[%s15893_s0 + $0x12] sm:$0xff]  ;;  %v13121_v0 = vld [vmem:[%s15893_s0 + $0x1a] sm:$0xff]  ;;  %v13126_v1 = vld [vmem:[%s15893_s0 + $0x22] sm:$0xff] }
  0x2d   :  { %10778 = vmatprep.mubr.msk.f32.mxu0 %vm91_vm1, %v12869_v25  ;;  %v1403_v63 = vld [vmem:[%s15894_s1 + $0x10] sm:$0xf] }
  0x2e   :  { %v13136_v2 = vld [vmem:[%s15893_s0 + $0x2a] sm:$0xff]  ;;  %v13141_v3 = vld [vmem:[%s15893_s0 + $0x32] sm:$0xff] }
  0x30   :  { %10779 = vmatmul.mubr.msk.f32.gmra.mrb[22].mxu0 %vm91_vm1, %v12878_v26 }
  0x31   :  { %10781 = vmatprep.mubr.msk.f32.mxu0 %vm91_vm1, %v12883_v27 }
  0x34   :  { %10782 = vmatmul.mubr.msk.f32.gmra.mrb[24].mxu0 %vm91_vm1, %v12892_v28 }
  0x35   :  { %10784 = vmatprep.mubr.msk.f32.mxu0 %vm91_vm1, %v12897_v29 }
  0x38   :  { %10785 = vmatmul.mubr.msk.f32.gmra.mrb[26].mxu0 %vm91_vm1, %v89_v30  ;;  %v13155_v30 = vld [vmem:[%s15893_s0 + $0x42] sm:$0xff] }
  0x39   :  { %10789 = vmatprep.mubr.msk.f32.mxu0 %vm91_vm1, %v33_v31  ;;  %15992 = vst [vmem:[#allocation9_spill] sm:$0xff] %v13155_v30  ;;  %v13164_v31 = vld [vmem:[%s15893_s0 + $0x4a] sm:$0xff] }
  0x3a   :  { %15993 = vst [vmem:[#allocation10_spill] sm:$0xff] %v13164_v31 }
  0x3c   :  { %10790 = vmatmul.mubr.msk.f32.vlgmr.msra.gmra.mrb[0].mxu0 %vm91_vm1, %v34_v32  ;;  %v13169_v32 = vld [vmem:[%s15893_s0 + $0x52] sm:$0xff] }
  0x3d   :  { %10832 = vmatpush3.msk.msra.mxu0 %vm176_vm0, %v705_v9  ;;  %10792 = vmatprep.mubr.msk.f32.mxu0 %vm91_vm1, %v12917_v33  ;;  %v13150_v9 = vld [vmem:[%s15893_s0 + $0x3a] sm:$0xff]  ;;  %15994 = vst [vmem:[#allocation11_spill] sm:$0xff] %v13169_v32 }
  0x3e   :  { %10875 = vmatprep.subr.msk.mxu0 %vm176_vm0, %v1054_v34  ;;  %15991 = vst [vmem:[#allocation8_spill] sm:$0xff] %v13150_v9 }
  0x40   :  { %10793 = vmatmul.mubr.msk.f32.gmra.mrb[2].mxu0 %vm91_vm1, %v12929_v35 }
  0x41   :  { %10795 = vmatprep.mubr.msk.f32.mxu0 %vm91_vm1, %v12934_v36 }
  0x44   :  { %10796 = vmatmul.mubr.msk.f32.gmra.mrb[4].mxu0 %vm91_vm1, %v12944_v37 }
  0x45   :  { %10798 = vmatprep.mubr.msk.f32.mxu0 %vm91_vm1, %v12949_v38 }
  0x48   :  { %10799 = vmatmul.mubr.msk.f32.gmra.mrb[6].mxu0 %vm91_vm1, %v12958_v39 }
  0x49   :  { %10801 = vmatprep.mubr.msk.f32.mxu0 %vm91_vm1, %v12963_v40 }
  0x4c   :  { %10802 = vmatmul.mubr.msk.f32.gmra.mrb[8].mxu0 %vm91_vm1, %v12972_v41 }
  0x4d   :  { %10804 = vmatprep.mubr.msk.f32.mxu0 %vm91_vm1, %v12977_v42 }
  0x50   :  { %10805 = vmatmul.mubr.msk.f32.gmra.mrb[10].mxu0 %vm91_vm1, %v12986_v43 }
  0x51   :  { %10807 = vmatprep.mubr.msk.f32.mxu0 %vm91_vm1, %v12991_v44 }
  0x54   :  { %10808 = vmatmul.mubr.msk.f32.gmra.mrb[12].mxu0 %vm91_vm1, %v13000_v45 }
  0x55   :  { %10810 = vmatprep.mubr.msk.f32.mxu0 %vm91_vm1, %v13005_v46 }
  0x58   :  { %10811 = vmatmul.mubr.msk.f32.gmra.mrb[14].mxu0 %vm91_vm1, %v13014_v47 }
  0x59   :  { %10813 = vmatprep.mubr.msk.f32.mxu0 %vm91_vm1, %v13019_v48 }
  0x5c   :  { %10814 = vmatmul.mubr.msk.f32.gmra.mrb[16].mxu0 %vm91_vm1, %v13028_v49 }
  0x5d   :  { %10816 = vmatprep.mubr.msk.f32.mxu0 %vm91_vm1, %v13033_v50 }
  0x60   :  { %10817 = vmatmul.mubr.msk.f32.gmra.mrb[18].mxu0 %vm91_vm1, %v13042_v51 }
  0x61   :  { %10819 = vmatprep.mubr.msk.f32.mxu0 %vm91_vm1, %v13047_v52 }
  0x64   :  { %10820 = vmatmul.mubr.msk.f32.gmra.mrb[20].mxu0 %vm91_vm1, %v13056_v53 }
  0x65   :  { %10822 = vmatprep.mubr.msk.f32.mxu0 %vm91_vm1, %v13061_v54 }
  0x68   :  { %10823 = vmatmul.mubr.msk.f32.gmra.mrb[22].mxu0 %vm91_vm1, %v13070_v55 }
  0x69   :  { %10825 = vmatprep.mubr.msk.f32.mxu0 %vm91_vm1, %v13075_v56 }
  0x6c   :  { %10826 = vmatmul.mubr.msk.f32.gmra.mrb[24].mxu0 %vm91_vm1, %v13084_v57 }
  0x6d   :  { %10828 = vmatprep.mubr.msk.f32.mxu0 %vm91_vm1, %v13089_v58 }
  0x70   :  { %10829 = vmatmul.mubr.msk.f32.gmra.mrb[26].mxu0 %vm91_vm1, %v60_v59  ;;  %v13183_v59 = vld [vmem:[%s15893_s0 + $0x62] sm:$0xff] }
  0x71   :  { %10833 = vmatprep.mubr.msk.f32.mxu0 %vm91_vm1, %v677_v60  ;;  %15996 = vst [vmem:[#allocation13_spill] sm:$0xff] %v13183_v59  ;;  %v13192_v60 = vld [vmem:[%s15893_s0 + $0x6a] sm:$0xff] }
  0x72   :  { %15997 = vst [vmem:[#allocation14_spill] sm:$0xff] %v13192_v60 }
  0x74   :  { %10834 = vmatmul.mubr.msk.f32.vlgmr.msra.gmra.mrb[0].mxu0 %vm91_vm1, %v678_v61  ;;  %v13197_v61 = vld [vmem:[%s15893_s0 + $0x72] sm:$0xff] }
  0x75   :  { %10876 = vmatpush3.msk.msra.mxu0 %vm176_vm0, %v1054_v34  ;;  %10836 = vmatprep.mubr.msk.f32.mxu0 %vm91_vm1, %v13109_v62  ;;  %v13178_v34 = vld [vmem:[%s15893_s0 + $0x5a] sm:$0xff]  ;;  %15998 = vst [vmem:[#allocation15_spill] sm:$0xff] %v13197_v61 }
  0x76   :  { %10919 = vmatprep.subr.msk.mxu0 %vm176_vm0, %v1403_v63  ;;  %15995 = vst [vmem:[#allocation12_spill] sm:$0xff] %v13178_v34 }
  0x78   :  { %10837 = vmatmul.mubr.msk.f32.gmra.mrb[2].mxu0 %vm91_vm1, %v13121_v0 }
  0x79   :  { %10839 = vmatprep.mubr.msk.f32.mxu0 %vm91_vm1, %v13126_v1 }
  0x7c   :  { %10840 = vmatmul.mubr.msk.f32.gmra.mrb[4].mxu0 %vm91_vm1, %v13136_v2 }
  0x7d   :  { %10842 = vmatprep.mubr.msk.f32.mxu0 %vm91_vm1, %v13141_v3 }
  0x80   :  { %10843 = vmatmul.mubr.msk.f32.gmra.mrb[6].mxu0 %vm91_vm1, %v13150_v9 }
  0x81   :  { %10845 = vmatprep.mubr.msk.f32.mxu0 %vm91_vm1, %v13155_v30 }
  0x84   :  { %10846 = vmatmul.mubr.msk.f32.gmra.mrb[8].mxu0 %vm91_vm1, %v13164_v31 }
  0x85   :  { %10848 = vmatprep.mubr.msk.f32.mxu0 %vm91_vm1, %v13169_v32 }
  0x88   :  { %10849 = vmatmul.mubr.msk.f32.gmra.mrb[10].mxu0 %vm91_vm1, %v13178_v34  ;;  %v13211_v34 = vld [vmem:[%s15893_s0 + $0x82] sm:$0xff] }
  0x89   :  { %10851 = vmatprep.mubr.msk.f32.mxu0 %vm91_vm1, %v13183_v59  ;;  %v13206_v59 = vld [vmem:[%s15893_s0 + $0x7a] sm:$0xff]  ;;  %16000 = vst [vmem:[#allocation17_spill] sm:$0xff] %v13211_v34 }
  0x8a   :  { %15999 = vst [vmem:[#allocation16_spill] sm:$0xff] %v13206_v59 }
  0x8c   :  { %10852 = vmatmul.mubr.msk.f32.gmra.mrb[12].mxu0 %vm91_vm1, %v13192_v60  ;;  %v13225_v60 = vld [vmem:[%s15893_s0 + $0x92] sm:$0xff] }
  0x8d   :  { %10854 = vmatprep.mubr.msk.f32.mxu0 %vm91_vm1, %v13197_v61  ;;  %v13220_v61 = vld [vmem:[%s15893_s0 + $0x8a] sm:$0xff]  ;;  %16002 = vst [vmem:[#allocation19_spill] sm:$0xff] %v13225_v60 }
  0x8e   :  { %16001 = vst [vmem:[#allocation18_spill] sm:$0xff] %v13220_v61 }
  0x90   :  { %10855 = vmatmul.mubr.msk.f32.gmra.mrb[14].mxu0 %vm91_vm1, %v13206_v59  ;;  %v13239_v59 = vld [vmem:[%s15893_s0 + $0xa2] sm:$0xff] }
  0x91   :  { %10857 = vmatprep.mubr.msk.f32.mxu0 %vm91_vm1, %v13211_v34  ;;  %v13234_v34 = vld [vmem:[%s15893_s0 + $0x9a] sm:$0xff]  ;;  %16004 = vst [vmem:[#allocation21_spill] sm:$0xff] %v13239_v59 }
  0x92   :  { %16003 = vst [vmem:[#allocation20_spill] sm:$0xff] %v13234_v34 }
  0x94   :  { %10858 = vmatmul.mubr.msk.f32.gmra.mrb[16].mxu0 %vm91_vm1, %v13220_v61  ;;  %v13253_v61 = vld [vmem:[%s15893_s0 + $0xb2] sm:$0xff] }
  0x95   :  { %10860 = vmatprep.mubr.msk.f32.mxu0 %vm91_vm1, %v13225_v60  ;;  %v13248_v60 = vld [vmem:[%s15893_s0 + $0xaa] sm:$0xff]  ;;  %16006 = vst [vmem:[#allocation23_spill] sm:$0xff] %v13253_v61 }
  0x96   :  { %16005 = vst [vmem:[#allocation22_spill] sm:$0xff] %v13248_v60 }
  0x98   :  { %10861 = vmatmul.mubr.msk.f32.gmra.mrb[18].mxu0 %vm91_vm1, %v13234_v34  ;;  %v13267_v34 = vld [vmem:[%s15893_s0 + $0xc2] sm:$0xff] }
  0x99   :  { %10863 = vmatprep.mubr.msk.f32.mxu0 %vm91_vm1, %v13239_v59  ;;  %v13262_v59 = vld [vmem:[%s15893_s0 + $0xba] sm:$0xff]  ;;  %16008 = vst [vmem:[#allocation25_spill] sm:$0xff] %v13267_v34 }
  0x9a   :  { %16007 = vst [vmem:[#allocation24_spill] sm:$0xff] %v13262_v59 }
  0x9c   :  { %10864 = vmatmul.mubr.msk.f32.gmra.mrb[20].mxu0 %vm91_vm1, %v13248_v60  ;;  %v13281_v60 = vld [vmem:[%s15893_s0 + $0xd2] sm:$0xff] }
  0x9d   :  { %10866 = vmatprep.mubr.msk.f32.mxu0 %vm91_vm1, %v13253_v61  ;;  %v13276_v61 = vld [vmem:[%s15893_s0 + $0xca] sm:$0xff]  ;;  %16010 = vst [vmem:[#allocation27_spill] sm:$0xff] %v13281_v60 }
  0x9e   :  { %16009 = vst [vmem:[#allocation26_spill] sm:$0xff] %v13276_v61 }
  0xa0   :  { %10867 = vmatmul.mubr.msk.f32.gmra.mrb[22].mxu0 %vm91_vm1, %v13262_v59  ;;  %v1752_v59 = vld [vmem:[%s15894_s1 + $0x14] sm:$0xf] }
  0xa1   :  { %10869 = vmatprep.mubr.msk.f32.mxu0 %vm91_vm1, %v13267_v34  ;;  %v704_v34 = vld [vmem:[%s15893_s0 + $0xda] sm:$0x3f] }
  0xa4   :  { %10870 = vmatmul.mubr.msk.f32.gmra.mrb[24].mxu0 %vm91_vm1, %v13276_v61 }
  0xa5   :  { %10872 = vmatprep.mubr.msk.f32.mxu0 %vm91_vm1, %v13281_v60 }
  0xa8   :  { %10873 = vmatmul.mubr.msk.f32.gmra.mrb[26].mxu0 %vm91_vm1, %v704_v34  ;;  %v2101_v34 = vld [vmem:[%s15894_s1 + $0x18] sm:$0xf] }
  0xa9   :  { %10877 = vmatprep.mubr.msk.f32.mxu0 %vm91_vm1, %v12917_v33  ;;  %v13349_v33 = vld [vmem:[%s15893_s0 + $0xd8] sm:$0xff] }
  0xac   :  { %10878 = vmatmul.mubr.msk.f32.vlgmr.msra.gmra.mrb[0].mxu0 %vm91_vm1, %v12929_v35  ;;  %v13354_v35 = vld [vmem:[%s15893_s0 + $0xe0] sm:$0xff] }
  0xad   :  { %10920 = vmatpush3.msk.msra.mxu0 %vm176_vm0, %v1403_v63  ;;  %10880 = vmatprep.mubr.msk.f32.mxu0 %vm91_vm1, %v12934_v36  ;;  %v1053_v63 = vld [vmem:[%s15893_s0 + $0xe8] sm:$0x3f] }
  0xae   :  { %10963 = vmatprep.subr.msk.mxu0 %vm176_vm0, %v1752_v59 }
  0xb0   :  { %10881 = vmatmul.mubr.msk.f32.gmra.mrb[2].mxu0 %vm91_vm1, %v12944_v37 }
  0xb1   :  { %10883 = vmatprep.mubr.msk.f32.mxu0 %vm91_vm1, %v12949_v38 }
  0xb4   :  { %10884 = vmatmul.mubr.msk.f32.gmra.mrb[4].mxu0 %vm91_vm1, %v12958_v39 }
  0xb5   :  { %10886 = vmatprep.mubr.msk.f32.mxu0 %vm91_vm1, %v12963_v40 }
  0xb8   :  { %10887 = vmatmul.mubr.msk.f32.gmra.mrb[6].mxu0 %vm91_vm1, %v12972_v41 }
  0xb9   :  { %10889 = vmatprep.mubr.msk.f32.mxu0 %vm91_vm1, %v12977_v42 }
  0xbc   :  { %10890 = vmatmul.mubr.msk.f32.gmra.mrb[8].mxu0 %vm91_vm1, %v12986_v43 }
  0xbd   :  { %10892 = vmatprep.mubr.msk.f32.mxu0 %vm91_vm1, %v12991_v44 }
  0xc0   :  { %10893 = vmatmul.mubr.msk.f32.gmra.mrb[10].mxu0 %vm91_vm1, %v13000_v45 }
  0xc1   :  { %10895 = vmatprep.mubr.msk.f32.mxu0 %vm91_vm1, %v13005_v46 }
  0xc4   :  { %10896 = vmatmul.mubr.msk.f32.gmra.mrb[12].mxu0 %vm91_vm1, %v13014_v47 }
  0xc5   :  { %10898 = vmatprep.mubr.msk.f32.mxu0 %vm91_vm1, %v13019_v48 }
  0xc8   :  { %10899 = vmatmul.mubr.msk.f32.gmra.mrb[14].mxu0 %vm91_vm1, %v13028_v49 }
  0xc9   :  { %10901 = vmatprep.mubr.msk.f32.mxu0 %vm91_vm1, %v13033_v50 }
  0xcc   :  { %10902 = vmatmul.mubr.msk.f32.gmra.mrb[16].mxu0 %vm91_vm1, %v13042_v51 }
  0xcd   :  { %10904 = vmatprep.mubr.msk.f32.mxu0 %vm91_vm1, %v13047_v52 }
  0xd0   :  { %10905 = vmatmul.mubr.msk.f32.gmra.mrb[18].mxu0 %vm91_vm1, %v13056_v53 }
  0xd1   :  { %10907 = vmatprep.mubr.msk.f32.mxu0 %vm91_vm1, %v13061_v54 }
  0xd4   :  { %10908 = vmatmul.mubr.msk.f32.gmra.mrb[20].mxu0 %vm91_vm1, %v13070_v55 }
  0xd5   :  { %10910 = vmatprep.mubr.msk.f32.mxu0 %vm91_vm1, %v13075_v56 }
  0xd8   :  { %10911 = vmatmul.mubr.msk.f32.gmra.mrb[22].mxu0 %vm91_vm1, %v13084_v57 }
  0xd9   :  { %10913 = vmatprep.mubr.msk.f32.mxu0 %vm91_vm1, %v13089_v58 }
  0xdc   :  { %10914 = vmatmul.mubr.msk.f32.gmra.mrb[24].mxu0 %vm91_vm1, %v13349_v33 }
  0xdd   :  { %10916 = vmatprep.mubr.msk.f32.mxu0 %vm91_vm1, %v13354_v35 }
  0xe0   :  { %10917 = vmatmul.mubr.msk.f32.gmra.mrb[26].mxu0 %vm91_vm1, %v1053_v63  ;;  %v2450_v63 = vld [vmem:[%s15894_s1 + $0x1c] sm:$0xf] }
  0xe1   :  { %10921 = vmatprep.mubr.msk.f32.mxu0 %vm91_vm1, %v12723_v4  ;;  %v13422_v4 = vld [vmem:[%s15893_s0 + $0xd9] sm:$0xff] }
  0xe4   :  { %10922 = vmatmul.mubr.msk.f32.vlgmr.msra.gmra.mrb[0].mxu0 %vm91_vm1, %v12734_v5  ;;  %v13427_v5 = vld [vmem:[%s15893_s0 + $0xe1] sm:$0xff] }
  0xe5   :  { %10964 = vmatpush3.msk.msra.mxu0 %vm176_vm0, %v1752_v59  ;;  %10924 = vmatprep.mubr.msk.f32.mxu0 %vm91_vm1, %v12739_v6  ;;  %v1402_v59 = vld [vmem:[%s15893_s0 + $0xe9] sm:$0x3f] }
  0xe6   :  { %11007 = vmatprep.subr.msk.mxu0 %vm176_vm0, %v2101_v34 }
  0xe8   :  { %10925 = vmatmul.mubr.msk.f32.gmra.mrb[2].mxu0 %vm91_vm1, %v12748_v7 }
  0xe9   :  { %10927 = vmatprep.mubr.msk.f32.mxu0 %vm91_vm1, %v12753_v8 }
  0xec   :  { %10928 = vmatmul.mubr.msk.f32.gmra.mrb[4].mxu0 %vm91_vm1, %v12766_v10 }
  0xed   :  { %10930 = vmatprep.mubr.msk.f32.mxu0 %vm91_vm1, %v12771_v11 }
  0xf0   :  { %10931 = vmatmul.mubr.msk.f32.gmra.mrb[6].mxu0 %vm91_vm1, %v12780_v12 }
  0xf1   :  { %10933 = vmatprep.mubr.msk.f32.mxu0 %vm91_vm1, %v12785_v13 }
  0xf4   :  { %10934 = vmatmul.mubr.msk.f32.gmra.mrb[8].mxu0 %vm91_vm1, %v12794_v14 }
  0xf5   :  { %10936 = vmatprep.mubr.msk.f32.mxu0 %vm91_vm1, %v12799_v15 }
  0xf8   :  { %10937 = vmatmul.mubr.msk.f32.gmra.mrb[10].mxu0 %vm91_vm1, %v12808_v16 }
  0xf9   :  { %10939 = vmatprep.mubr.msk.f32.mxu0 %vm91_vm1, %v12813_v17 }
  0xfc   :  { %10940 = vmatmul.mubr.msk.f32.gmra.mrb[12].mxu0 %vm91_vm1, %v12822_v18 }
  0xfd   :  { %10942 = vmatprep.mubr.msk.f32.mxu0 %vm91_vm1, %v12827_v19 }
 0x100   :  { %10943 = vmatmul.mubr.msk.f32.gmra.mrb[14].mxu0 %vm91_vm1, %v12836_v20 }
 0x101   :  { %10945 = vmatprep.mubr.msk.f32.mxu0 %vm91_vm1, %v12841_v21 }
 0x104   :  { %10946 = vmatmul.mubr.msk.f32.gmra.mrb[16].mxu0 %vm91_vm1, %v12850_v22 }
 0x105   :  { %10948 = vmatprep.mubr.msk.f32.mxu0 %vm91_vm1, %v12855_v23 }
 0x108   :  { %10949 = vmatmul.mubr.msk.f32.gmra.mrb[18].mxu0 %vm91_vm1, %v12864_v24 }
 0x109   :  { %10951 = vmatprep.mubr.msk.f32.mxu0 %vm91_vm1, %v12869_v25 }
 0x10c   :  { %10952 = vmatmul.mubr.msk.f32.gmra.mrb[20].mxu0 %vm91_vm1, %v12878_v26 }
 0x10d   :  { %10954 = vmatprep.mubr.msk.f32.mxu0 %vm91_vm1, %v12883_v27 }
 0x110   :  { %10955 = vmatmul.mubr.msk.f32.gmra.mrb[22].mxu0 %vm91_vm1, %v12892_v28 }
 0x111   :  { %10957 = vmatprep.mubr.msk.f32.mxu0 %vm91_vm1, %v12897_v29 }
 0x114   :  { %10958 = vmatmul.mubr.msk.f32.gmra.mrb[24].mxu0 %vm91_vm1, %v13422_v4 }
 0x115   :  { %10960 = vmatprep.mubr.msk.f32.mxu0 %vm91_vm1, %v13427_v5 }
 0x118   :  { %10961 = vmatmul.mubr.msk.f32.gmra.mrb[26].mxu0 %vm91_vm1, %v1402_v59  ;;  %v16014_v59 = vld [vmem:[#allocation15_spill] sm:$0xff] }
 0x119   :  { %10965 = vmatprep.mubr.msk.f32.mxu0 %vm91_vm1, %v13109_v62  ;;  %v16011_v62 = vld [vmem:[#allocation12_spill] sm:$0xff] }
 0x11c   :  { %10966 = vmatmul.mubr.msk.f32.vlgmr.msra.gmra.mrb[0].mxu0 %vm91_vm1, %v13121_v0  ;;  %v16012_v0 = vld [vmem:[#allocation13_spill] sm:$0xff] }
 0x11d   :  { %11008 = vmatpush3.msk.msra.mxu0 %vm176_vm0, %v2101_v34  ;;  %10968 = vmatprep.mubr.msk.f32.mxu0 %vm91_vm1, %v13126_v1  ;;  %v16013_v34 = vld [vmem:[#allocation14_spill] sm:$0xff] }
 0x11e   :  { %11051 = vmatprep.subr.msk.mxu0 %vm176_vm0, %v2450_v63 }
 0x120   :  { %10969 = vmatmul.mubr.msk.f32.gmra.mrb[2].mxu0 %vm91_vm1, %v13136_v2 }
 0x121   :  { %10971 = vmatprep.mubr.msk.f32.mxu0 %vm91_vm1, %v13141_v3 }
 0x124   :  { %10972 = vmatmul.mubr.msk.f32.gmra.mrb[4].mxu0 %vm91_vm1, %v13150_v9  ;;  %v16015_v9 = vld [vmem:[#allocation16_spill] sm:$0xff] }
 0x125   :  { %10974 = vmatprep.mubr.msk.f32.mxu0 %vm91_vm1, %v13155_v30  ;;  %v16016_v30 = vld [vmem:[#allocation17_spill] sm:$0xff] }
 0x128   :  { %10975 = vmatmul.mubr.msk.f32.gmra.mrb[6].mxu0 %vm91_vm1, %v13164_v31  ;;  %v16017_v31 = vld [vmem:[#allocation18_spill] sm:$0xff] }
 0x129   :  { %10977 = vmatprep.mubr.msk.f32.mxu0 %vm91_vm1, %v13169_v32  ;;  %v16018_v32 = vld [vmem:[#allocation19_spill] sm:$0xff] }
 0x12c   :  { %10978 = vmatmul.mubr.msk.f32.gmra.mrb[8].mxu0 %vm91_vm1, %v16011_v62  ;;  %v16019_v62 = vld [vmem:[#allocation20_spill] sm:$0xff] }
 0x12d   :  { %10980 = vmatprep.mubr.msk.f32.mxu0 %vm91_vm1, %v16012_v0  ;;  %v16020_v0 = vld [vmem:[#allocation21_spill] sm:$0xff] }
 0x130   :  { %10981 = vmatmul.mubr.msk.f32.gmra.mrb[10].mxu0 %vm91_vm1, %v16013_v34  ;;  %v16021_v34 = vld [vmem:[#allocation22_spill] sm:$0xff] }
 0x131   :  { %10983 = vmatprep.mubr.msk.f32.mxu0 %vm91_vm1, %v16014_v59  ;;  %v16022_v59 = vld [vmem:[#allocation23_spill] sm:$0xff] }
 0x134   :  { %10984 = vmatmul.mubr.msk.f32.gmra.mrb[12].mxu0 %vm91_vm1, %v16015_v9  ;;  %v16023_v9 = vld [vmem:[#allocation24_spill] sm:$0xff] }
 0x135   :  { %10986 = vmatprep.mubr.msk.f32.mxu0 %vm91_vm1, %v16016_v30  ;;  %v16024_v30 = vld [vmem:[#allocation25_spill] sm:$0xff] }
 0x138   :  { %10987 = vmatmul.mubr.msk.f32.gmra.mrb[14].mxu0 %vm91_vm1, %v16017_v31 }
 0x139   :  { %10989 = vmatprep.mubr.msk.f32.mxu0 %vm91_vm1, %v16018_v32 }
 0x13c   :  { %10990 = vmatmul.mubr.msk.f32.gmra.mrb[16].mxu0 %vm91_vm1, %v16019_v62 }
 0x13d   :  { %10992 = vmatprep.mubr.msk.f32.mxu0 %vm91_vm1, %v16020_v0  ;;  %v13495_v0 = vld [vmem:[%s15893_s0 + $0xda] sm:$0xff] }
 0x140   :  { %10993 = vmatmul.mubr.msk.f32.gmra.mrb[18].mxu0 %vm91_vm1, %v16021_v34 }
 0x141   :  { %10995 = vmatprep.mubr.msk.f32.mxu0 %vm91_vm1, %v16022_v59  ;;  %v13500_v59 = vld [vmem:[%s15893_s0 + $0xe2] sm:$0xff] }
 0x144   :  { %10996 = vmatmul.mubr.msk.f32.gmra.mrb[20].mxu0 %vm91_vm1, %v16023_v9 }
 0x145   :  { %10998 = vmatprep.mubr.msk.f32.mxu0 %vm91_vm1, %v16024_v30 }
 0x148   :  { %10999 = vmatmul.mubr.msk.f32.gmra.mrb[22].mxu0 %vm91_vm1, %v13276_v61  ;;  %v2799_v61 = vld [vmem:[%s15894_s1 + $0x20] sm:$0xf] }
 0x149   :  { %11001 = vmatprep.mubr.msk.f32.mxu0 %vm91_vm1, %v13281_v60  ;;  %v1751_v60 = vld [vmem:[%s15893_s0 + $0xea] sm:$0x3f] }
 0x14c   :  { %11002 = vmatmul.mubr.msk.f32.gmra.mrb[24].mxu0 %vm91_vm1, %v13495_v0 }
 0x14d   :  { %11004 = vmatprep.mubr.msk.f32.mxu0 %vm91_vm1, %v13500_v59 }
 0x150   :  { %11005 = vmatmul.mubr.msk.f32.gmra.mrb[26].mxu0 %vm91_vm1, %v1751_v60 }
 0x151   :  { %11009 = vmatprep.mubr.msk.f32.mxu0 %vm91_vm1, %v12934_v36  ;;  %v2098_v36 = vld [vmem:[%s15893_s0 + $0xe8] sm:$0xff] }
 0x154   :  { %11010 = vmatmul.mubr.msk.f32.vlgmr.msra.gmra.mrb[0].mxu0 %vm91_vm1, %v12944_v37  ;;  %v2099_v37 = vld [vmem:[%s15893_s0 + $0xf0] sm:$0xff] }
 0x155   :  { %11052 = vmatpush3.msk.msra.mxu0 %vm176_vm0, %v2450_v63  ;;  %11012 = vmatprep.mubr.msk.f32.mxu0 %vm91_vm1, %v12949_v38  ;;  %v2100_v38 = vld [vmem:[%s15893_s0 + $0xf8] sm:$0x3f] }
 0x156   :  { %11095 = vmatprep.subr.msk.mxu0 %vm176_vm0, %v2799_v61 }
 0x158   :  { %11013 = vmatmul.mubr.msk.f32.gmra.mrb[2].mxu0 %vm91_vm1, %v12958_v39  ;;  %v15939_v39 = vmov 0.0|0.0  }
 0x159   :  { %11015 = vmatprep.mubr.msk.f32.mxu0 %vm91_vm1, %v12963_v40  ;;  %11930 = vmatprep.subr.bf16.mxu1 %v15939_v39  ;;  %v15937_v40 = vmov 0.0  }
 0x15a   :  { %11145 = vmatprep.mubr.msk.f32.mxu1 %vm12651_vm2, %v15937_v40 }
 0x15c   :  { %11016 = vmatmul.mubr.msk.f32.gmra.mrb[4].mxu0 %vm91_vm1, %v12972_v41  ;;  %v3463_v41 = vld [vmem:[%s15896_s3 + $0x24] sm:$0xf] }
 0x15d   :  { %11018 = vmatprep.mubr.msk.f32.mxu0 %vm91_vm1, %v12977_v42  ;;  %v13723_v42 = vld [vmem:[%s15895_s2] ss:$0 sm:$0xff] }
 0x160   :  { %11019 = vmatmul.mubr.msk.f32.gmra.mrb[6].mxu0 %vm91_vm1, %v12986_v43 }
 0x161   :  { %11021 = vmatprep.mubr.msk.f32.mxu0 %vm91_vm1, %v12991_v44 }
 0x164   :  { %11022 = vmatmul.mubr.msk.f32.gmra.mrb[8].mxu0 %vm91_vm1, %v13000_v45 }
 0x165   :  { %11024 = vmatprep.mubr.msk.f32.mxu0 %vm91_vm1, %v13005_v46 }
 0x168   :  { %11025 = vmatmul.mubr.msk.f32.gmra.mrb[10].mxu0 %vm91_vm1, %v13014_v47 }
 0x169   :  { %11027 = vmatprep.mubr.msk.f32.mxu0 %vm91_vm1, %v13019_v48 }
 0x16c   :  { %11028 = vmatmul.mubr.msk.f32.gmra.mrb[12].mxu0 %vm91_vm1, %v13028_v49 }
 0x16d   :  { %11030 = vmatprep.mubr.msk.f32.mxu0 %vm91_vm1, %v13033_v50 }
 0x170   :  { %11031 = vmatmul.mubr.msk.f32.gmra.mrb[14].mxu0 %vm91_vm1, %v13042_v51 }
 0x171   :  { %11033 = vmatprep.mubr.msk.f32.mxu0 %vm91_vm1, %v13047_v52 }
 0x174   :  { %11034 = vmatmul.mubr.msk.f32.gmra.mrb[16].mxu0 %vm91_vm1, %v13056_v53 }
 0x175   :  { %11036 = vmatprep.mubr.msk.f32.mxu0 %vm91_vm1, %v13061_v54 }
 0x178   :  { %11037 = vmatmul.mubr.msk.f32.gmra.mrb[18].mxu0 %vm91_vm1, %v13070_v55 }
 0x179   :  { %11039 = vmatprep.mubr.msk.f32.mxu0 %vm91_vm1, %v13075_v56 }
 0x17c   :  { %11040 = vmatmul.mubr.msk.f32.gmra.mrb[20].mxu0 %vm91_vm1, %v13084_v57 }
 0x17d   :  { %11042 = vmatprep.mubr.msk.f32.mxu0 %vm91_vm1, %v13089_v58 }
 0x180   :  { %11043 = vmatmul.mubr.msk.f32.gmra.mrb[22].mxu0 %vm91_vm1, %v13349_v33 }
 0x181   :  { %11045 = vmatprep.mubr.msk.f32.mxu0 %vm91_vm1, %v13354_v35 }
 0x184   :  { %11046 = vmatmul.mubr.msk.f32.gmra.mrb[24].mxu0 %vm91_vm1, %v2098_v36 }
 0x185   :  { %11048 = vmatprep.mubr.msk.f32.mxu0 %vm91_vm1, %v2099_v37 }
 0x188   :  { %11049 = vmatmul.mubr.msk.f32.gmra.mrb[26].mxu0 %vm91_vm1, %v2100_v38 }
 0x189   :  { %11053 = vmatprep.mubr.msk.f32.mxu0 %vm91_vm1, %v12739_v6  ;;  %v2447_v6 = vld [vmem:[%s15893_s0 + $0xe9] sm:$0xff] }
 0x18c   :  { %11054 = vmatmul.mubr.msk.f32.vlgmr.msra.gmra.mrb[0].mxu0 %vm91_vm1, %v12748_v7  ;;  %v2448_v7 = vld [vmem:[%s15893_s0 + $0xf1] sm:$0xff] }
 0x18d   :  { %11096 = vmatpush3.msk.msra.mxu0 %vm176_vm0, %v2799_v61  ;;  %11056 = vmatprep.mubr.msk.f32.mxu0 %vm91_vm1, %v12753_v8  ;;  %v2449_v8 = vld [vmem:[%s15893_s0 + $0xf9] sm:$0x3f] }
 0x18e   :  { %11957 = vmatprep.subr.bf16.mxu0 %v15939_v39 }
 0x190   :  { %11057 = vmatmul.mubr.msk.f32.gmra.mrb[2].mxu0 %vm91_vm1, %v12766_v10  ;;  %v16025_v10 = vld [vmem:[#allocation8_spill] sm:$0xff] }
 0x191   :  { %11059 = vmatprep.mubr.msk.f32.mxu0 %vm91_vm1, %v12771_v11  ;;  %v16026_v11 = vld [vmem:[#allocation9_spill] sm:$0xff] }
 0x194   :  { %11060 = vmatmul.mubr.msk.f32.gmra.mrb[4].mxu0 %vm91_vm1, %v12780_v12  ;;  %v16027_v12 = vld [vmem:[#allocation10_spill] sm:$0xff] }
 0x195   :  { %11062 = vmatprep.mubr.msk.f32.mxu0 %vm91_vm1, %v12785_v13  ;;  %v16028_v13 = vld [vmem:[#allocation11_spill] sm:$0xff] }
 0x198   :  { %11063 = vmatmul.mubr.msk.f32.gmra.mrb[6].mxu0 %vm91_vm1, %v12794_v14  ;;  %v16029_v14 = vld [vmem:[#allocation12_spill] sm:$0xff] }
 0x199   :  { %11065 = vmatprep.mubr.msk.f32.mxu0 %vm91_vm1, %v12799_v15  ;;  %v16030_v15 = vld [vmem:[#allocation13_spill] sm:$0xff] }
 0x19c   :  { %11066 = vmatmul.mubr.msk.f32.gmra.mrb[8].mxu0 %vm91_vm1, %v12808_v16  ;;  %v16031_v16 = vld [vmem:[#allocation14_spill] sm:$0xff] }
 0x19d   :  { %11068 = vmatprep.mubr.msk.f32.mxu0 %vm91_vm1, %v12813_v17  ;;  %v16032_v17 = vld [vmem:[#allocation15_spill] sm:$0xff] }
 0x1a0   :  { %11069 = vmatmul.mubr.msk.f32.gmra.mrb[10].mxu0 %vm91_vm1, %v12822_v18  ;;  %v16033_v18 = vld [vmem:[#allocation16_spill] sm:$0xff] }
 0x1a1   :  { %11071 = vmatprep.mubr.msk.f32.mxu0 %vm91_vm1, %v12827_v19  ;;  %v16034_v19 = vld [vmem:[#allocation17_spill] sm:$0xff] }
 0x1a4   :  { %11072 = vmatmul.mubr.msk.f32.gmra.mrb[12].mxu0 %vm91_vm1, %v12836_v20  ;;  %v16035_v20 = vld [vmem:[#allocation21_spill] sm:$0xff] }
 0x1a5   :  { %11074 = vmatprep.mubr.msk.f32.mxu0 %vm91_vm1, %v12841_v21  ;;  %v16036_v21 = vld [vmem:[#allocation23_spill] sm:$0xff] }
 0x1a8   :  { %11075 = vmatmul.mubr.msk.f32.gmra.mrb[14].mxu0 %vm91_vm1, %v12850_v22  ;;  %v16037_v22 = vld [vmem:[#allocation26_spill] sm:$0xff] }
 0x1a9   :  { %11077 = vmatprep.mubr.msk.f32.mxu0 %vm91_vm1, %v12855_v23  ;;  %v16038_v23 = vld [vmem:[#allocation27_spill] sm:$0xff] }
 0x1ac   :  { %11078 = vmatmul.mubr.msk.f32.gmra.mrb[16].mxu0 %vm91_vm1, %v12864_v24  ;;  %v2796_v24 = vld [vmem:[%s15893_s0 + $0xea] sm:$0xff] }
 0x1ad   :  { %11080 = vmatprep.mubr.msk.f32.mxu0 %vm91_vm1, %v12869_v25  ;;  %v2797_v25 = vld [vmem:[%s15893_s0 + $0xf2] sm:$0xff] }
 0x1b0   :  { %11081 = vmatmul.mubr.msk.f32.gmra.mrb[18].mxu0 %vm91_vm1, %v12878_v26  ;;  %v2798_v26 = vld [vmem:[%s15893_s0 + $0xfa] sm:$0x3f] }
 0x1b1   :  { %11083 = vmatprep.mubr.msk.f32.mxu0 %vm91_vm1, %v12883_v27  ;;  %v3461_v27 = vld [vmem:[%s15896_s3 + $0x14] sm:$0xff] }
 0x1b4   :  { %11084 = vmatmul.mubr.msk.f32.gmra.mrb[20].mxu0 %vm91_vm1, %v12892_v28  ;;  %v3462_v28 = vld [vmem:[%s15896_s3 + $0x1c] sm:$0xff] }
 0x1b5   :  { %11086 = vmatprep.mubr.msk.f32.mxu0 %vm91_vm1, %v12897_v29  ;;  %v11931_v29 = vpack.c.bf16 %v3462_v28, %v3461_v27 }
 0x1b7   :  { %11932 = vmatpush3.bf16.msra.mxu1 %v11931_v29 }
 0x1b8   :  { %11087 = vmatmul.mubr.msk.f32.gmra.mrb[22].mxu0 %vm91_vm1, %v13422_v4  ;;  %11143 = vmatprep.subr.mxu1 %v15937_v40 }
 0x1b9   :  { %11089 = vmatprep.mubr.msk.f32.mxu0 %vm91_vm1, %v13427_v5 }
 0x1bb   :  { %11144 = vmatpush3.msk.msra.mxu1 %vm176_vm0, %v3463_v41 }
 0x1bc   :  { %11090 = vmatmul.mubr.msk.f32.gmra.mrb[24].mxu0 %vm91_vm1, %v2447_v6  ;;  %11933 = vmatprep.subr.bf16.mxu1 %v15939_v39 }
 0x1bd   :  { %11092 = vmatprep.mubr.msk.f32.mxu0 %vm91_vm1, %v2448_v7 }
 0x1c0   :  { %11093 = vmatmul.mubr.msk.f32.gmra.mrb[26].mxu0 %vm91_vm1, %v2449_v8 }
 0x1c1   :  { %11097 = vmatprep.mubr.msk.f32.mxu0 %vm91_vm1, %v13126_v1 }
 0x1c4   :  { %11098 = vmatmul.mubr.msk.f32.vlgmr.msra.gmra.mrb[0].mxu0 %vm91_vm1, %v13136_v2 }
 0x1c5   :  { %11100 = vmatprep.mubr.msk.f32.mxu0 %vm91_vm1, %v13141_v3 }
 0x1c8   :  { %11101 = vmatmul.mubr.msk.f32.gmra.mrb[2].mxu0 %vm91_vm1, %v16025_v10 }
 0x1c9   :  { %11103 = vmatprep.mubr.msk.f32.mxu0 %vm91_vm1, %v16026_v11 }
 0x1cc   :  { %11104 = vmatmul.mubr.msk.f32.gmra.mrb[4].mxu0 %vm91_vm1, %v16027_v12 }
 0x1cd   :  { %11106 = vmatprep.mubr.msk.f32.mxu0 %vm91_vm1, %v16028_v13 }
 0x1d0   :  { %11107 = vmatmul.mubr.msk.f32.gmra.mrb[6].mxu0 %vm91_vm1, %v16029_v14 }
 0x1d1   :  { %11109 = vmatprep.mubr.msk.f32.mxu0 %vm91_vm1, %v16030_v15 }
 0x1d4   :  { %11110 = vmatmul.mubr.msk.f32.gmra.mrb[8].mxu0 %vm91_vm1, %v16031_v16 }
 0x1d5   :  { %11112 = vmatprep.mubr.msk.f32.mxu0 %vm91_vm1, %v16032_v17 }
 0x1d8   :  { %11113 = vmatmul.mubr.msk.f32.gmra.mrb[10].mxu0 %vm91_vm1, %v16033_v18 }
 0x1d9   :  { %11115 = vmatprep.mubr.msk.f32.mxu0 %vm91_vm1, %v16034_v19 }
 0x1dc   :  { %11116 = vmatmul.mubr.msk.f32.gmra.mrb[12].mxu0 %vm91_vm1, %v16017_v31 }
 0x1dd   :  { %11118 = vmatprep.mubr.msk.f32.mxu0 %vm91_vm1, %v16018_v32 }
 0x1e0   :  { %11119 = vmatmul.mubr.msk.f32.gmra.mrb[14].mxu0 %vm91_vm1, %v16019_v62 }
 0x1e1   :  { %11121 = vmatprep.mubr.msk.f32.mxu0 %vm91_vm1, %v16035_v20 }
 0x1e4   :  { %11122 = vmatmul.mubr.msk.f32.gmra.mrb[16].mxu0 %vm91_vm1, %v16021_v34 }
 0x1e5   :  { %11124 = vmatprep.mubr.msk.f32.mxu0 %vm91_vm1, %v16036_v21 }
 0x1e8   :  { %11125 = vmatmul.mubr.msk.f32.gmra.mrb[18].mxu0 %vm91_vm1, %v16023_v9 }
 0x1e9   :  { %11127 = vmatprep.mubr.msk.f32.mxu0 %vm91_vm1, %v16024_v30 }
 0x1ec   :  { %11128 = vmatmul.mubr.msk.f32.gmra.mrb[20].mxu0 %vm91_vm1, %v16037_v22 }
 0x1ed   :  { %11130 = vmatprep.mubr.msk.f32.mxu0 %vm91_vm1, %v16038_v23 }
 0x1f0   :  { %11131 = vmatmul.mubr.msk.f32.gmra.mrb[22].mxu0 %vm91_vm1, %v13495_v0 }
 0x1f1   :  { %11133 = vmatprep.mubr.msk.f32.mxu0 %vm91_vm1, %v13500_v59 }
 0x1f4   :  { %11134 = vmatmul.mubr.msk.f32.gmra.mrb[24].mxu0 %vm91_vm1, %v2796_v24 }
 0x1f5   :  { %11136 = vmatprep.mubr.msk.f32.mxu0 %vm91_vm1, %v2797_v25 }
 0x1f8   :  { %11137 = vmatmul.mubr.msk.f32.gmra.mrb[26].mxu0 %vm91_vm1, %v2798_v26 }
 0x1f9   :  { %11730 = vmatprep.mubr.msk.f32.mxu0 %vm12651_vm2, %v15937_v40 }
 0x297   :  { %v11099_v43 = vpop.f32.mrb[0].mxu0 }
 0x298   :  { %v13726_v44 = vadd.f32 %v11099_v43, %v13723_v42  ;;  %v2953_v45 = vpop.f32.mrb[1].mxu0 }
 0x299   :  { %v13729_v46 = vadd.f32 %v13723_v42, %v2953_v45 }
 0x29a   :  { %v3184_v47 = vmin.f32 %v13726_v44, 0.0  ;;  %vm3156_vm4 = vcmp.gt.f32.partialorder %v13726_v44, 0.0 }
 0x29b   :  { %v3183_v48 = vmin.f32 %v13729_v46, 0.0  ;;  %v11102_v49 = vpop.f32.mrb[2].mxu0  ;;  %vm3155_vm5 = vcmp.gt.f32.partialorder %v13729_v46, 0.0 }
 0x29c   :  { %v3213_v50 = vmul.f32 1.442695, %v3184_v47  ;;  %v3130_v51 = vadd.f32 %v11102_v49, %v13723_v42  ;;  %v2963_v52 = vpop.f32.mrb[3].mxu0 }
 0x29d   :  { %v3211_v53 = vmul.f32 1.442695, %v3183_v48  ;;  %v13735_v54 = vadd.f32 %v13723_v42, %v2963_v52 }
 0x29e   :  { %12489 = vpow2.f32 %v3213_v50  ;;  %v3186_v55 = vmin.f32 %v3130_v51, 0.0  ;;  %vm3158_vm6 = vcmp.gt.f32.partialorder %v3130_v51, 0.0 }
 0x29f   :  { %12491 = vpow2.f32 %v3211_v53  ;;  %v3185_v56 = vmin.f32 %v13735_v54, 0.0  ;;  %v11105_v57 = vpop.f32.mrb[4].mxu0  ;;  %vm3157_vm7 = vcmp.gt.f32.partialorder %v13735_v54, 0.0 }
 0x2a0   :  { %v3217_v58 = vmul.f32 1.442695, %v3186_v55  ;;  %v13739_v1 = vadd.f32 %v11105_v57, %v13723_v42  ;;  %v2973_v2 = vpop.f32.mrb[5].mxu0 }
 0x2a1   :  { %v3215_v3 = vmul.f32 1.442695, %v3185_v56  ;;  %v13742_v9 = vadd.f32 %v13723_v42, %v2973_v2 }
 0x2a2   :  { %12493 = vpow2.f32 %v3217_v58  ;;  %v3188_v30 = vmin.f32 %v13739_v1, 0.0  ;;  %vm3160_vm8 = vcmp.gt.f32.partialorder %v13739_v1, 0.0 }
 0x2a3   :  { %12495 = vpow2.f32 %v3215_v3  ;;  %v3187_v31 = vmin.f32 %v13742_v9, 0.0  ;;  %v11108_v32 = vpop.f32.mrb[6].mxu0  ;;  %vm3159_vm9 = vcmp.gt.f32.partialorder %v13742_v9, 0.0 }
 0x2a4   :  { %v3221_v60 = vmul.f32 1.442695, %v3188_v30  ;;  %v13747_v61 = vadd.f32 %v11108_v32, %v13723_v42  ;;  %v2983_v33 = vpop.f32.mrb[7].mxu0 }
 0x2a5   :  { %v3219_v35 = vmul.f32 1.442695, %v3187_v31  ;;  %v13750_v4 = vadd.f32 %v13723_v42, %v2983_v33 }
 0x2a6   :  { %12497 = vpow2.f32 %v3221_v60  ;;  %v3190_v5 = vmin.f32 %v13747_v61, 0.0  ;;  %vm3162_vm10 = vcmp.gt.f32.partialorder %v13747_v61, 0.0 }
 0x2a7   :  { %12499 = vpow2.f32 %v3219_v35  ;;  %v3189_v63 = vmin.f32 %v13750_v4, 0.0  ;;  %v11111_v62 = vpop.f32.mrb[8].mxu0  ;;  %vm3161_vm11 = vcmp.gt.f32.partialorder %v13750_v4, 0.0 }
 0x2a8   :  { %v12490_v0 = vpop.eup %12489  ;;  %v3225_v34 = vmul.f32 1.442695, %v3190_v5  ;;  %v13755_v59 = vadd.f32 %v11111_v62, %v13723_v42  ;;  %v2993_v36 = vpop.f32.mrb[9].mxu0 }
 0x2a9   :  { %v12492_v37 = vpop.eup %12491  ;;  %v3223_v38 = vmul.f32 1.442695, %v3189_v63  ;;  %v13758_v6 = vadd.f32 %v13723_v42, %v2993_v36  ;;  %v9629_v7 = vadd.f32 -1.0, %v12490_v0 }
 0x2aa   :  { %12501 = vpow2.f32 %v3225_v34  ;;  %v3192_v8 = vmin.f32 %v13755_v59, 0.0  ;;  %v9628_v10 = vadd.f32 -1.0, %v12492_v37  ;;  %vm3164_vm12 = vcmp.gt.f32.partialorder %v13755_v59, 0.0 }
 0x2ab   :  { %12503 = vpow2.f32 %v3223_v38  ;;  %v3191_v11 = vmin.f32 %v13758_v6, 0.0  ;;  %v11114_v12 = vpop.f32.mrb[10].mxu0  ;;  %v3296_v21 = vsel %vm3156_vm4, %v13726_v44, %v9629_v7  ;;  %vm3163_vm13 = vcmp.gt.f32.partialorder %v13758_v6, 0.0 }
 0x2ac   :  { %v12494_v13 = vpop.eup %12493  ;;  %v3229_v14 = vmul.f32 1.442695, %v3192_v8  ;;  %v13765_v15 = vadd.f32 %v11114_v12, %v13723_v42  ;;  %v3003_v16 = vpop.f32.mrb[11].mxu0  ;;  %v3295_v24 = vsel %vm3155_vm5, %v13729_v46, %v9628_v10 }
 0x2ad   :  { %v12496_v17 = vpop.eup %12495  ;;  %v9631_v18 = vadd.f32 -1.0, %v12494_v13  ;;  %v3227_v19 = vmul.f32 1.442695, %v3191_v11  ;;  %v13769_v20 = vadd.f32 %v13723_v42, %v3003_v16 }
 0x2ae   :  { %v9630_v22 = vadd.f32 -1.0, %v12496_v17  ;;  %12505 = vpow2.f32 %v3229_v14  ;;  %v3194_v23 = vmin.f32 %v13765_v15, 0.0  ;;  %vm3166_vm14 = vcmp.gt.f32.partialorder %v13765_v15, 0.0 }
 0x2af   :  { %v3298_v25 = vsel %vm3158_vm6, %v3130_v51, %v9631_v18  ;;  %12507 = vpow2.f32 %v3227_v19  ;;  %v3193_v26 = vmin.f32 %v13769_v20, 0.0  ;;  %v11117_v27 = vpop.f32.mrb[12].mxu0  ;;  %vm3165_vm15 = vcmp.gt.f32.partialorder %v13769_v20, 0.0 }
 0x2b0   :  { %v12498_v28 = vpop.eup %12497  ;;  %v3324_v29 = vmax.f32 %v3296_v21, %v3298_v25  ;;  %v3297_v41 = vsel %vm3157_vm7, %v13735_v54, %v9630_v22  ;;  %v3233_v43 = vmul.f32 1.442695, %v3194_v23  ;;  %v13779_v45 = vadd.f32 %v11117_v27, %v13723_v42  ;;  %v3013_v44 = vpop.f32.mrb[13].mxu0 }
 0x2b1   :  { %v12500_v47 = vpop.eup %12499  ;;  %v3323_v48 = vmax.f32 %v3295_v24, %v3297_v41  ;;  %v9633_v49 = vadd.f32 -1.0, %v12498_v28  ;;  %v3231_v50 = vmul.f32 1.442695, %v3193_v26  ;;  %v13782_v46 = vadd.f32 %v13723_v42, %v3013_v44 }
 0x2b2   :  { %3351 = vst.msk [vmem:[#allocation2 + $0x8] sm:$0xff] %vm3349_vm3, %v3324_v29  ;;  %v9632_v51 = vadd.f32 -1.0, %v12500_v47  ;;  %12509 = vpow2.f32 %v3233_v43  ;;  %v3196_v52 = vmin.f32 %v13779_v45, 0.0  ;;  %vm3168_vm4 = vcmp.gt.f32.partialorder %v13779_v45, 0.0 }
 0x2b3   :  { %3350 = vst.msk [vmem:[#allocation2] sm:$0xff] %vm3349_vm3, %v3323_v48  ;;  %v3300_v53 = vsel %vm3160_vm8, %v13739_v1, %v9633_v49  ;;  %12511 = vpow2.f32 %v3231_v50  ;;  %v3195_v54 = vmin.f32 %v13782_v46, 0.0  ;;  %v11120_v55 = vpop.f32.mrb[14].mxu0  ;;  %vm3167_vm5 = vcmp.gt.f32.partialorder %v13782_v46, 0.0 }
 0x2b4   :  { %v12502_v56 = vpop.eup %12501  ;;  %v3299_v57 = vsel %vm3159_vm9, %v13742_v9, %v9632_v51  ;;  %v3237_v58 = vmul.f32 1.442695, %v3196_v52  ;;  %v13793_v2 = vadd.f32 %v11120_v55, %v13723_v42  ;;  %v3023_v3 = vpop.f32.mrb[15].mxu0 }
 0x2b5   :  { %v12504_v30 = vpop.eup %12503  ;;  %v9635_v31 = vadd.f32 -1.0, %v12502_v56  ;;  %v3235_v32 = vmul.f32 1.442695, %v3195_v54  ;;  %v13796_v60 = vadd.f32 %v13723_v42, %v3023_v3 }
 0x2b6   :  { %v9634_v1 = vadd.f32 -1.0, %v12504_v30  ;;  %12513 = vpow2.f32 %v3237_v58  ;;  %v3198_v33 = vmin.f32 %v13793_v2, 0.0  ;;  %vm3170_vm6 = vcmp.gt.f32.partialorder %v13793_v2, 0.0 }
 0x2b7   :  { %v3302_v35 = vsel %vm3162_vm10, %v13747_v61, %v9635_v31  ;;  %12515 = vpow2.f32 %v3235_v32  ;;  %v3197_v9 = vmin.f32 %v13796_v60, 0.0  ;;  %v11123_v5 = vpop.f32.mrb[16].mxu0  ;;  %vm3169_vm7 = vcmp.gt.f32.partialorder %v13796_v60, 0.0 }
 0x2b8   :  { %v12506_v63 = vpop.eup %12505  ;;  %v3328_v62 = vmax.f32 %v3300_v53, %v3302_v35  ;;  %v3301_v0 = vsel %vm3161_vm11, %v13750_v4, %v9634_v1  ;;  %v3241_v34 = vmul.f32 1.442695, %v3198_v33  ;;  %v13805_v36 = vadd.f32 %v11123_v5, %v13723_v42  ;;  %v3033_v37 = vpop.f32.mrb[17].mxu0 }
 0x2b9   :  { %v12508_v38 = vpop.eup %12507  ;;  %v3327_v7 = vmax.f32 %v3299_v57, %v3301_v0  ;;  %v9637_v8 = vadd.f32 -1.0, %v12506_v63  ;;  %v3239_v10 = vmul.f32 1.442695, %v3197_v9  ;;  %v13808_v61 = vadd.f32 %v13723_v42, %v3033_v37 }
 0x2ba   :  { %3355 = vst.msk [vmem:[#allocation2 + $0x28] sm:$0xff] %vm3349_vm3, %v3328_v62  ;;  %12517 = vpow2.f32 %v3241_v34  ;;  %v9636_v11 = vadd.f32 -1.0, %v12508_v38  ;;  %v3200_v14 = vmin.f32 %v13805_v36, 0.0  ;;  %vm3172_vm8 = vcmp.gt.f32.partialorder %v13805_v36, 0.0 }
 0x2bb   :  { %3354 = vst.msk [vmem:[#allocation2 + $0x20] sm:$0xff] %vm3349_vm3, %v3327_v7  ;;  %v3304_v4 = vsel %vm3164_vm12, %v13755_v59, %v9637_v8  ;;  %12519 = vpow2.f32 %v3239_v10  ;;  %v11126_v12 = vpop.f32.mrb[18].mxu0  ;;  %v3199_v16 = vmin.f32 %v13808_v61, 0.0  ;;  %vm3171_vm9 = vcmp.gt.f32.partialorder %v13808_v61, 0.0 }
 0x2bc   :  { %v12510_v13 = vpop.eup %12509  ;;  %v3043_v17 = vpop.f32.mrb[19].mxu0  ;;  %v3303_v19 = vsel %vm3163_vm13, %v13758_v6, %v9636_v11  ;;  %v13820_v22 = vadd.f32 %v11126_v12, %v13723_v42  ;;  %v3245_v24 = vmul.f32 1.442695, %v3200_v14  ;;  %vm3429_vm11 = vcmask 1046528  }
 0x2bd   :  { %v12512_v18 = vpop.eup %12511  ;;  %v9639_v21 = vadd.f32 -1.0, %v12510_v13  ;;  %v13823_v59 = vadd.f32 %v13723_v42, %v3043_v17  ;;  %v3243_v25 = vmul.f32 1.442695, %v3199_v16  ;;  %vm3431_vm12 = vcmask 1045504  }
 0x2be   :  { %v9638_v23 = vadd.f32 -1.0, %v12512_v18  ;;  %v3202_v27 = vmin.f32 %v13820_v22, 0.0  ;;  %12521 = vpow2.f32 %v3245_v24  ;;  %vm3174_vm10 = vcmp.gt.f32.partialorder %v13820_v22, 0.0 }
 0x2bf   :  { %v3306_v26 = vsel %vm3166_vm14, %v13765_v15, %v9639_v21  ;;  %v11129_v28 = vpop.f32.mrb[20].mxu0  ;;  %v3201_v43 = vmin.f32 %v13823_v59, 0.0  ;;  %12523 = vpow2.f32 %v3243_v25  ;;  %vm3433_vm13 = vcmask 1044480  }
 0x2c0   :  { %v12514_v29 = vpop.eup %12513  ;;  %v3332_v41 = vmax.f32 %v3304_v4, %v3306_v26  ;;  %v3305_v6 = vsel %vm3165_vm15, %v13769_v20, %v9638_v23  ;;  %v3053_v44 = vpop.f32.mrb[21].mxu0  ;;  %v3249_v50 = vmul.f32 1.442695, %v3202_v27  ;;  %v13833_v15 = vadd.f32 %v11129_v28, %v13723_v42  ;;  %v3377_v27 = vld [vmem:[#allocation2] ss:$2 sm:$0x7f] }
 0x2c1   :  { %v12516_v47 = vpop.eup %12515  ;;  %v3331_v48 = vmax.f32 %v3303_v19, %v3305_v6  ;;  %v9641_v49 = vadd.f32 -1.0, %v12514_v29  ;;  %v13836_v51 = vadd.f32 %v13723_v42, %v3053_v44  ;;  %v3247_v53 = vmul.f32 1.442695, %v3201_v43  ;;  %v3379_v43 = vld [vmem:[#allocation2 + $0x1] ss:$2 sm:$0x7f] }
 0x2c2   :  { %3359 = vst.msk [vmem:[#allocation2 + $0x48] sm:$0xff] %vm3349_vm3, %v3332_v41  ;;  %v9640_v52 = vadd.f32 -1.0, %v12516_v47  ;;  %12525 = vpow2.f32 %v3249_v50  ;;  %v3204_v56 = vmin.f32 %v13833_v15, 0.0  ;;  %v13853_v63 = vld [vmem:[#allocation2 + $0x20] ss:$2 sm:$0x7f] }
 0x2c3   :  { %3358 = vst.msk [vmem:[#allocation2 + $0x40] sm:$0xff] %vm3349_vm3, %v3331_v48  ;;  %v3308_v20 = vsel %vm3168_vm4, %v13779_v45, %v9641_v49  ;;  %v11132_v54 = vpop.f32.mrb[22].mxu0  ;;  %12527 = vpow2.f32 %v3247_v53  ;;  %v3203_v31 = vmin.f32 %v13836_v51, 0.0  ;;  %v3384_v34 = vld [vmem:[#allocation2 + $0x21] ss:$2 sm:$0x7f] }
 0x2c4   :  { %v12518_v55 = vpop.eup %12517  ;;  %v3063_v57 = vpop.f32.mrb[23].mxu0  ;;  %v3307_v3 = vsel %vm3167_vm5, %v13782_v46, %v9640_v52  ;;  %v3253_v32 = vmul.f32 1.442695, %v3204_v56  ;;  %v13846_v1 = vadd.f32 %v11132_v54, %v13723_v42  ;;  %v3385_v19 = vmax.f32 %v13853_v63, %v3384_v34  ;;  %v3454_v34 = vld [vmem:[%s15896_s3 + $0x8] sm:$0xff] }
 0x2c5   :  { %v12520_v58 = vpop.eup %12519  ;;  %v9643_v30 = vadd.f32 -1.0, %v12518_v55  ;;  %v3251_v35 = vmul.f32 1.442695, %v3203_v31  ;;  %v13851_v9 = vadd.f32 %v13723_v42, %v3063_v57  ;;  %vm3173_vm14 = vcmp.gt.f32.partialorder %v13823_v59, 0.0 }
 0x2c6   :  { %v9642_v45 = vadd.f32 -1.0, %v12520_v58  ;;  %12529 = vpow2.f32 %v3253_v32  ;;  %v3380_v55 = vmax.f32 %v3377_v27, %v3379_v43  ;;  %vm3176_vm15 = vcmp.gt.f32.partialorder %v13833_v15, 0.0 }
 0x2c7   :  { %v3310_v33 = vsel %vm3170_vm6, %v13793_v2, %v9643_v30  ;;  %v11135_v5 = vpop.f32.mrb[24].mxu0  ;;  %12531 = vpow2.f32 %v3251_v35  ;;  %v3206_v2 = vmin.f32 %v13846_v1, 0.0  ;;  %v3205_v13 = vmin.f32 %v13851_v9, 0.0 }
 0x2c8   :  { %v3336_v46 = vmax.f32 %v3308_v20, %v3310_v33  ;;  %v3309_v62 = vsel %vm3169_vm7, %v13796_v60, %v9642_v45  ;;  %v3073_v0 = vpop.f32.mrb[25].mxu0  ;;  %v12522_v38 = vpop.eup %12521  ;;  %v13861_v10 = vadd.f32 %v11135_v5, %v13723_v42  ;;  %v3412_v30 = vrot.slane %v3385_v19, 1 }
 0x2c9   :  { %v3335_v37 = vmax.f32 %v3307_v3, %v3309_v62  ;;  %v13864_v60 = vadd.f32 %v13723_v42, %v3073_v0  ;;  %v12524_v4 = vpop.eup %12523  ;;  %v9645_v11 = vadd.f32 -1.0, %v12522_v38  ;;  %v3257_v12 = vmul.f32 1.442695, %v3206_v2 }
 0x2ca   :  { %v3387_v7 = vld [vmem:[#allocation2 + $0x40] ss:$2 sm:$0x7f]  ;;  %v3389_v8 = vld [vmem:[#allocation2 + $0x41] ss:$2 sm:$0x7f]  ;;  %v3430_v35 = vsel %vm3429_vm11, %v3380_v55, %v3412_v30 }
 0x2cb   :  { %3363 = vst.msk [vmem:[#allocation2 + $0x68] sm:$0xff] %vm3349_vm3, %v3336_v46  ;;  %3362 = vst.msk [vmem:[#allocation2 + $0x60] sm:$0xff] %vm3349_vm3, %v3335_v37  ;;  %v11138_v14 = vpop.f32.mrb[26].mxu0  ;;  %v9644_v16 = vadd.f32 -1.0, %v12524_v4  ;;  %v3208_v17 = vmin.f32 %v13861_v10, 0.0  ;;  %v3390_v21 = vmax.f32 %v3387_v7, %v3389_v8  ;;  %v3312_v24 = vsel %vm3172_vm8, %v13805_v36, %v9645_v11  ;;  %v3683_v55 = vld [vmem:[%s15896_s3 + $0x28] sm:$0xff] }
 0x2cc   :  { %v3083_v18 = vpop.f32.mrb[27].mxu0  ;;  %v12526_v23 = vpop.eup %12525  ;;  %12533 = vpow2.f32 %v3257_v12  ;;  %v3255_v25 = vmul.f32 1.442695, %v3205_v13  ;;  %v3207_v26 = vmin.f32 %v13864_v60, 0.0  ;;  %v13879_v47 = vadd.f32 %v11138_v14, %v13723_v42  ;;  %3440 = vst.msk [vmem:[#allocation3] sm:$0xff] %vm3349_vm3, %v3430_v35 }
 0x2cd   :  { %v3311_v28 = vsel %vm3171_vm9, %v13808_v61, %v9644_v16  ;;  %v9647_v29 = vadd.f32 -1.0, %v12526_v23  ;;  %v3261_v41 = vmul.f32 1.442695, %v3208_v17  ;;  %v12528_v6 = vpop.eup %12527  ;;  %v13885_v49 = vadd.f32 %v13723_v42, %v3083_v18 }
 0x2ce   :  { %12535 = vpow2.f32 %v3255_v25  ;;  %v3259_v44 = vmul.f32 1.442695, %v3207_v26  ;;  %v9646_v48 = vadd.f32 -1.0, %v12528_v6  ;;  %v3210_v50 = vmin.f32 %v13879_v47, 0.0 }
 0x2cf   :  { %v3314_v36 = vsel %vm3174_vm10, %v13820_v22, %v9647_v29  ;;  %12537 = vpow2.f32 %v3261_v41  ;;  %v3209_v3 = vmin.f32 %v13885_v49, 0.0  ;;  %v3415_v31 = vrot.slane %v3390_v21, 2 }
 0x2d0   :  { %v3340_v61 = vmax.f32 %v3312_v24, %v3314_v36  ;;  %12539 = vpow2.f32 %v3259_v44  ;;  %v12530_v20 = vpop.eup %12529  ;;  %v3313_v54 = vsel %vm3173_vm14, %v13823_v59, %v9646_v48  ;;  %v3265_v57 = vmul.f32 1.442695, %v3210_v50 }
 0x2d1   :  { %v12532_v56 = vpop.eup %12531  ;;  %v3339_v22 = vmax.f32 %v3311_v28, %v3313_v54  ;;  %v9649_v42 = vadd.f32 -1.0, %v12530_v20  ;;  %vm3175_vm4 = vcmp.gt.f32.partialorder %v13836_v51, 0.0  ;;  %v3263_v33 = vmul.f32 1.442695, %v3209_v3 }
 0x2d2   :  { %v3392_v52 = vld [vmem:[#allocation2 + $0x60] ss:$2 sm:$0x7f]  ;;  %v3394_v53 = vld [vmem:[#allocation2 + $0x61] ss:$2 sm:$0x7f]  ;;  %12541 = vpow2.f32 %v3265_v57  ;;  %v3432_v63 = vsel %vm3431_vm12, %v3412_v30, %v3415_v31 }
 0x2d3   :  { %3367 = vst.msk [vmem:[#allocation2 + $0x88] sm:$0xff] %vm3349_vm3, %v3340_v61  ;;  %v9648_v58 = vadd.f32 -1.0, %v12532_v56  ;;  %3366 = vst.msk [vmem:[#allocation2 + $0x80] sm:$0xff] %vm3349_vm3, %v3339_v22  ;;  %v3316_v45 = vsel %vm3176_vm15, %v13833_v15, %v9649_v42  ;;  %v3395_v59 = vmax.f32 %v3392_v52, %v3394_v53  ;;  %12543 = vpow2.f32 %v3263_v33  ;;  %v3684_v56 = vld [vmem:[%s15896_s3 + $0x30] sm:$0xff] }
 0x2d4   :  { %3441 = vst.msk [vmem:[#allocation3 + $0x8] sm:$0xff] %vm3349_vm3, %v3432_v63  ;;  %vm3178_vm5 = vcmp.gt.f32.partialorder %v13846_v1, 0.0  ;;  %vm3177_vm6 = vcmp.gt.f32.partialorder %v13851_v9, 0.0  ;;  %vm3180_vm7 = vcmp.gt.f32.partialorder %v13861_v10, 0.0  ;;  %vm3179_vm8 = vcmp.gt.f32.partialorder %v13864_v60, 0.0  ;;  %v3448_v57 = vld [vmem:[#allocation3] sm:$0xff] }
 0x2d5   :  { %v3315_v32 = vsel %vm3175_vm4, %v13836_v51, %v9648_v58  ;;  %v3418_v46 = vrot.slane %v3395_v59, 3  ;;  %v3453_v51 = vld [vmem:[%s15896_s3] sm:$0xff]  ;;  %vm3182_vm9 = vcmp.gt.f32.partialorder %v13879_v47, 0.0  ;;  %vm3375_vm10 = vcmask 160768   ;;  %v3685_v58 = vld [vmem:[%s15896_s3 + $0x38] sm:$0xf] }
 0x2d6   :  { %v12534_v5 = vpop.eup %12533  ;;  %v11934_v14 = vpack.c.bf16 %v3454_v34, %v3453_v51  ;;  %vm3181_vm14 = vcmp.gt.f32.partialorder %v13885_v49, 0.0  ;;  %vm3436_vm15 = vcmask 1042432   ;;  %vm3438_vm4 = vcmask 1041408   ;;  %v3803_v59 = vld [vmem:[%s15896_s3 + $0x44] sm:$0xff] }
 0x2d7   :  { %v9651_v62 = vadd.f32 -1.0, %v12534_v5  ;;  %v3434_v0 = vsel %vm3433_vm13, %v3415_v31, %v3418_v46  ;;  %v11937_v42 = vpack.c.bf16 %v3684_v56, %v3683_v55  ;;  %v3804_v5 = vld [vmem:[%s15896_s3 + $0x4c] sm:$0xf]  ;;  %v14220_v55 = vld [vmem:[%s15894_s1 + $0x8] sm:$0xf]  ;;  %v14229_v56 = vld [vmem:[%s15893_s0 + $0x119] sm:$0xff] }
 0x2d8   :  { %v12536_v15 = vpop.eup %12535  ;;  %3442 = vst.msk [vmem:[#allocation3 + $0x10] sm:$0xff] %vm3349_vm3, %v3434_v0  ;;  %v3922_v0 = vld [vmem:[%s15896_s3 + $0x58] sm:$0xff] }
 0x2d9   :  { %v12538_v37 = vpop.eup %12537  ;;  %v3318_v2 = vsel %vm3178_vm5, %v13846_v1, %v9651_v62  ;;  %v9650_v38 = vadd.f32 -1.0, %v12536_v15  ;;  %vm3446_vm5 = vcmask 155648   ;;  %v3921_v15 = vld [vmem:[%s15896_s3 + $0x50] sm:$0xff] }
 0x2da   :  { %v12540_v7 = vpop.eup %12539  ;;  %v3344_v8 = vmax.f32 %v3316_v45, %v3318_v2  ;;  %v9653_v4 = vadd.f32 -1.0, %v12538_v37  ;;  %v3397_v11 = vld [vmem:[#allocation2 + $0x80] ss:$2 sm:$0x7f]  ;;  %v11943_v34 = vpack.c.bf16 %v3922_v0, %v3921_v15 }
 0x2db   :  { %v3399_v12 = vld [vmem:[#allocation2 + $0x81] ss:$2 sm:$0x7f]  ;;  %v3317_v13 = vsel %vm3177_vm6, %v13851_v9, %v9650_v38  ;;  %v9652_v17 = vadd.f32 -1.0, %v12540_v7  ;;  %v3456_v23 = vld [vmem:[#allocation3 + $0x1] sm:$0xff] }
 0x2dc   :  { %3371 = vst.msk [vmem:[#allocation2 + $0xa8] sm:$0xff] %vm3349_vm3, %v3344_v8  ;;  %v3343_v16 = vmax.f32 %v3315_v32, %v3317_v13  ;;  %v3320_v1 = vsel %vm3180_vm7, %v13861_v10, %v9653_v4  ;;  %v3400_v18 = vmax.f32 %v3397_v11, %v3399_v12  ;;  %v12542_v19 = vpop.eup %12541  ;;  %11146 = vmatmul.mubr.msk.f32.vlgmr.msra.gmra.mrb[0].mxu1 %vm3349_vm3, %v3456_v23  ;;  %v13975_v3 = vld [vmem:[#allocation3 + $0x8] sm:$0xff]  ;;  %v3923_v2 = vld [vmem:[%s15896_s3 + $0x60] sm:$0xf]  ;;  %v4040_v4 = vld [vmem:[%s15896_s3 + $0x64] sm:$0xff] }
 0x2dd   :  { %v3319_v21 = vsel %vm3179_vm8, %v13864_v60, %v9652_v17  ;;  %v9655_v25 = vadd.f32 -1.0, %v12542_v19  ;;  %11148 = vmatprep.mubr.msk.f32.mxu1 %vm12651_vm2, %v15937_v40  ;;  %11935 = vmatpush3.bf16.msra.mxu1 %v11934_v14  ;;  %v12544_v26 = vpop.eup %12543  ;;  %v3455_v60 = vld [vmem:[%s15896_s3 + $0x10] sm:$0xf]  ;;  %v3802_v45 = vld [vmem:[%s15896_s3 + $0x3c] sm:$0xff]  ;;  %v4042_v14 = vld [vmem:[%s15896_s3 + $0x74] sm:$0xf] }
 0x2de   :  { %3370 = vst.msk [vmem:[#allocation2 + $0xa0] sm:$0xff] %vm3349_vm3, %v3343_v16  ;;  %v3421_v24 = vrot.slane %v3400_v18, 4  ;;  %11164 = vmatprep.subr.mxu1 %v15937_v40  ;;  %v9654_v29 = vadd.f32 -1.0, %v12544_v26  ;;  %v11940_v33 = vpack.c.bf16 %v3803_v59, %v3802_v45  ;;  %v3678_v35 = vld [vmem:[#allocation3 + $0x2] sm:$0xff]  ;;  %v4160_v17 = vld [vmem:[%s15896_s3 + $0x80] sm:$0xff]  ;;  %v14329_v0 = vld [vmem:[%s15893_s0 + $0x189] sm:$0xff] }
 0x2df   :  { %v13923_v9 = vld [vmem:[#allocation3 + $0x9] sm:$0xff]  ;;  %v3322_v27 = vsel %vm3182_vm9, %v13879_v47, %v9655_v25  ;;  %v4041_v11 = vld [vmem:[%s15896_s3 + $0x6c] sm:$0xff]  ;;  %v14292_v59 = vld [vmem:[%s15893_s0 + $0x161] sm:$0xff]  ;;  %vm4550_vm8 = vcmask 1040384   ;;  %vm4564_vm9 = vcmask 408576  }
 0x2e0   :  { %v3435_v10 = vsel %vm176_vm0, %v3418_v46, %v3421_v24  ;;  %v3348_v28 = vmax.f32 %v3320_v1, %v3322_v27  ;;  %11149 = vmatmul.mubr.msk.f32.gmra.mrb[2].mxu1 %vm3349_vm3, %v13923_v9  ;;  %v3321_v41 = vsel %vm3181_vm14, %v13885_v49, %v9654_v29  ;;  %v13983_v30 = vld [vmem:[#allocation3 + $0x10] sm:$0xff]  ;;  %v3797_v37 = vld [vmem:[#allocation3 + $0x7] sm:$0xff]  ;;  %v11946_v13 = vpack.c.bf16 %v4041_v11, %v4040_v4 }
 0x2e1   :  { %3443 = vst.msk [vmem:[#allocation3 + $0x18] sm:$0xff] %vm3349_vm3, %v3435_v10  ;;  %11151 = vmatprep.mubr.msk.f32.mxu1 %vm12651_vm2, %v15937_v40  ;;  %11165 = vmatpush3.msk.msra.mxu1 %vm176_vm0, %v3455_v60  ;;  %v3347_v44 = vmax.f32 %v3319_v21, %v3321_v41  ;;  %v3679_v63 = vld [vmem:[#allocation3 + $0xa] sm:$0xff]  ;;  %v4161_v21 = vld [vmem:[%s15896_s3 + $0x88] sm:$0xf] }
 0x2e2   :  { %3376 = vst.msk [vmem:[#allocation2 + $0xc8] sm:$0x3f] %vm3375_vm10, %v3348_v28  ;;  %11936 = vmatprep.subr.bf16.mxu1 %v15939_v39  ;;  %v14038_v38 = vld [vmem:[#allocation3 + $0xf] sm:$0xff]  ;;  %v4279_v25 = vld [vmem:[%s15896_s3 + $0x94] sm:$0xff] }
 0x2e3   :  { %3374 = vst.msk [vmem:[#allocation2 + $0xc0] sm:$0xff] %vm3349_vm3, %v3347_v44  ;;  %v4159_v1 = vld [vmem:[%s15896_s3 + $0x78] sm:$0xff]  ;;  %v4397_v41 = vld [vmem:[%s15896_s3 + $0xa0] sm:$0xff] }
 0x2e4   :  { %v11949_v19 = vpack.c.bf16 %v4160_v17, %v4159_v1  ;;  %v4154_v26 = vld [vmem:[#allocation3 + $0xe] sm:$0xff] }
 0x2e5   :  { %v3402_v6 = vld [vmem:[#allocation2 + $0xa0] ss:$2 sm:$0x7f]  ;;  %v3404_v43 = vld [vmem:[#allocation2 + $0xa1] ss:$2 sm:$0x7f] }
 0x2e6   :  { %v3405_v47 = vmax.f32 %v3402_v6, %v3404_v43  ;;  %v4280_v27 = vld [vmem:[%s15896_s3 + $0x9c] sm:$0xf]  ;;  %v4398_v6 = vld [vmem:[%s15896_s3 + $0xa8] sm:$0xff] }
 0x2e7   :  { %v11955_v44 = vpack.c.bf16 %v4398_v6, %v4397_v41  ;;  %v14287_v45 = vld [vmem:[%s15893_s0 + $0x159] sm:$0xff]  ;;  %v14376_v11 = vld [vmem:[%s15893_s0 + $0x1c1] sm:$0xff] }
 0x2e8   :  { %v13942_v36 = vld [vmem:[#allocation3 + $0x11] sm:$0xff]  ;;  %v3424_v48 = vrot.slane %v3405_v47, 5  ;;  %v4399_v47 = vld [vmem:[%s15896_s3 + $0xb0] sm:$0xf]  ;;  %v14371_v4 = vld [vmem:[%s15893_s0 + $0x1b9] sm:$0xff] }
 0x2e9   :  { %11152 = vmatmul.mubr.msk.f32.gmra.mrb[4].mxu1 %vm3349_vm3, %v13942_v36  ;;  %v13989_v31 = vld [vmem:[#allocation3 + $0x18] sm:$0xff] }
 0x2ea   :  { %11154 = vmatprep.mubr.msk.f32.mxu1 %vm12651_vm2, %v15937_v40  ;;  %v3437_v49 = vsel %vm3436_vm15, %v3421_v24, %v3424_v48  ;;  %v3407_v61 = vld [vmem:[#allocation2 + $0xc0] ss:$2 sm:$0x7f]  ;;  %v3409_v50 = vld [vmem:[#allocation2 + $0xc1] ss:$2 sm:$0x7f] }
 0x2eb   :  { %3444 = vst.msk [vmem:[#allocation3 + $0x20] sm:$0xff] %vm3349_vm3, %v3437_v49  ;;  %v3410_v20 = vmax.f32 %v3407_v61, %v3409_v50  ;;  %v3680_v46 = vld [vmem:[#allocation3 + $0x12] sm:$0xff]  ;;  %v4278_v24 = vld [vmem:[%s15896_s3 + $0x8c] sm:$0xff] }
 0x2ec   :  { %v14046_v7 = vld [vmem:[#allocation3 + $0x17] sm:$0xff]  ;;  %v11952_v10 = vpack.c.bf16 %v4279_v25, %v4278_v24  ;;  %v4624_v61 = vld [vmem:[%s15894_s1] sm:$0xf] }
 0x2ed   :  { %v3427_v52 = vrot.slane %v3410_v20, 6  ;;  %v4155_v60 = vld [vmem:[#allocation3 + $0x16] sm:$0xff] }
 0x2ee   :  { %v4625_v20 = vld [vmem:[%s15893_s0 + $0x101] sm:$0xff] }
 0x2ef   :  { %v3439_v54 = vsel %vm3438_vm4, %v3424_v48, %v3427_v52  ;;  %3447 = vst.msk [vmem:[#allocation3 + $0x30] sm:$0x1] %vm3446_vm5, %v3427_v52  ;;  %v4597_v25 = vld [vmem:[%s15893_s0 + $0x108] sm:$0xff] }
 0x2f0   :  { %3445 = vst.msk [vmem:[#allocation3 + $0x28] sm:$0xff] %vm3349_vm3, %v3439_v54  ;;  %v14215_v54 = vld [vmem:[%s15893_s0 + $0x111] sm:$0xff] }
 0x2f2   :  { %v13950_v53 = vld [vmem:[#allocation3 + $0x19] sm:$0xff]  ;;  %v3460_v22 = vld [vmem:[#allocation3 + $0x21] sm:$0x1]  ;;  %v3682_v51 = vld [vmem:[#allocation3 + $0x22] sm:$0x1] }
 0x2f3   :  { %11155 = vmatmul.mubr.msk.f32.gmra.mrb[6].mxu1 %vm3349_vm3, %v13950_v53  ;;  %v3452_v32 = vld [vmem:[#allocation3 + $0x20] sm:$0x1]  ;;  %v3801_v12 = vld [vmem:[#allocation3 + $0x27] sm:$0x1] }
 0x2f4   :  { %11157 = vmatprep.mubr.msk.f32.mxu1 %vm12651_vm2, %v15937_v40  ;;  %v3681_v62 = vld [vmem:[#allocation3 + $0x1a] sm:$0xff] }
 0x2f5   :  { %v14052_v8 = vld [vmem:[#allocation3 + $0x1f] sm:$0xff] }
 0x2f6   :  { %v14085_v16 = vld [vmem:[#allocation3 + $0x20] sm:$0xff]  ;;  %v4396_v52 = vld [vmem:[#allocation3 + $0x30] sm:$0x1] }
 0x2f7   :  { %11158 = vmatmul.mubr.msk.f32.gmra.mrb[8].mxu1 %vm3349_vm3, %v3460_v22  ;;  %v3920_v18 = vld [vmem:[#allocation3 + $0x28] sm:$0x1]  ;;  %v4156_v28 = vld [vmem:[#allocation3 + $0x1e] sm:$0xff]  ;;  %v4158_v43 = vld [vmem:[#allocation3 + $0x2e] sm:$0x1] }
 0x2f8   :  { %11166 = vmatprep.mubr.msk.f32.mxu1 %vm12651_vm2, %v15937_v40  ;;  %v4038_v23 = vld [vmem:[#allocation3 + $0x21] sm:$0xff]  ;;  %v4277_v49 = vld [vmem:[#allocation3 + $0x2f] sm:$0x1]  ;;  %v14234_v22 = vld [vmem:[%s15893_s0 + $0x121] sm:$0xff] }
 0x2f9   :  { %v4157_v29 = vld [vmem:[#allocation3 + $0x26] sm:$0xff] }
 0x2fa   :  { %v4276_v48 = vld [vmem:[#allocation3 + $0x27] sm:$0xff] }
 0x2fb   :  { %11167 = vmatmul.mubr.msk.f32.vlgmr.msra.gmra.mrb[10].mxu1 %vm3349_vm3, %v3448_v57  ;;  %v4395_v50 = vld [vmem:[#allocation3 + $0x28] sm:$0xff] }
 0x2fc   :  { %11938 = vmatpush3.bf16.msra.mxu1 %v11937_v42  ;;  %11169 = vmatprep.mubr.msk.f32.mxu1 %vm12651_vm2, %v15937_v40  ;;  %v14245_v42 = vld [vmem:[%s15893_s0 + $0x129] sm:$0xff]  ;;  %v14250_v57 = vld [vmem:[%s15893_s0 + $0x131] sm:$0xff] }
 0x2fd   :  { %11185 = vmatprep.subr.mxu1 %v15937_v40 }
 0x2ff   :  { %11170 = vmatmul.mubr.msk.f32.gmra.mrb[12].mxu1 %vm3349_vm3, %v13975_v3 }
 0x300   :  { %11172 = vmatprep.mubr.msk.f32.mxu1 %vm12651_vm2, %v15937_v40  ;;  %11186 = vmatpush3.msk.msra.mxu1 %vm176_vm0, %v3685_v58  ;;  %v14259_v58 = vld [vmem:[%s15893_s0 + $0x139] sm:$0xff] }
 0x301   :  { %11939 = vmatprep.subr.bf16.mxu1 %v15939_v39 }
 0x303   :  { %11173 = vmatmul.mubr.msk.f32.gmra.mrb[14].mxu1 %vm3349_vm3, %v13983_v30 }
 0x304   :  { %11175 = vmatprep.mubr.msk.f32.mxu1 %vm12651_vm2, %v15937_v40 }
 0x307   :  { %11176 = vmatmul.mubr.msk.f32.gmra.mrb[16].mxu1 %vm3349_vm3, %v13989_v31 }
 0x308   :  { %11178 = vmatprep.mubr.msk.f32.mxu1 %vm12651_vm2, %v15937_v40 }
 0x30b   :  { %11179 = vmatmul.mubr.msk.f32.gmra.mrb[18].mxu1 %vm3349_vm3, %v3452_v32  ;;  %v14301_v32 = vld [vmem:[%s15893_s0 + $0x169] sm:$0xff] }
 0x30c   :  { %11187 = vmatprep.mubr.msk.f32.mxu1 %vm12651_vm2, %v15937_v40 }
 0x30f   :  { %11188 = vmatmul.mubr.msk.f32.vlgmr.msra.gmra.mrb[20].mxu1 %vm3349_vm3, %v3678_v35 }
 0x310   :  { %11941 = vmatpush3.bf16.msra.mxu1 %v11940_v33  ;;  %11190 = vmatprep.mubr.msk.f32.mxu1 %vm12651_vm2, %v15937_v40  ;;  %v14306_v33 = vld [vmem:[%s15893_s0 + $0x171] sm:$0xff] }
 0x311   :  { %11206 = vmatprep.subr.mxu1 %v15937_v40 }
 0x313   :  { %11191 = vmatmul.mubr.msk.f32.gmra.mrb[22].mxu1 %vm3349_vm3, %v3679_v63  ;;  %v14315_v63 = vld [vmem:[%s15893_s0 + $0x179] sm:$0xff] }
 0x314   :  { %11193 = vmatprep.mubr.msk.f32.mxu1 %vm12651_vm2, %v15937_v40  ;;  %11207 = vmatpush3.msk.msra.mxu1 %vm176_vm0, %v3804_v5 }
 0x315   :  { %11942 = vmatprep.subr.bf16.mxu1 %v15939_v39 }
 0x317   :  { %11194 = vmatmul.mubr.msk.f32.gmra.mrb[24].mxu1 %vm3349_vm3, %v3680_v46  ;;  %v14320_v46 = vld [vmem:[%s15893_s0 + $0x181] sm:$0xff] }
 0x318   :  { %11196 = vmatprep.mubr.msk.f32.mxu1 %vm12651_vm2, %v15937_v40 }
 0x31b   :  { %11197 = vmatmul.mubr.msk.f32.gmra.mrb[26].mxu1 %vm3349_vm3, %v3681_v62 }
 0x31c   :  { %11199 = vmatprep.mubr.msk.f32.mxu1 %vm12651_vm2, %v15937_v40 }
 0x31f   :  { %11200 = vmatmul.mubr.msk.f32.gmra.mrb[28].mxu1 %vm3349_vm3, %v3682_v51  ;;  %v14334_v51 = vld [vmem:[%s15893_s0 + $0x191] sm:$0xff] }
 0x320   :  { %11208 = vmatprep.mubr.msk.f32.mxu1 %vm12651_vm2, %v15937_v40 }
 0x323   :  { %11209 = vmatmul.mubr.msk.f32.vlgmr.msra.gmra.mrb[30].mxu1 %vm3349_vm3, %v3797_v37  ;;  %v14343_v37 = vld [vmem:[%s15893_s0 + $0x199] sm:$0xff] }
 0x324   :  { %11944 = vmatpush3.bf16.msra.mxu1 %v11943_v34  ;;  %11211 = vmatprep.mubr.msk.f32.mxu1 %vm12651_vm2, %v15937_v40 }
 0x325   :  { %11227 = vmatprep.subr.mxu1 %v15937_v40 }
 0x327   :  { %11212 = vmatmul.mubr.msk.f32.gmra.mrb[32].mxu1 %vm3349_vm3, %v14038_v38 }
 0x328   :  { %11214 = vmatprep.mubr.msk.f32.mxu1 %vm12651_vm2, %v15937_v40  ;;  %11228 = vmatpush3.msk.msra.mxu1 %vm176_vm0, %v3923_v2 }
 0x329   :  { %11945 = vmatprep.subr.bf16.mxu1 %v15939_v39 }
 0x32b   :  { %11215 = vmatmul.mubr.msk.f32.gmra.mrb[34].mxu1 %vm3349_vm3, %v14046_v7 }
 0x32c   :  { %11217 = vmatprep.mubr.msk.f32.mxu1 %vm12651_vm2, %v15937_v40 }
 0x32f   :  { %11218 = vmatmul.mubr.msk.f32.gmra.mrb[36].mxu1 %vm3349_vm3, %v14052_v8 }
 0x330   :  { %11220 = vmatprep.mubr.msk.f32.mxu1 %vm12651_vm2, %v15937_v40 }
 0x333   :  { %11221 = vmatmul.mubr.msk.f32.gmra.mrb[38].mxu1 %vm3349_vm3, %v3801_v12 }
 0x334   :  { %11229 = vmatprep.mubr.msk.f32.mxu1 %vm12651_vm2, %v15937_v40 }
 0x337   :  { %11230 = vmatmul.mubr.msk.f32.vlgmr.msra.gmra.mrb[40].mxu1 %vm3349_vm3, %v13975_v3  ;;  %v14264_v3 = vld [vmem:[%s15893_s0 + $0x141] sm:$0xff] }
 0x338   :  { %11947 = vmatpush3.bf16.msra.mxu1 %v11946_v13  ;;  %11232 = vmatprep.mubr.msk.f32.mxu1 %vm12651_vm2, %v15937_v40 }
 0x339   :  { %11248 = vmatprep.subr.mxu1 %v15937_v40 }
 0x33b   :  { %11233 = vmatmul.mubr.msk.f32.gmra.mrb[42].mxu1 %vm3349_vm3, %v13983_v30 }
 0x33c   :  { %11235 = vmatprep.mubr.msk.f32.mxu1 %vm12651_vm2, %v15937_v40  ;;  %11249 = vmatpush3.msk.msra.mxu1 %vm176_vm0, %v4042_v14  ;;  %v14385_v14 = vld [vmem:[%s15893_s0 + $0x1c9] sm:$0xff] }
 0x33d   :  { %11948 = vmatprep.subr.bf16.mxu1 %v15939_v39 }
 0x33f   :  { %11236 = vmatmul.mubr.msk.f32.gmra.mrb[44].mxu1 %vm3349_vm3, %v13989_v31 }
 0x340   :  { %11238 = vmatprep.mubr.msk.f32.mxu1 %vm12651_vm2, %v15937_v40 }
 0x343   :  { %11239 = vmatmul.mubr.msk.f32.gmra.mrb[46].mxu1 %vm3349_vm3, %v14085_v16 }
 0x344   :  { %11241 = vmatprep.mubr.msk.f32.mxu1 %vm12651_vm2, %v15937_v40 }
 0x347   :  { %11242 = vmatmul.mubr.msk.f32.gmra.mrb[48].mxu1 %vm3349_vm3, %v3920_v18  ;;  %v4652_v18 = vld [vmem:[%s15893_s0 + $0x1d9] sm:$0x3f] }
 0x348   :  { %11250 = vmatprep.mubr.msk.f32.mxu1 %vm12651_vm2, %v15937_v40 }
 0x34b   :  { %11251 = vmatmul.mubr.msk.f32.vlgmr.msra.gmra.mrb[50].mxu1 %vm3349_vm3, %v13923_v9  ;;  %v4039_v9 = vld [vmem:[#allocation3 + $0x29] sm:$0x1] }
 0x34c   :  { %11950 = vmatpush3.bf16.msra.mxu1 %v11949_v19  ;;  %11253 = vmatprep.mubr.msk.f32.mxu1 %vm12651_vm2, %v15937_v40  ;;  %v4596_v19 = vld [vmem:[%s15893_s0 + $0x100] sm:$0xff] }
 0x34d   :  { %11269 = vmatprep.subr.mxu1 %v15937_v40 }
 0x34f   :  { %11254 = vmatmul.mubr.msk.f32.gmra.mrb[52].mxu1 %vm3349_vm3, %v13942_v36  ;;  %v4653_v36 = vld [vmem:[%s15894_s1 + $0x4] sm:$0xf] }
 0x350   :  { %11256 = vmatprep.mubr.msk.f32.mxu1 %vm12651_vm2, %v15937_v40  ;;  %11270 = vmatpush3.msk.msra.mxu1 %vm176_vm0, %v4161_v21 }
 0x351   :  { %11951 = vmatprep.subr.bf16.mxu1 %v15939_v39 }
 0x353   :  { %11257 = vmatmul.mubr.msk.f32.gmra.mrb[54].mxu1 %vm3349_vm3, %v13950_v53  ;;  %v4626_v53 = vld [vmem:[%s15893_s0 + $0x109] sm:$0xff] }
 0x354   :  { %11259 = vmatprep.mubr.msk.f32.mxu1 %vm12651_vm2, %v15937_v40 }
 0x357   :  { %11260 = vmatmul.mubr.msk.f32.gmra.mrb[56].mxu1 %vm3349_vm3, %v4038_v23 }
 0x358   :  { %11262 = vmatprep.mubr.msk.f32.mxu1 %vm12651_vm2, %v15937_v40 }
 0x35b   :  { %11263 = vmatmul.mubr.msk.f32.gmra.mrb[58].mxu1 %vm3349_vm3, %v4039_v9  ;;  %v14410_v9 = vld [vmem:[%s15893_s0 + $0x110] sm:$0xff] }
 0x35c   :  { %11271 = vmatprep.mubr.msk.f32.mxu1 %vm12651_vm2, %v15937_v40 }
 0x35f   :  { %11272 = vmatmul.mubr.msk.f32.vlgmr.msra.gmra.mrb[60].mxu1 %vm3349_vm3, %v4154_v26  ;;  %v14415_v26 = vld [vmem:[%s15894_s1 + $0xc] sm:$0xf] }
 0x360   :  { %11953 = vmatpush3.bf16.msra.mxu1 %v11952_v10  ;;  %11274 = vmatprep.mubr.msk.f32.mxu1 %vm12651_vm2, %v15937_v40 }
 0x361   :  { %11290 = vmatprep.subr.mxu1 %v15937_v40 }
 0x363   :  { %11275 = vmatmul.mubr.msk.f32.gmra.mrb[62].mxu1 %vm3349_vm3, %v4155_v60 }
 0x364   :  { %11277 = vmatprep.mubr.msk.f32.mxu1 %vm12651_vm2, %v15937_v40  ;;  %11291 = vmatpush3.msk.msra.mxu1 %vm176_vm0, %v4280_v27 }
 0x365   :  { %11954 = vmatprep.subr.bf16.mxu1 %v15939_v39 }
 0x367   :  { %11278 = vmatmul.mubr.msk.f32.gmra.mrb[64].mxu1 %vm3349_vm3, %v4156_v28  ;;  %v14425_v28 = vld [vmem:[%s15893_s0 + $0x118] sm:$0xff] }
 0x368   :  { %11280 = vmatprep.mubr.msk.f32.mxu1 %vm12651_vm2, %v15937_v40 }
 0x36b   :  { %11281 = vmatmul.mubr.msk.f32.gmra.mrb[66].mxu1 %vm3349_vm3, %v4157_v29  ;;  %v14430_v29 = vld [vmem:[%s15893_s0 + $0x120] sm:$0xff] }
 0x36c   :  { %11283 = vmatprep.mubr.msk.f32.mxu1 %vm12651_vm2, %v15937_v40 }
 0x36f   :  { %11284 = vmatmul.mubr.msk.f32.gmra.mrb[68].mxu1 %vm3349_vm3, %v4158_v43 }
 0x370   :  { %11292 = vmatprep.mubr.msk.f32.mxu1 %vm12651_vm2, %v15937_v40 }
 0x373   :  { %11293 = vmatmul.mubr.msk.f32.vlgmr.msra.gmra.mrb[70].mxu1 %vm3349_vm3, %v14038_v38  ;;  %v14348_v38 = vld [vmem:[%s15893_s0 + $0x1a1] sm:$0xff] }
 0x374   :  { %11956 = vmatpush3.bf16.msra.mxu1 %v11955_v44  ;;  %11295 = vmatprep.mubr.msk.f32.mxu1 %vm12651_vm2, %v15937_v40  ;;  %v14441_v44 = vld [vmem:[%s15893_s0 + $0x128] sm:$0xff] }
 0x375   :  { %11311 = vmatprep.subr.mxu1 %v15937_v40 }
 0x377   :  { %11296 = vmatmul.mubr.msk.f32.gmra.mrb[72].mxu1 %vm3349_vm3, %v14046_v7  ;;  %v14357_v7 = vld [vmem:[%s15893_s0 + $0x1a9] sm:$0xff] }
 0x378   :  { %11298 = vmatprep.mubr.msk.f32.mxu1 %vm12651_vm2, %v15937_v40  ;;  %11312 = vmatpush3.msk.msra.mxu1 %vm176_vm0, %v4399_v47  ;;  %v14446_v47 = vld [vmem:[%s15893_s0 + $0x130] sm:$0xff] }
 0x379   :  { %11328 = vmatprep.subr.msk.mxu1 %vm176_vm0, %v4653_v36 }
 0x37b   :  { %11299 = vmatmul.mubr.msk.f32.gmra.mrb[74].mxu1 %vm3349_vm3, %v14052_v8  ;;  %v14362_v8 = vld [vmem:[%s15893_s0 + $0x1b1] sm:$0xff] }
 0x37c   :  { %11301 = vmatprep.mubr.msk.f32.mxu1 %vm12651_vm2, %v15937_v40 }
 0x37f   :  { %11302 = vmatmul.mubr.msk.f32.gmra.mrb[76].mxu1 %vm3349_vm3, %v4276_v48 }
 0x380   :  { %11304 = vmatprep.mubr.msk.f32.mxu1 %vm12651_vm2, %v15937_v40 }
 0x383   :  { %11305 = vmatmul.mubr.msk.f32.gmra.mrb[78].mxu1 %vm3349_vm3, %v4277_v49 }
 0x384   :  { %11313 = vmatprep.mubr.msk.f32.mxu1 %vm12651_vm2, %v15937_v40 }
 0x387   :  { %11314 = vmatmul.mubr.msk.f32.vlgmr.msra.gmra.mrb[80].mxu1 %vm3349_vm3, %v13983_v30  ;;  %v14273_v30 = vld [vmem:[%s15893_s0 + $0x149] sm:$0xff] }
 0x388   :  { %11329 = vmatpush3.msk.msra.mxu1 %vm176_vm0, %v4653_v36  ;;  %11316 = vmatprep.mubr.msk.f32.mxu1 %vm12651_vm2, %v15937_v40 }
 0x389   :  { %11372 = vmatprep.subr.msk.mxu1 %vm176_vm0, %v4624_v61 }
 0x38b   :  { %11317 = vmatmul.mubr.msk.f32.gmra.mrb[82].mxu1 %vm3349_vm3, %v13989_v31  ;;  %v14278_v31 = vld [vmem:[%s15893_s0 + $0x151] sm:$0xff] }
 0x38c   :  { %11319 = vmatprep.mubr.msk.f32.mxu1 %vm12651_vm2, %v15937_v40 }
 0x38f   :  { %11320 = vmatmul.mubr.msk.f32.gmra.mrb[84].mxu1 %vm3349_vm3, %v14085_v16  ;;  %v14390_v16 = vld [vmem:[%s15893_s0 + $0x1d1] sm:$0xff] }
 0x390   :  { %11322 = vmatprep.mubr.msk.f32.mxu1 %vm12651_vm2, %v15937_v40 }
 0x393   :  { %11323 = vmatmul.mubr.msk.f32.gmra.mrb[86].mxu1 %vm3349_vm3, %v4395_v50  ;;  %v14460_v50 = vld [vmem:[%s15893_s0 + $0x140] sm:$0xff] }
 0x394   :  { %11325 = vmatprep.mubr.msk.f32.mxu1 %vm12651_vm2, %v15937_v40  ;;  %v14611_v40 = vld [vmem:[%s15894_s1 + $0x10] sm:$0xf] }
 0x397   :  { %11326 = vmatmul.mubr.msk.f32.gmra.mrb[88].mxu1 %vm3349_vm3, %v4396_v52 }
 0x398   :  { %11330 = vmatprep.mubr.msk.f32.mxu1 %vm91_vm1, %v4625_v20 }
 0x39b   :  { %11331 = vmatmul.mubr.msk.f32.vlgmr.msra.gmra.mrb[90].mxu1 %vm91_vm1, %v4626_v53  ;;  %v14469_v53 = vld [vmem:[%s15893_s0 + $0x148] sm:$0xff] }
 0x39c   :  { %11373 = vmatpush3.msk.msra.mxu1 %vm176_vm0, %v4624_v61  ;;  %11333 = vmatprep.mubr.msk.f32.mxu1 %vm91_vm1, %v14215_v54  ;;  %v14455_v61 = vld [vmem:[%s15893_s0 + $0x138] sm:$0xff] }
 0x39d   :  { %11416 = vmatprep.subr.msk.mxu1 %vm176_vm0, %v14220_v55 }
 0x39f   :  { %11334 = vmatmul.mubr.msk.f32.gmra.mrb[92].mxu1 %vm91_vm1, %v14229_v56 }
 0x3a0   :  { %11336 = vmatprep.mubr.msk.f32.mxu1 %vm91_vm1, %v14234_v22 }
 0x3a3   :  { %11337 = vmatmul.mubr.msk.f32.gmra.mrb[94].mxu1 %vm91_vm1, %v14245_v42 }
 0x3a4   :  { %11339 = vmatprep.mubr.msk.f32.mxu1 %vm91_vm1, %v14250_v57 }
 0x3a7   :  { %11340 = vmatmul.mubr.msk.f32.gmra.mrb[96].mxu1 %vm91_vm1, %v14259_v58 }
 0x3a8   :  { %11342 = vmatprep.mubr.msk.f32.mxu1 %vm91_vm1, %v14264_v3 }
 0x3ab   :  { %11343 = vmatmul.mubr.msk.f32.gmra.mrb[98].mxu1 %vm91_vm1, %v14273_v30 }
 0x3ac   :  { %11345 = vmatprep.mubr.msk.f32.mxu1 %vm91_vm1, %v14278_v31 }
 0x3af   :  { %11346 = vmatmul.mubr.msk.f32.gmra.mrb[100].mxu1 %vm91_vm1, %v14287_v45  ;;  %v3548_v35 = vpop.f32.mrb[0].mxu1 }
 0x3b0   :  { %11348 = vmatprep.mubr.msk.f32.mxu1 %vm91_vm1, %v14292_v59  ;;  %v11147_v5 = vpop.f32.mrb[1].mxu1 }
 0x3b3   :  { %11349 = vmatmul.mubr.msk.f32.gmra.mrb[102].mxu1 %vm91_vm1, %v14301_v32  ;;  %v3553_v62 = vpop.f32.mrb[2].mxu1 }
 0x3b4   :  { %11351 = vmatprep.mubr.msk.f32.mxu1 %vm91_vm1, %v14306_v33  ;;  %v11150_v15 = vpop.f32.mrb[3].mxu1 }
 0x3b5   :  { %v14483_v15 = vld [vmem:[%s15893_s0 + $0x158] sm:$0xff] }
 0x3b7   :  { %11352 = vmatmul.mubr.msk.f32.gmra.mrb[104].mxu1 %vm91_vm1, %v14315_v63 }
 0x3b8   :  { %11354 = vmatprep.mubr.msk.f32.mxu1 %vm91_vm1, %v14320_v46 }
 0x3bb   :  { %11355 = vmatmul.mubr.msk.f32.gmra.mrb[106].mxu1 %vm91_vm1, %v14329_v0 }
 0x3bc   :  { %v3558_v34 = vpop.f32.mrb[4].mxu1  ;;  %11357 = vmatprep.mubr.msk.f32.mxu1 %vm91_vm1, %v14334_v51 }
 0x3bd   :  { %v11153_v2 = vpop.f32.mrb[5].mxu1 }
 0x3bf   :  { %11358 = vmatmul.mubr.msk.f32.gmra.mrb[108].mxu1 %vm91_vm1, %v14343_v37 }
 0x3c0   :  { %11360 = vmatprep.mubr.msk.f32.mxu1 %vm91_vm1, %v14348_v38 }
 0x3c3   :  { %11361 = vmatmul.mubr.msk.f32.gmra.mrb[110].mxu1 %vm91_vm1, %v14357_v7 }
 0x3c4   :  { %11363 = vmatprep.mubr.msk.f32.mxu1 %vm91_vm1, %v14362_v8 }
 0x3c6   :  { %v3563_v12 = vpop.f32.mrb[6].mxu1 }
 0x3c7   :  { %v11156_v13 = vpop.f32.mrb[7].mxu1  ;;  %11364 = vmatmul.mubr.msk.f32.gmra.mrb[112].mxu1 %vm91_vm1, %v14371_v4 }
 0x3c8   :  { %11366 = vmatprep.mubr.msk.f32.mxu1 %vm91_vm1, %v14376_v11 }
 0x3ca   :  { %v3568_v1 = vpop.f32.mrb[8].mxu1 }
 0x3cb   :  { %v11159_v17 = vpop.f32.mrb[9].mxu1  ;;  %11367 = vmatmul.mubr.msk.f32.gmra.mrb[114].mxu1 %vm91_vm1, %v14385_v14  ;;  %v14497_v1 = vld [vmem:[%s15893_s0 + $0x168] sm:$0xff] }
 0x3cc   :  { %11369 = vmatprep.mubr.msk.f32.mxu1 %vm91_vm1, %v14390_v16  ;;  %16039 = vst [vmem:[#allocation18_spill] sm:$0xff] %v14497_v1  ;;  %v14502_v17 = vld [vmem:[%s15893_s0 + $0x170] sm:$0xff] }
 0x3cd   :  { %16040 = vst [vmem:[#allocation19_spill] sm:$0xff] %v14502_v17 }
 0x3ce   :  { %v3655_v21 = vpop.f32.mrb[10].mxu1 }
 0x3cf   :  { %v3656_v23 = vadd.f32 %v3655_v21, %v3548_v35  ;;  %v11168_v24 = vpop.f32.mrb[11].mxu1  ;;  %11370 = vmatmul.mubr.msk.f32.gmra.mrb[116].mxu1 %vm91_vm1, %v4652_v18 }
 0x3d0   :  { %11374 = vmatprep.mubr.msk.f32.mxu1 %vm91_vm1, %v4596_v19  ;;  %v14516_v24 = vld [vmem:[%s15893_s0 + $0x180] sm:$0xff] }
 0x3d2   :  { %v3660_v10 = vpop.f32.mrb[12].mxu1 }
 0x3d3   :  { %v3661_v27 = vadd.f32 %v3660_v10, %v3553_v62  ;;  %v11171_v60 = vpop.f32.mrb[13].mxu1  ;;  %11375 = vmatmul.mubr.msk.f32.vlgmr.msra.gmra.mrb[90].mxu1 %vm91_vm1, %v4597_v25 }
 0x3d4   :  { %11417 = vmatpush3.msk.msra.mxu1 %vm176_vm0, %v14220_v55  ;;  %11377 = vmatprep.mubr.msk.f32.mxu1 %vm91_vm1, %v14410_v9  ;;  %v14474_v55 = vld [vmem:[%s15893_s0 + $0x150] sm:$0xff]  ;;  %v14525_v60 = vld [vmem:[%s15893_s0 + $0x188] sm:$0xff] }
 0x3d5   :  { %11460 = vmatprep.subr.msk.mxu1 %vm176_vm0, %v14415_v26  ;;  %16042 = vst [vmem:[#allocation22_spill] sm:$0xff] %v14525_v60 }
 0x3d6   :  { %v3665_v41 = vpop.f32.mrb[14].mxu1 }
 0x3d7   :  { %v3666_v6 = vadd.f32 %v3665_v41, %v3558_v34  ;;  %v11174_v43 = vpop.f32.mrb[15].mxu1  ;;  %11378 = vmatmul.mubr.msk.f32.gmra.mrb[92].mxu1 %vm91_vm1, %v14425_v28  ;;  %v14488_v34 = vld [vmem:[%s15893_s0 + $0x160] sm:$0xff]  ;;  %v14530_v41 = vld [vmem:[%s15893_s0 + $0x190] sm:$0xff] }
 0x3d8   :  { %11380 = vmatprep.mubr.msk.f32.mxu1 %vm91_vm1, %v14430_v29  ;;  %16043 = vst [vmem:[#allocation24_spill] sm:$0xff] %v14530_v41 }
 0x3da   :  { %v3670_v36 = vpop.f32.mrb[16].mxu1 }
 0x3db   :  { %v3671_v48 = vadd.f32 %v3670_v36, %v3563_v12  ;;  %v11177_v49 = vpop.f32.mrb[17].mxu1  ;;  %11381 = vmatmul.mubr.msk.f32.gmra.mrb[94].mxu1 %vm91_vm1, %v14441_v44  ;;  %v14539_v36 = vld [vmem:[%s15893_s0 + $0x198] sm:$0xff] }
 0x3dc   :  { %11383 = vmatprep.mubr.msk.f32.mxu1 %vm91_vm1, %v14446_v47 }
 0x3de   :  { %v3675_v20 = vpop.f32.mrb[18].mxu1 }
 0x3df   :  { %v11180_v52 = vpop.f32.mrb[19].mxu1  ;;  %11384 = vmatmul.mubr.msk.f32.gmra.mrb[96].mxu1 %vm91_vm1, %v14455_v61 }
 0x3e0   :  { %11386 = vmatprep.mubr.msk.f32.mxu1 %vm91_vm1, %v14460_v50 }
 0x3e2   :  { %v3770_v35 = vpop.f32.mrb[20].mxu1 }
 0x3e3   :  { %v3793_v5 = vadd.f32 %v3770_v35, %v3656_v23  ;;  %v11189_v62 = vpop.f32.mrb[21].mxu1  ;;  %11387 = vmatmul.mubr.msk.f32.gmra.mrb[98].mxu1 %vm91_vm1, %v14469_v53  ;;  %v14511_v23 = vld [vmem:[%s15893_s0 + $0x178] sm:$0xff]  ;;  %v14553_v35 = vld [vmem:[%s15893_s0 + $0x1a8] sm:$0xff] }
 0x3e4   :  { %11389 = vmatprep.mubr.msk.f32.mxu1 %vm91_vm1, %v14474_v55  ;;  %16041 = vst [vmem:[#allocation20_spill] sm:$0xff] %v14511_v23  ;;  %v14558_v62 = vld [vmem:[%s15893_s0 + $0x1b0] sm:$0xff] }
 0x3e6   :  { %v3775_v2 = vpop.f32.mrb[22].mxu1 }
 0x3e7   :  { %v3794_v12 = vadd.f32 %v3775_v2, %v3661_v27  ;;  %v11192_v13 = vpop.f32.mrb[23].mxu1  ;;  %11390 = vmatmul.mubr.msk.f32.gmra.mrb[100].mxu1 %vm91_vm1, %v14483_v15 }
 0x3e8   :  { %11392 = vmatprep.mubr.msk.f32.mxu1 %vm91_vm1, %v14488_v34 }
 0x3ea   :  { %v3780_v18 = vpop.f32.mrb[24].mxu1 }
 0x3eb   :  { %v3795_v19 = vadd.f32 %v3780_v18, %v3666_v6  ;;  %v11195_v21 = vpop.f32.mrb[25].mxu1  ;;  %11393 = vmatmul.mubr.msk.f32.gmra.mrb[102].mxu1 %vm91_vm1, %v14497_v1  ;;  %v14567_v18 = vld [vmem:[%s15893_s0 + $0x1b8] sm:$0xff] }
 0x3ec   :  { %11395 = vmatprep.mubr.msk.f32.mxu1 %vm91_vm1, %v14502_v17  ;;  %v14572_v21 = vld [vmem:[%s15893_s0 + $0x1c0] sm:$0xff] }
 0x3ee   :  { %v3785_v25 = vpop.f32.mrb[26].mxu1 }
 0x3ef   :  { %v3796_v10 = vadd.f32 %v3785_v25, %v3671_v48  ;;  %v11198_v27 = vpop.f32.mrb[27].mxu1  ;;  %11396 = vmatmul.mubr.msk.f32.gmra.mrb[104].mxu1 %vm91_vm1, %v14511_v23  ;;  %v14544_v48 = vld [vmem:[%s15893_s0 + $0x1a0] sm:$0xff] }
 0x3f0   :  { %11398 = vmatprep.mubr.msk.f32.mxu1 %vm91_vm1, %v14516_v24 }
 0x3f2   :  { %v3790_v6 = vpop.f32.mrb[28].mxu1 }
 0x3f3   :  { %v11201_v43 = vpop.f32.mrb[29].mxu1  ;;  %11399 = vmatmul.mubr.msk.f32.gmra.mrb[106].mxu1 %vm91_vm1, %v14525_v60  ;;  %v14581_v6 = vld [vmem:[%s15893_s0 + $0x1c8] sm:$0xff] }
 0x3f4   :  { %11401 = vmatprep.mubr.msk.f32.mxu1 %vm91_vm1, %v14530_v41  ;;  %v14586_v43 = vld [vmem:[%s15893_s0 + $0x1d0] sm:$0xff] }
 0x3f6   :  { %v3889_v49 = vpop.f32.mrb[30].mxu1 }
 0x3f7   :  { %v3912_v20 = vadd.f32 %v3889_v49, %v3793_v5  ;;  %v11210_v52 = vpop.f32.mrb[31].mxu1  ;;  %11402 = vmatmul.mubr.msk.f32.gmra.mrb[108].mxu1 %vm91_vm1, %v14539_v36 }
 0x3f8   :  { %11404 = vmatprep.mubr.msk.f32.mxu1 %vm91_vm1, %v14544_v48 }
 0x3fa   :  { %v3894_v2 = vpop.f32.mrb[32].mxu1 }
 0x3fb   :  { %v3913_v13 = vadd.f32 %v3894_v2, %v3794_v12  ;;  %v11213_v5 = vpop.f32.mrb[33].mxu1  ;;  %11405 = vmatmul.mubr.msk.f32.gmra.mrb[110].mxu1 %vm91_vm1, %v14553_v35  ;;  %v4623_v2 = vld [vmem:[%s15893_s0 + $0x1d8] sm:$0x3f] }
 0x3fc   :  { %11407 = vmatprep.mubr.msk.f32.mxu1 %vm91_vm1, %v14558_v62  ;;  %v5238_v5 = vld [vmem:[%s15893_s0 + $0x102] sm:$0xff] }
 0x3fe   :  { %v3899_v25 = vpop.f32.mrb[34].mxu1 }
 0x3ff   :  { %v3914_v27 = vadd.f32 %v3899_v25, %v3795_v19  ;;  %v11216_v12 = vpop.f32.mrb[35].mxu1  ;;  %11408 = vmatmul.mubr.msk.f32.gmra.mrb[112].mxu1 %vm91_vm1, %v14567_v18 }
 0x400   :  { %11410 = vmatprep.mubr.msk.f32.mxu1 %vm91_vm1, %v14572_v21 }
 0x402   :  { %v3904_v49 = vpop.f32.mrb[36].mxu1 }
 0x403   :  { %v3915_v52 = vadd.f32 %v3904_v49, %v3796_v10  ;;  %v11219_v19 = vpop.f32.mrb[37].mxu1  ;;  %11411 = vmatmul.mubr.msk.f32.gmra.mrb[114].mxu1 %vm91_vm1, %v14581_v6  ;;  %v5239_v10 = vld [vmem:[%s15893_s0 + $0x10a] sm:$0xff]  ;;  %v14606_v49 = vld [vmem:[%s15893_s0 + $0x112] sm:$0xff] }
 0x404   :  { %11413 = vmatprep.mubr.msk.f32.mxu1 %vm91_vm1, %v14586_v43  ;;  %16044 = vst [vmem:[#allocation25_spill] sm:$0xff] %v14606_v49 }
 0x406   :  { %v3909_v25 = vpop.f32.mrb[38].mxu1 }
 0x407   :  { %v11222_v12 = vpop.f32.mrb[39].mxu1  ;;  %11414 = vmatmul.mubr.msk.f32.gmra.mrb[116].mxu1 %vm91_vm1, %v4623_v2  ;;  %v14621_v2 = vld [vmem:[%s15893_s0 + $0x11a] sm:$0xff] }
 0x408   :  { %11418 = vmatprep.mubr.msk.f32.mxu1 %vm91_vm1, %v5238_v5  ;;  %16045 = vst [vmem:[#allocation8_spill] sm:$0xff] %v14621_v2  ;;  %v14626_v5 = vld [vmem:[%s15893_s0 + $0x122] sm:$0xff] }
 0x409   :  { %16046 = vst [vmem:[#allocation9_spill] sm:$0xff] %v14626_v5 }
 0x40a   :  { %v4008_v19 = vpop.f32.mrb[40].mxu1 }
 0x40b   :  { %v4031_v25 = vadd.f32 %v4008_v19, %v3912_v20  ;;  %v11231_v12 = vpop.f32.mrb[41].mxu1  ;;  %11419 = vmatmul.mubr.msk.f32.vlgmr.msra.gmra.mrb[90].mxu1 %vm91_vm1, %v5239_v10 }
 0x40c   :  { %11461 = vmatpush3.msk.msra.mxu1 %vm176_vm0, %v14415_v26  ;;  %11421 = vmatprep.mubr.msk.f32.mxu1 %vm91_vm1, %v14606_v49  ;;  %v14637_v26 = vld [vmem:[%s15893_s0 + $0x12a] sm:$0xff]  ;;  %v14642_v12 = vld [vmem:[%s15893_s0 + $0x132] sm:$0xff] }
 0x40d   :  { %11504 = vmatprep.subr.msk.mxu1 %vm176_vm0, %v14611_v40  ;;  %16047 = vst [vmem:[#allocation10_spill] sm:$0xff] %v14637_v26  ;;  %16048 = vst [vmem:[#allocation11_spill] sm:$0xff] %v14642_v12 }
 0x40e   :  { %v4013_v20 = vpop.f32.mrb[42].mxu1 }
 0x40f   :  { %v4032_v10 = vadd.f32 %v4013_v20, %v3913_v13  ;;  %v11234_v19 = vpop.f32.mrb[43].mxu1  ;;  %11422 = vmatmul.mubr.msk.f32.gmra.mrb[92].mxu1 %vm91_vm1, %v14621_v2  ;;  %v14651_v20 = vld [vmem:[%s15893_s0 + $0x13a] sm:$0xff] }
 0x410   :  { %11424 = vmatprep.mubr.msk.f32.mxu1 %vm91_vm1, %v14626_v5  ;;  %16049 = vst [vmem:[#allocation12_spill] sm:$0xff] %v14651_v20  ;;  %v14656_v19 = vld [vmem:[%s15893_s0 + $0x142] sm:$0xff] }
 0x411   :  { %16050 = vst [vmem:[#allocation13_spill] sm:$0xff] %v14656_v19 }
 0x412   :  { %v4018_v39 = vpop.f32.mrb[44].mxu1 }
 0x413   :  { %v4033_v49 = vadd.f32 %v4018_v39, %v3914_v27  ;;  %v11237_v13 = vpop.f32.mrb[45].mxu1  ;;  %11425 = vmatmul.mubr.msk.f32.gmra.mrb[94].mxu1 %vm91_vm1, %v14637_v26  ;;  %v14665_v27 = vld [vmem:[%s15893_s0 + $0x14a] sm:$0xff] }
 0x414   :  { %11427 = vmatprep.mubr.msk.f32.mxu1 %vm91_vm1, %v14642_v12  ;;  %16051 = vst [vmem:[#allocation14_spill] sm:$0xff] %v14665_v27  ;;  %v14670_v13 = vld [vmem:[%s15893_s0 + $0x152] sm:$0xff] }
 0x415   :  { %16052 = vst [vmem:[#allocation15_spill] sm:$0xff] %v14670_v13 }
 0x416   :  { %v4023_v5 = vpop.f32.mrb[46].mxu1 }
 0x417   :  { %v4034_v2 = vadd.f32 %v4023_v5, %v3915_v52  ;;  %v11240_v39 = vpop.f32.mrb[47].mxu1  ;;  %11428 = vmatmul.mubr.msk.f32.gmra.mrb[96].mxu1 %vm91_vm1, %v14651_v20  ;;  %v14679_v52 = vld [vmem:[%s15893_s0 + $0x15a] sm:$0xff]  ;;  %v14684_v5 = vld [vmem:[%s15893_s0 + $0x162] sm:$0xff] }
 0x418   :  { %11430 = vmatprep.mubr.msk.f32.mxu1 %vm91_vm1, %v14656_v19  ;;  %16053 = vst [vmem:[#allocation16_spill] sm:$0xff] %v14679_v52  ;;  %16054 = vst [vmem:[#allocation17_spill] sm:$0xff] %v14684_v5 }
 0x41a   :  { %v4028_v12 = vpop.f32.mrb[48].mxu1 }
 0x41b   :  { %v11243_v26 = vpop.f32.mrb[49].mxu1  ;;  %11431 = vmatmul.mubr.msk.f32.gmra.mrb[98].mxu1 %vm91_vm1, %v14665_v27 }
 0x41c   :  { %11433 = vmatprep.mubr.msk.f32.mxu1 %vm91_vm1, %v14670_v13  ;;  %v14693_v26 = vld [vmem:[%s15893_s0 + $0x16a] sm:$0xff]  ;;  %v14698_v13 = vld [vmem:[%s15893_s0 + $0x172] sm:$0xff] }
 0x41d   :  { %16055 = vst [vmem:[#allocation21_spill] sm:$0xff] %v14693_v26  ;;  %16056 = vst [vmem:[#allocation23_spill] sm:$0xff] %v14698_v13 }
 0x41e   :  { %v4127_v39 = vpop.f32.mrb[50].mxu1 }
 0x41f   :  { %v4150_v19 = vadd.f32 %v4127_v39, %v4031_v25  ;;  %v11252_v12 = vpop.f32.mrb[51].mxu1  ;;  %11434 = vmatmul.mubr.msk.f32.gmra.mrb[100].mxu1 %vm91_vm1, %v14679_v52  ;;  %v14707_v39 = vld [vmem:[%s15893_s0 + $0x17a] sm:$0xff] }
 0x420   :  { %11436 = vmatprep.mubr.msk.f32.mxu1 %vm91_vm1, %v14684_v5  ;;  %16057 = vst [vmem:[#allocation26_spill] sm:$0xff] %v14707_v39  ;;  %v14712_v12 = vld [vmem:[%s15893_s0 + $0x182] sm:$0xff] }
 0x421   :  { %16058 = vst [vmem:[#allocation27_spill] sm:$0xff] %v14712_v12 }
 0x422   :  { %v4132_v27 = vpop.f32.mrb[52].mxu1 }
 0x423   :  { %v4151_v20 = vadd.f32 %v4132_v27, %v4032_v10  ;;  %v11255_v25 = vpop.f32.mrb[53].mxu1  ;;  %11437 = vmatmul.mubr.msk.f32.gmra.mrb[102].mxu1 %vm91_vm1, %v14693_v26  ;;  %v14721_v27 = vld [vmem:[%s15893_s0 + $0x18a] sm:$0xff] }
 0x424   :  { %11439 = vmatprep.mubr.msk.f32.mxu1 %vm91_vm1, %v14698_v13  ;;  %16059 = vst [vmem:[#allocation28_spill] sm:$0xff] %v14721_v27  ;;  %v14726_v25 = vld [vmem:[%s15893_s0 + $0x192] sm:$0xff] }
 0x425   :  { %16060 = vst [vmem:[#allocation29_spill] sm:$0xff] %v14726_v25 }
 0x426   :  { %v4137_v5 = vpop.f32.mrb[54].mxu1 }
 0x427   :  { %v4152_v52 = vadd.f32 %v4137_v5, %v4033_v49  ;;  %v11258_v10 = vpop.f32.mrb[55].mxu1  ;;  %11440 = vmatmul.mubr.msk.f32.gmra.mrb[104].mxu1 %vm91_vm1, %v14707_v39  ;;  %v14735_v5 = vld [vmem:[%s15893_s0 + $0x19a] sm:$0xff] }
 0x428   :  { %11442 = vmatprep.mubr.msk.f32.mxu1 %vm91_vm1, %v14712_v12  ;;  %16061 = vst [vmem:[#allocation30_spill] sm:$0xff] %v14735_v5  ;;  %v14740_v10 = vld [vmem:[%s15893_s0 + $0x1a2] sm:$0xff] }
 0x429   :  { %16062 = vst [vmem:[#allocation31_spill] sm:$0xff] %v14740_v10 }
 0x42a   :  { %v4142_v13 = vpop.f32.mrb[56].mxu1 }
 0x42b   :  { %v4153_v26 = vadd.f32 %v4142_v13, %v4034_v2  ;;  %v11261_v49 = vpop.f32.mrb[57].mxu1  ;;  %11443 = vmatmul.mubr.msk.f32.gmra.mrb[106].mxu1 %vm91_vm1, %v14721_v27  ;;  %v14749_v2 = vld [vmem:[%s15893_s0 + $0x1aa] sm:$0xff]  ;;  %v14754_v13 = vld [vmem:[%s15893_s0 + $0x1b2] sm:$0xff] }
 0x42c   :  { %11445 = vmatprep.mubr.msk.f32.mxu1 %vm91_vm1, %v14726_v25  ;;  %16063 = vst [vmem:[#allocation32_spill] sm:$0xff] %v14749_v2  ;;  %16064 = vst [vmem:[#allocation33_spill] sm:$0xff] %v14754_v13 }
 0x42e   :  { %v4147_v12 = vpop.f32.mrb[58].mxu1 }
 0x42f   :  { %v11264_v39 = vpop.f32.mrb[59].mxu1  ;;  %11446 = vmatmul.mubr.msk.f32.gmra.mrb[108].mxu1 %vm91_vm1, %v14735_v5 }
 0x430   :  { %11448 = vmatprep.mubr.msk.f32.mxu1 %vm91_vm1, %v14740_v10  ;;  %v14763_v39 = vld [vmem:[%s15893_s0 + $0x1ba] sm:$0xff]  ;;  %v14768_v10 = vld [vmem:[%s15893_s0 + $0x1c2] sm:$0xff] }
 0x431   :  { %16065 = vst [vmem:[#allocation34_spill] sm:$0xff] %v14763_v39  ;;  %16066 = vst [vmem:[#allocation35_spill] sm:$0xff] %v14768_v10 }
 0x432   :  { %v4246_v49 = vpop.f32.mrb[60].mxu1 }
 0x433   :  { %v4269_v25 = vadd.f32 %v4246_v49, %v4150_v19  ;;  %v11273_v12 = vpop.f32.mrb[61].mxu1  ;;  %11449 = vmatmul.mubr.msk.f32.gmra.mrb[110].mxu1 %vm91_vm1, %v14749_v2  ;;  %v14777_v49 = vld [vmem:[%s15893_s0 + $0x1ca] sm:$0xff] }
 0x434   :  { %11451 = vmatprep.mubr.msk.f32.mxu1 %vm91_vm1, %v14754_v13  ;;  %v14782_v12 = vld [vmem:[%s15893_s0 + $0x1d2] sm:$0xff] }
 0x436   :  { %v4251_v5 = vpop.f32.mrb[62].mxu1 }
 0x437   :  { %v4270_v27 = vadd.f32 %v4251_v5, %v4151_v20  ;;  %v11276_v19 = vpop.f32.mrb[63].mxu1  ;;  %11452 = vmatmul.mubr.msk.f32.gmra.mrb[112].mxu1 %vm91_vm1, %v14763_v39  ;;  %v5265_v5 = vld [vmem:[%s15893_s0 + $0x1da] sm:$0x3f] }
 0x438   :  { %11454 = vmatprep.mubr.msk.f32.mxu1 %vm91_vm1, %v14768_v10 }
 0x43a   :  { %v4256_v13 = vpop.f32.mrb[64].mxu1 }
 0x43b   :  { %v4271_v2 = vadd.f32 %v4256_v13, %v4152_v52  ;;  %v11279_v20 = vpop.f32.mrb[65].mxu1  ;;  %11455 = vmatmul.mubr.msk.f32.gmra.mrb[114].mxu1 %vm91_vm1, %v14777_v49  ;;  %v14797_v13 = vld [vmem:[%s15894_s1 + $0x14] sm:$0xf] }
 0x43c   :  { %11457 = vmatprep.mubr.msk.f32.mxu1 %vm91_vm1, %v14782_v12 }
 0x43e   :  { %v4261_v19 = vpop.f32.mrb[66].mxu1 }
 0x43f   :  { %v4272_v10 = vadd.f32 %v4261_v19, %v4153_v26  ;;  %v11282_v39 = vpop.f32.mrb[67].mxu1  ;;  %11458 = vmatmul.mubr.msk.f32.gmra.mrb[116].mxu1 %vm91_vm1, %v5265_v5 }
 0x440   :  { %11462 = vmatprep.mubr.msk.f32.mxu1 %vm91_vm1, %v14410_v9 }
 0x442   :  { %v4266_v52 = vpop.f32.mrb[68].mxu1 }
 0x443   :  { %v11285_v20 = vpop.f32.mrb[69].mxu1  ;;  %11463 = vmatmul.mubr.msk.f32.vlgmr.msra.gmra.mrb[90].mxu1 %vm91_vm1, %v14425_v28 }
 0x444   :  { %11505 = vmatpush3.msk.msra.mxu1 %vm176_vm0, %v14611_v40  ;;  %11465 = vmatprep.mubr.msk.f32.mxu1 %vm91_vm1, %v14430_v29 }
 0x445   :  { %11548 = vmatprep.subr.msk.mxu1 %vm176_vm0, %v14797_v13 }
 0x446   :  { %v4365_v9 = vpop.f32.mrb[70].mxu1 }
 0x447   :  { %v4388_v26 = vadd.f32 %v4365_v9, %v4269_v25  ;;  %v11294_v39 = vpop.f32.mrb[71].mxu1  ;;  %11466 = vmatmul.mubr.msk.f32.gmra.mrb[92].mxu1 %vm91_vm1, %v14441_v44 }
 0x448   :  { %11468 = vmatprep.mubr.msk.f32.mxu1 %vm91_vm1, %v14446_v47 }
 0x44a   :  { %v4370_v5 = vpop.f32.mrb[72].mxu1 }
 0x44b   :  { %v4389_v28 = vadd.f32 %v4370_v5, %v4270_v27  ;;  %v11297_v19 = vpop.f32.mrb[73].mxu1  ;;  %11469 = vmatmul.mubr.msk.f32.gmra.mrb[94].mxu1 %vm91_vm1, %v14455_v61 }
 0x44c   :  { %11471 = vmatprep.mubr.msk.f32.mxu1 %vm91_vm1, %v14460_v50 }
 0x44e   :  { %v4375_v40 = vpop.f32.mrb[74].mxu1 }
 0x44f   :  { %v4390_v52 = vadd.f32 %v4375_v40, %v4271_v2  ;;  %v11300_v20 = vpop.f32.mrb[75].mxu1  ;;  %11472 = vmatmul.mubr.msk.f32.gmra.mrb[96].mxu1 %vm91_vm1, %v14469_v53 }
 0x450   :  { %11474 = vmatprep.mubr.msk.f32.mxu1 %vm91_vm1, %v14474_v55 }
 0x452   :  { %v4380_v25 = vpop.f32.mrb[76].mxu1 }
 0x453   :  { %v4391_v9 = vadd.f32 %v4380_v25, %v4272_v10  ;;  %v11303_v39 = vpop.f32.mrb[77].mxu1  ;;  %11475 = vmatmul.mubr.msk.f32.gmra.mrb[98].mxu1 %vm91_vm1, %v14483_v15  ;;  %v9710_v10 = vld [vmem:[%s15897_s4] ss:$0 sm:$0xff] }
 0x454   :  { %11477 = vmatprep.mubr.msk.f32.mxu1 %vm91_vm1, %v14488_v34 }
 0x456   :  { %v4385_v27 = vpop.f32.mrb[78].mxu1 }
 0x457   :  { %v11306_v5 = vpop.f32.mrb[79].mxu1  ;;  %11478 = vmatmul.mubr.msk.f32.gmra.mrb[100].mxu1 %vm91_vm1, %v14497_v1 }
 0x458   :  { %11480 = vmatprep.mubr.msk.f32.mxu1 %vm91_vm1, %v14502_v17 }
 0x45a   :  { %v4484_v2 = vpop.f32.mrb[80].mxu1 }
 0x45b   :  { %v4507_v19 = vadd.f32 %v4484_v2, %v4388_v26  ;;  %v11315_v40 = vpop.f32.mrb[81].mxu1  ;;  %11481 = vmatmul.mubr.msk.f32.gmra.mrb[102].mxu1 %vm91_vm1, %v14511_v23 }
 0x45c   :  { %11483 = vmatprep.mubr.msk.f32.mxu1 %vm91_vm1, %v14516_v24 }
 0x45d   :  { %v4518_v20 = vadd.f32 %v9710_v10, %v4507_v19 }
 0x45e   :  { %v4489_v25 = vpop.f32.mrb[82].mxu1 }
 0x45f   :  { %v4526_v39 = vmin.f32 %v4518_v20, 0.0  ;;  %v4508_v27 = vadd.f32 %v4489_v25, %v4389_v28  ;;  %v11318_v5 = vpop.f32.mrb[83].mxu1  ;;  %11484 = vmatmul.mubr.msk.f32.gmra.mrb[104].mxu1 %vm91_vm1, %v14525_v60  ;;  %vm4522_vm6 = vcmp.gt.f32.partialorder %v4518_v20, 0.0 }
 0x460   :  { %11486 = vmatprep.mubr.msk.f32.mxu1 %vm91_vm1, %v14530_v41 }
 0x461   :  { %v4530_v17 = vmul.f32 1.442695, %v4526_v39  ;;  %v4519_v26 = vadd.f32 %v9710_v10, %v4508_v27 }
 0x462   :  { %v4494_v2 = vpop.f32.mrb[84].mxu1 }
 0x463   :  { %12545 = vpow2.f32 %v4530_v17  ;;  %v4527_v40 = vmin.f32 %v4519_v26, 0.0  ;;  %v4509_v23 = vadd.f32 %v4494_v2, %v4390_v52  ;;  %v11321_v1 = vpop.f32.mrb[85].mxu1  ;;  %11487 = vmatmul.mubr.msk.f32.gmra.mrb[106].mxu1 %vm91_vm1, %v14539_v36  ;;  %v14862_v2 = vld [vmem:[%s15893_s0 + $0x1e0] sm:$0xff]  ;;  %vm4523_vm7 = vcmp.gt.f32.partialorder %v4519_v26, 0.0 }
 0x464   :  { %11489 = vmatprep.mubr.msk.f32.mxu1 %vm91_vm1, %v14544_v48 }
 0x465   :  { %v4532_v28 = vmul.f32 1.442695, %v4527_v40  ;;  %v4520_v19 = vadd.f32 %v9710_v10, %v4509_v23 }
 0x466   :  { %v4499_v25 = vpop.f32.mrb[86].mxu1 }
 0x467   :  { %12547 = vpow2.f32 %v4532_v28  ;;  %v4528_v5 = vmin.f32 %v4520_v19, 0.0  ;;  %v4510_v60 = vadd.f32 %v4499_v25, %v4391_v9  ;;  %v11324_v41 = vpop.f32.mrb[87].mxu1  ;;  %11490 = vmatmul.mubr.msk.f32.gmra.mrb[108].mxu1 %vm91_vm1, %v14553_v35  ;;  %vm4524_vm14 = vcmp.gt.f32.partialorder %v4520_v19, 0.0 }
 0x468   :  { %11492 = vmatprep.mubr.msk.f32.mxu1 %vm91_vm1, %v14558_v62 }
 0x469   :  { %v4534_v1 = vmul.f32 1.442695, %v4528_v5  ;;  %v4521_v17 = vadd.f32 %v9710_v10, %v4510_v60  ;;  %v14857_v60 = vld [vmem:[%s15893_s0 + $0x1d8] sm:$0xff]  ;;  %v5614_v5 = vld [vmem:[%s15893_s0 + $0x1e8] sm:$0x3f] }
 0x46a   :  { %v4504_v52 = vpop.f32.mrb[88].mxu1 }
 0x46b   :  { %12549 = vpow2.f32 %v4534_v1  ;;  %v4529_v39 = vmin.f32 %v4521_v17, 0.0  ;;  %v11327_v27 = vpop.f32.mrb[89].mxu1  ;;  %11493 = vmatmul.mubr.msk.f32.gmra.mrb[110].mxu1 %vm91_vm1, %v14567_v18 }
 0x46c   :  { %11495 = vmatprep.mubr.msk.f32.mxu1 %vm91_vm1, %v14572_v21 }
 0x46d   :  { %v12546_v23 = vpop.eup %12545  ;;  %v4536_v41 = vmul.f32 1.442695, %v4529_v39 }
 0x46e   :  { %v9711_v9 = vadd.f32 -1.0, %v12546_v23 }
 0x46f   :  { %12551 = vpow2.f32 %v4536_v41  ;;  %11496 = vmatmul.mubr.msk.f32.gmra.mrb[112].mxu1 %vm91_vm1, %v14581_v6 }
 0x470   :  { %11498 = vmatprep.mubr.msk.f32.mxu1 %vm91_vm1, %v14586_v43  ;;  %v4542_v40 = vsel %vm4522_vm6, %v4518_v20, %v9711_v9  ;;  %vm4525_vm6 = vcmp.gt.f32.partialorder %v4521_v17, 0.0 }
 0x471   :  { %v12548_v10 = vpop.eup %12547  ;;  %v4551_v52 = vrot.slane %v4542_v40, 7 }
 0x472   :  { %v9712_v28 = vadd.f32 -1.0, %v12548_v10 }
 0x473   :  { %11499 = vmatmul.mubr.msk.f32.gmra.mrb[114].mxu1 %vm91_vm1, %v14857_v60 }
 0x474   :  { %v4543_v25 = vsel %vm4523_vm7, %v4519_v26, %v9712_v28  ;;  %11501 = vmatprep.mubr.msk.f32.mxu1 %vm91_vm1, %v14862_v2  ;;  %v6662_v28 = vld [vmem:[%s15894_s1 + $0x18] sm:$0xf]  ;;  %vm15990_vm7 = vcmask 402432  }
 0x475   :  { %v12550_v1 = vpop.eup %12549  ;;  %v4552_v39 = vrot.slane %v4543_v25, 7 }
 0x476   :  { %v9713_v27 = vadd.f32 -1.0, %v12550_v1 }
 0x477   :  { %v4553_v20 = vsel %vm4550_vm8, %v4551_v52, %v4552_v39  ;;  %11502 = vmatmul.mubr.msk.f32.gmra.mrb[116].mxu1 %vm91_vm1, %v5614_v5  ;;  %v16089_v52 = vld [vmem:[#allocation35_spill] sm:$0xff] }
 0x478   :  { %v4561_v23 = vmax.f32 %v4542_v40, %v4553_v20  ;;  %v4544_v26 = vsel %vm4524_vm14, %v4520_v19, %v9713_v27  ;;  %11506 = vmatprep.mubr.msk.f32.mxu1 %vm91_vm1, %v14215_v54  ;;  %v15015_v27 = vld [vmem:[%s15893_s0 + $0x1e2] sm:$0xff]  ;;  %v6312_v20 = vld [vmem:[%s15893_s0 + $0x1ea] sm:$0x3f] }
 0x479   :  { %v12552_v41 = vpop.eup %12551  ;;  %v4554_v9 = vrot.slane %v4544_v26, 7 }
 0x47a   :  { %4565 = vst.msk [vmem:[#allocation4] sm:$0xff] %vm4564_vm9, %v4561_v23  ;;  %v9714_v10 = vadd.f32 -1.0, %v12552_v41  ;;  %v7360_v23 = vld [vmem:[%s15894_s1 + $0x20] sm:$0xf] }
 0x47b   :  { %v4555_v1 = vsel %vm4550_vm8, %v4552_v39, %v4554_v9  ;;  %11507 = vmatmul.mubr.msk.f32.vlgmr.msra.gmra.mrb[90].mxu1 %vm91_vm1, %v14229_v56  ;;  %v15010_v39 = vld [vmem:[%s15893_s0 + $0x1da] sm:$0xff] }
 0x47c   :  { %v4562_v40 = vmax.f32 %v4543_v25, %v4555_v1  ;;  %v4545_v19 = vsel %vm4525_vm6, %v4521_v17, %v9714_v10  ;;  %11549 = vmatpush3.msk.msra.mxu1 %vm176_vm0, %v14797_v13  ;;  %11509 = vmatprep.mubr.msk.f32.mxu1 %vm91_vm1, %v14234_v22  ;;  %v14937_v22 = vld [vmem:[%s15893_s0 + $0x1d9] sm:$0xff]  ;;  %v16088_v25 = vld [vmem:[#allocation34_spill] sm:$0xff]  ;;  %v6997_v10 = vld [vmem:[%s15893_s0 + $0x191] sm:$0xff] }
 0x47d   :  { %v4556_v54 = vrot.slane %v4545_v19, 7  ;;  %11592 = vmatprep.subr.msk.mxu1 %vm176_vm0, %v6662_v28  ;;  %v16086_v13 = vld [vmem:[#allocation32_spill] sm:$0xff]  ;;  %v16087_v17 = vld [vmem:[#allocation33_spill] sm:$0xff] }
 0x47e   :  { %4566 = vst.msk [vmem:[#allocation4 + $0x8] sm:$0xff] %vm4564_vm9, %v4562_v40  ;;  %v6995_v41 = vld [vmem:[%s15893_s0 + $0x181] sm:$0xff]  ;;  %v7000_v40 = vld [vmem:[%s15893_s0 + $0x1a9] sm:$0xff]  ;;  %v7001_v19 = vld [vmem:[%s15893_s0 + $0x1b1] sm:$0xff] }
 0x47f   :  { %v4557_v5 = vsel %vm4550_vm8, %v4554_v9, %v4556_v54  ;;  %11510 = vmatmul.mubr.msk.f32.gmra.mrb[92].mxu1 %vm91_vm1, %v14245_v42  ;;  %v14942_v42 = vld [vmem:[%s15893_s0 + $0x1e1] sm:$0xff]  ;;  %v6996_v9 = vld [vmem:[%s15893_s0 + $0x189] sm:$0xff]  ;;  %v7002_v54 = vld [vmem:[%s15893_s0 + $0x1b9] sm:$0xff] }
 0x480   :  { %v4563_v56 = vmax.f32 %v4544_v26, %v4557_v5  ;;  %11512 = vmatprep.mubr.msk.f32.mxu1 %vm91_vm1, %v14250_v57  ;;  %v5963_v57 = vld [vmem:[%s15893_s0 + $0x1e9] sm:$0x3f]  ;;  %v6994_v26 = vld [vmem:[%s15893_s0 + $0x179] sm:$0xff]  ;;  %v6999_v1 = vld [vmem:[%s15893_s0 + $0x1a1] sm:$0xff] }
 0x481   :  { %v7003_v5 = vld [vmem:[%s15893_s0 + $0x1c1] sm:$0xff] }
 0x482   :  { %4568 = vst.msk [vmem:[#allocation4 + $0x10] sm:$0x3] %vm15990_vm7, %v4563_v56  ;;  %v7004_v56 = vld [vmem:[%s15893_s0 + $0x1c9] sm:$0xff] }
 0x483   :  { %11513 = vmatmul.mubr.msk.f32.gmra.mrb[94].mxu1 %vm91_vm1, %v14259_v58  ;;  %v16067_v58 = vld [vmem:[#allocation25_spill] sm:$0xff] }
 0x484   :  { %11515 = vmatprep.mubr.msk.f32.mxu1 %vm91_vm1, %v14264_v3  ;;  %v7011_v3 = vld [vmem:[%s15894_s1 + $0x1c] sm:$0xf] }
 0x487   :  { %11516 = vmatmul.mubr.msk.f32.gmra.mrb[96].mxu1 %vm91_vm1, %v14273_v30  ;;  %v16068_v30 = vld [vmem:[#allocation8_spill] sm:$0xff] }
 0x488   :  { %11518 = vmatprep.mubr.msk.f32.mxu1 %vm91_vm1, %v14278_v31  ;;  %v16069_v31 = vld [vmem:[#allocation9_spill] sm:$0xff] }
 0x48b   :  { %11519 = vmatmul.mubr.msk.f32.gmra.mrb[98].mxu1 %vm91_vm1, %v14287_v45  ;;  %v16070_v45 = vld [vmem:[#allocation10_spill] sm:$0xff] }
 0x48c   :  { %11521 = vmatprep.mubr.msk.f32.mxu1 %vm91_vm1, %v14292_v59  ;;  %v16071_v59 = vld [vmem:[#allocation11_spill] sm:$0xff] }
 0x48f   :  { %11522 = vmatmul.mubr.msk.f32.gmra.mrb[100].mxu1 %vm91_vm1, %v14301_v32  ;;  %v16072_v32 = vld [vmem:[#allocation12_spill] sm:$0xff] }
 0x490   :  { %11524 = vmatprep.mubr.msk.f32.mxu1 %vm91_vm1, %v14306_v33  ;;  %v16073_v33 = vld [vmem:[#allocation13_spill] sm:$0xff] }
 0x493   :  { %11525 = vmatmul.mubr.msk.f32.gmra.mrb[102].mxu1 %vm91_vm1, %v14315_v63  ;;  %v16074_v63 = vld [vmem:[#allocation14_spill] sm:$0xff] }
 0x494   :  { %11527 = vmatprep.mubr.msk.f32.mxu1 %vm91_vm1, %v14320_v46  ;;  %v16075_v46 = vld [vmem:[#allocation15_spill] sm:$0xff] }
 0x497   :  { %11528 = vmatmul.mubr.msk.f32.gmra.mrb[104].mxu1 %vm91_vm1, %v14329_v0  ;;  %v16076_v0 = vld [vmem:[#allocation16_spill] sm:$0xff] }
 0x498   :  { %11530 = vmatprep.mubr.msk.f32.mxu1 %vm91_vm1, %v14334_v51  ;;  %v16077_v51 = vld [vmem:[#allocation17_spill] sm:$0xff] }
 0x49b   :  { %11531 = vmatmul.mubr.msk.f32.gmra.mrb[106].mxu1 %vm91_vm1, %v14343_v37  ;;  %v16078_v37 = vld [vmem:[#allocation21_spill] sm:$0xff] }
 0x49c   :  { %11533 = vmatprep.mubr.msk.f32.mxu1 %vm91_vm1, %v14348_v38  ;;  %v16079_v38 = vld [vmem:[#allocation23_spill] sm:$0xff] }
 0x49f   :  { %11534 = vmatmul.mubr.msk.f32.gmra.mrb[108].mxu1 %vm91_vm1, %v14357_v7  ;;  %v16080_v7 = vld [vmem:[#allocation26_spill] sm:$0xff] }
 0x4a0   :  { %11536 = vmatprep.mubr.msk.f32.mxu1 %vm91_vm1, %v14362_v8  ;;  %v16081_v8 = vld [vmem:[#allocation27_spill] sm:$0xff] }
 0x4a3   :  { %11537 = vmatmul.mubr.msk.f32.gmra.mrb[110].mxu1 %vm91_vm1, %v14371_v4  ;;  %v16082_v4 = vld [vmem:[#allocation28_spill] sm:$0xff] }
 0x4a4   :  { %11539 = vmatprep.mubr.msk.f32.mxu1 %vm91_vm1, %v14376_v11  ;;  %v16083_v11 = vld [vmem:[#allocation29_spill] sm:$0xff] }
 0x4a7   :  { %11540 = vmatmul.mubr.msk.f32.gmra.mrb[112].mxu1 %vm91_vm1, %v14385_v14  ;;  %v16084_v14 = vld [vmem:[#allocation30_spill] sm:$0xff] }
 0x4a8   :  { %11542 = vmatprep.mubr.msk.f32.mxu1 %vm91_vm1, %v14390_v16  ;;  %v16085_v16 = vld [vmem:[#allocation31_spill] sm:$0xff] }
 0x4ab   :  { %11543 = vmatmul.mubr.msk.f32.gmra.mrb[114].mxu1 %vm91_vm1, %v14937_v22 }
 0x4ac   :  { %11545 = vmatprep.mubr.msk.f32.mxu1 %vm91_vm1, %v14942_v42 }
 0x4af   :  { %11546 = vmatmul.mubr.msk.f32.gmra.mrb[116].mxu1 %vm91_vm1, %v5963_v57  ;;  %v7005_v57 = vld [vmem:[%s15893_s0 + $0x1d1] sm:$0xff] }
 0x4b0   :  { %11550 = vmatprep.mubr.msk.f32.mxu1 %vm91_vm1, %v16067_v58  ;;  %v7008_v58 = vld [vmem:[%s15893_s0 + $0x1e9] sm:$0xff] }
 0x4b3   :  { %11551 = vmatmul.mubr.msk.f32.vlgmr.msra.gmra.mrb[90].mxu1 %vm91_vm1, %v16068_v30  ;;  %v7010_v30 = vld [vmem:[%s15893_s0 + $0x1f9] sm:$0x3f] }
 0x4b4   :  { %11593 = vmatpush3.msk.msra.mxu1 %vm176_vm0, %v6662_v28  ;;  %11553 = vmatprep.mubr.msk.f32.mxu1 %vm91_vm1, %v16069_v31  ;;  %v6998_v28 = vld [vmem:[%s15893_s0 + $0x199] sm:$0xff] }
 0x4b5   :  { %11636 = vmatprep.subr.msk.mxu1 %vm176_vm0, %v7011_v3 }
 0x4b7   :  { %11554 = vmatmul.mubr.msk.f32.gmra.mrb[92].mxu1 %vm91_vm1, %v16070_v45 }
 0x4b8   :  { %11556 = vmatprep.mubr.msk.f32.mxu1 %vm91_vm1, %v16071_v59 }
 0x4bb   :  { %11557 = vmatmul.mubr.msk.f32.gmra.mrb[94].mxu1 %vm91_vm1, %v16072_v32 }
 0x4bc   :  { %11559 = vmatprep.mubr.msk.f32.mxu1 %vm91_vm1, %v16073_v33 }
 0x4bf   :  { %11560 = vmatmul.mubr.msk.f32.gmra.mrb[96].mxu1 %vm91_vm1, %v16074_v63 }
 0x4c0   :  { %11562 = vmatprep.mubr.msk.f32.mxu1 %vm91_vm1, %v16075_v46 }
 0x4c3   :  { %11563 = vmatmul.mubr.msk.f32.gmra.mrb[98].mxu1 %vm91_vm1, %v16076_v0 }
 0x4c4   :  { %11565 = vmatprep.mubr.msk.f32.mxu1 %vm91_vm1, %v16077_v51 }
 0x4c7   :  { %11566 = vmatmul.mubr.msk.f32.gmra.mrb[100].mxu1 %vm91_vm1, %v16078_v37 }
 0x4c8   :  { %11568 = vmatprep.mubr.msk.f32.mxu1 %vm91_vm1, %v16079_v38 }
 0x4cb   :  { %11569 = vmatmul.mubr.msk.f32.gmra.mrb[102].mxu1 %vm91_vm1, %v16080_v7 }
 0x4cc   :  { %11571 = vmatprep.mubr.msk.f32.mxu1 %vm91_vm1, %v16081_v8 }
 0x4cf   :  { %11572 = vmatmul.mubr.msk.f32.gmra.mrb[104].mxu1 %vm91_vm1, %v16082_v4 }
 0x4d0   :  { %11574 = vmatprep.mubr.msk.f32.mxu1 %vm91_vm1, %v16083_v11 }
 0x4d3   :  { %11575 = vmatmul.mubr.msk.f32.gmra.mrb[106].mxu1 %vm91_vm1, %v16084_v14 }
 0x4d4   :  { %11577 = vmatprep.mubr.msk.f32.mxu1 %vm91_vm1, %v16085_v16 }
 0x4d7   :  { %11578 = vmatmul.mubr.msk.f32.gmra.mrb[108].mxu1 %vm91_vm1, %v16086_v13 }
 0x4d8   :  { %11580 = vmatprep.mubr.msk.f32.mxu1 %vm91_vm1, %v16087_v17 }
 0x4db   :  { %11581 = vmatmul.mubr.msk.f32.gmra.mrb[110].mxu1 %vm91_vm1, %v16088_v25 }
 0x4dc   :  { %11583 = vmatprep.mubr.msk.f32.mxu1 %vm91_vm1, %v16089_v52 }
 0x4df   :  { %11584 = vmatmul.mubr.msk.f32.gmra.mrb[112].mxu1 %vm91_vm1, %v14777_v49 }
 0x4e0   :  { %11586 = vmatprep.mubr.msk.f32.mxu1 %vm91_vm1, %v14782_v12 }
 0x4e3   :  { %11587 = vmatmul.mubr.msk.f32.gmra.mrb[114].mxu1 %vm91_vm1, %v15010_v39 }
 0x4e4   :  { %11589 = vmatprep.mubr.msk.f32.mxu1 %vm91_vm1, %v15015_v27 }
 0x4e7   :  { %11590 = vmatmul.mubr.msk.f32.gmra.mrb[116].mxu1 %vm91_vm1, %v6312_v20 }
 0x4e8   :  { %11594 = vmatprep.mubr.msk.f32.mxu1 %vm91_vm1, %v14430_v29  ;;  %v16090_v29 = vld [vmem:[#allocation18_spill] sm:$0xff] }
 0x4eb   :  { %11595 = vmatmul.mubr.msk.f32.vlgmr.msra.gmra.mrb[90].mxu1 %vm91_vm1, %v14441_v44  ;;  %v16091_v44 = vld [vmem:[#allocation19_spill] sm:$0xff] }
 0x4ec   :  { %11637 = vmatpush3.msk.msra.mxu1 %vm176_vm0, %v7011_v3  ;;  %11597 = vmatprep.mubr.msk.f32.mxu1 %vm91_vm1, %v14446_v47  ;;  %v16092_v47 = vld [vmem:[#allocation20_spill] sm:$0xff] }
 0x4ed   :  { %11680 = vmatprep.subr.msk.mxu1 %vm176_vm0, %v7360_v23  ;;  %v7009_v3 = vld [vmem:[%s15893_s0 + $0x1f1] sm:$0xff] }
 0x4ef   :  { %11598 = vmatmul.mubr.msk.f32.gmra.mrb[92].mxu1 %vm91_vm1, %v14455_v61  ;;  %v16093_v61 = vld [vmem:[#allocation22_spill] sm:$0xff] }
 0x4f0   :  { %11600 = vmatprep.mubr.msk.f32.mxu1 %vm91_vm1, %v14460_v50  ;;  %v16094_v50 = vld [vmem:[#allocation24_spill] sm:$0xff] }
 0x4f3   :  { %11601 = vmatmul.mubr.msk.f32.gmra.mrb[94].mxu1 %vm91_vm1, %v14469_v53  ;;  %v6659_v53 = vld [vmem:[%s15893_s0 + $0x1e8] sm:$0xff] }
 0x4f4   :  { %11603 = vmatprep.mubr.msk.f32.mxu1 %vm91_vm1, %v14474_v55  ;;  %v6660_v55 = vld [vmem:[%s15893_s0 + $0x1f0] sm:$0xff] }
 0x4f7   :  { %11604 = vmatmul.mubr.msk.f32.gmra.mrb[96].mxu1 %vm91_vm1, %v14483_v15  ;;  %v6661_v15 = vld [vmem:[%s15893_s0 + $0x1f8] sm:$0x3f] }
 0x4f8   :  { %11606 = vmatprep.mubr.msk.f32.mxu1 %vm91_vm1, %v14488_v34  ;;  %v6983_v34 = vld [vmem:[%s15893_s0 + $0x121] sm:$0xff] }
 0x4fb   :  { %11607 = vmatmul.mubr.msk.f32.gmra.mrb[98].mxu1 %vm91_vm1, %v16090_v29 }
 0x4fc   :  { %11609 = vmatprep.mubr.msk.f32.mxu1 %vm91_vm1, %v16091_v44 }
 0x4ff   :  { %11610 = vmatmul.mubr.msk.f32.gmra.mrb[100].mxu1 %vm91_vm1, %v16092_v47 }
 0x500   :  { %11612 = vmatprep.mubr.msk.f32.mxu1 %vm91_vm1, %v14516_v24  ;;  %v6984_v24 = vld [vmem:[%s15893_s0 + $0x129] sm:$0xff] }
 0x503   :  { %11613 = vmatmul.mubr.msk.f32.gmra.mrb[102].mxu1 %vm91_vm1, %v16093_v61 }
 0x504   :  { %11615 = vmatprep.mubr.msk.f32.mxu1 %vm91_vm1, %v16094_v50 }
 0x507   :  { %11616 = vmatmul.mubr.msk.f32.gmra.mrb[104].mxu1 %vm91_vm1, %v14539_v36  ;;  %v6985_v36 = vld [vmem:[%s15893_s0 + $0x131] sm:$0xff] }
 0x508   :  { %11618 = vmatprep.mubr.msk.f32.mxu1 %vm91_vm1, %v14544_v48  ;;  %v6986_v48 = vld [vmem:[%s15893_s0 + $0x139] sm:$0xff] }
 0x50b   :  { %11619 = vmatmul.mubr.msk.f32.gmra.mrb[106].mxu1 %vm91_vm1, %v14553_v35  ;;  %v6987_v35 = vld [vmem:[%s15893_s0 + $0x141] sm:$0xff] }
 0x50c   :  { %11621 = vmatprep.mubr.msk.f32.mxu1 %vm91_vm1, %v14558_v62  ;;  %v16095_v62 = vmov 0.0|0.0  }
 0x50f   :  { %11622 = vmatmul.mubr.msk.f32.gmra.mrb[108].mxu1 %vm91_vm1, %v14567_v18  ;;  %v6988_v18 = vld [vmem:[%s15893_s0 + $0x149] sm:$0xff] }
 0x510   :  { %11624 = vmatprep.mubr.msk.f32.mxu1 %vm91_vm1, %v14572_v21  ;;  %v6989_v21 = vld [vmem:[%s15893_s0 + $0x151] sm:$0xff] }
 0x513   :  { %11625 = vmatmul.mubr.msk.f32.gmra.mrb[110].mxu1 %vm91_vm1, %v14581_v6  ;;  %v6990_v6 = vld [vmem:[%s15893_s0 + $0x159] sm:$0xff] }
 0x514   :  { %11627 = vmatprep.mubr.msk.f32.mxu1 %vm91_vm1, %v14586_v43  ;;  %v6991_v43 = vld [vmem:[%s15893_s0 + $0x161] sm:$0xff] }
 0x517   :  { %11628 = vmatmul.mubr.msk.f32.gmra.mrb[112].mxu1 %vm91_vm1, %v14857_v60  ;;  %v6992_v60 = vld [vmem:[%s15893_s0 + $0x169] sm:$0xff] }
 0x518   :  { %11630 = vmatprep.mubr.msk.f32.mxu1 %vm91_vm1, %v14862_v2  ;;  %v6993_v2 = vld [vmem:[%s15893_s0 + $0x171] sm:$0xff] }
 0x51b   :  { %11631 = vmatmul.mubr.msk.f32.gmra.mrb[114].mxu1 %vm91_vm1, %v6659_v53 }
 0x51c   :  { %11633 = vmatprep.mubr.msk.f32.mxu1 %vm91_vm1, %v6660_v55 }
 0x51f   :  { %11634 = vmatmul.mubr.msk.f32.gmra.mrb[116].mxu1 %vm91_vm1, %v6661_v15 }
 0x520   :  { %11638 = vmatprep.mubr.msk.f32.mxu1 %vm91_vm1, %v6983_v34 }
 0x523   :  { %11639 = vmatmul.mubr.msk.f32.vlgmr.msra.gmra.mrb[90].mxu1 %vm91_vm1, %v6984_v24 }
 0x524   :  { %11681 = vmatpush3.msk.msra.mxu1 %vm176_vm0, %v7360_v23  ;;  %11641 = vmatprep.mubr.msk.f32.mxu1 %vm91_vm1, %v6985_v36 }
 0x525   :  { %11984 = vmatprep.subr.bf16.mxu1 %v16095_v62 }
 0x527   :  { %11642 = vmatmul.mubr.msk.f32.gmra.mrb[92].mxu1 %vm91_vm1, %v6986_v48 }
 0x528   :  { %11644 = vmatprep.mubr.msk.f32.mxu1 %vm91_vm1, %v6987_v35 }
 0x52b   :  { %11645 = vmatmul.mubr.msk.f32.gmra.mrb[94].mxu1 %vm91_vm1, %v6988_v18 }
 0x52c   :  { %11647 = vmatprep.mubr.msk.f32.mxu1 %vm91_vm1, %v6989_v21 }
 0x52f   :  { %11648 = vmatmul.mubr.msk.f32.gmra.mrb[96].mxu1 %vm91_vm1, %v6990_v6 }
 0x530   :  { %11650 = vmatprep.mubr.msk.f32.mxu1 %vm91_vm1, %v6991_v43 }
 0x533   :  { %11651 = vmatmul.mubr.msk.f32.gmra.mrb[98].mxu1 %vm91_vm1, %v6992_v60 }
 0x534   :  { %11653 = vmatprep.mubr.msk.f32.mxu1 %vm91_vm1, %v6993_v2 }
 0x537   :  { %11654 = vmatmul.mubr.msk.f32.gmra.mrb[100].mxu1 %vm91_vm1, %v6994_v26 }
 0x538   :  { %11656 = vmatprep.mubr.msk.f32.mxu1 %vm91_vm1, %v6995_v41 }
 0x53b   :  { %11657 = vmatmul.mubr.msk.f32.gmra.mrb[102].mxu1 %vm91_vm1, %v6996_v9 }
 0x53c   :  { %11659 = vmatprep.mubr.msk.f32.mxu1 %vm91_vm1, %v6997_v10 }
 0x53f   :  { %11660 = vmatmul.mubr.msk.f32.gmra.mrb[104].mxu1 %vm91_vm1, %v6998_v28 }
 0x540   :  { %11662 = vmatprep.mubr.msk.f32.mxu1 %vm91_vm1, %v6999_v1 }
 0x543   :  { %11663 = vmatmul.mubr.msk.f32.gmra.mrb[106].mxu1 %vm91_vm1, %v7000_v40 }
 0x544   :  { %11665 = vmatprep.mubr.msk.f32.mxu1 %vm91_vm1, %v7001_v19 }
 0x547   :  { %11666 = vmatmul.mubr.msk.f32.gmra.mrb[108].mxu1 %vm91_vm1, %v7002_v54 }
 0x548   :  { %11668 = vmatprep.mubr.msk.f32.mxu1 %vm91_vm1, %v7003_v5 }
 0x54b   :  { %11669 = vmatmul.mubr.msk.f32.gmra.mrb[110].mxu1 %vm91_vm1, %v7004_v56 }
 0x54c   :  { %11671 = vmatprep.mubr.msk.f32.mxu1 %vm91_vm1, %v7005_v57 }
 0x54f   :  { %11672 = vmatmul.mubr.msk.f32.gmra.mrb[112].mxu1 %vm91_vm1, %v14937_v22  ;;  %v7357_v22 = vld [vmem:[%s15893_s0 + $0x1ea] sm:$0xff] }
 0x550   :  { %11674 = vmatprep.mubr.msk.f32.mxu1 %vm91_vm1, %v14942_v42  ;;  %v7358_v42 = vld [vmem:[%s15893_s0 + $0x1f2] sm:$0xff] }
 0x553   :  { %11675 = vmatmul.mubr.msk.f32.gmra.mrb[114].mxu1 %vm91_vm1, %v7008_v58 }
 0x554   :  { %11677 = vmatprep.mubr.msk.f32.mxu1 %vm91_vm1, %v7009_v3 }
 0x557   :  { %11678 = vmatmul.mubr.msk.f32.gmra.mrb[116].mxu1 %vm91_vm1, %v7010_v30 }
 0x558   :  { %11682 = vmatprep.mubr.msk.f32.mxu1 %vm91_vm1, %v16069_v31  ;;  %v8002_v31 = vld [vmem:[%s15896_s3 + $0x1c] sm:$0xff] }
 0x55b   :  { %11683 = vmatmul.mubr.msk.f32.vlgmr.msra.gmra.mrb[90].mxu1 %vm91_vm1, %v16070_v45 }
 0x55c   :  { %11685 = vmatprep.mubr.msk.f32.mxu1 %vm91_vm1, %v16071_v59  ;;  %v16096_v59 = vmov 0.0  }
 0x55f   :  { %11686 = vmatmul.mubr.msk.f32.gmra.mrb[92].mxu1 %vm91_vm1, %v16072_v32  ;;  %v8003_v32 = vld [vmem:[%s15896_s3 + $0x24] sm:$0xf] }
 0x560   :  { %11688 = vmatprep.mubr.msk.f32.mxu1 %vm91_vm1, %v16073_v33  ;;  %v15279_v33 = vld [vmem:[%s15895_s2] ss:$0 sm:$0xff]  ;;  %s12652_s2 = smov 50  }
 0x563   :  { %11689 = vmatmul.mubr.msk.f32.gmra.mrb[94].mxu1 %vm91_vm1, %v16074_v63 }
 0x564   :  { %11691 = vmatprep.mubr.msk.f32.mxu1 %vm91_vm1, %v16075_v46 }
 0x567   :  { %11692 = vmatmul.mubr.msk.f32.gmra.mrb[96].mxu1 %vm91_vm1, %v16076_v0 }
 0x568   :  { %11694 = vmatprep.mubr.msk.f32.mxu1 %vm91_vm1, %v16077_v51 }
 0x56b   :  { %11695 = vmatmul.mubr.msk.f32.gmra.mrb[98].mxu1 %vm91_vm1, %v16078_v37 }
 0x56c   :  { %11697 = vmatprep.mubr.msk.f32.mxu1 %vm91_vm1, %v16079_v38 }
 0x56f   :  { %11698 = vmatmul.mubr.msk.f32.gmra.mrb[100].mxu1 %vm91_vm1, %v16080_v7 }
 0x570   :  { %11700 = vmatprep.mubr.msk.f32.mxu1 %vm91_vm1, %v16081_v8 }
 0x573   :  { %11701 = vmatmul.mubr.msk.f32.gmra.mrb[102].mxu1 %vm91_vm1, %v16082_v4 }
 0x574   :  { %11703 = vmatprep.mubr.msk.f32.mxu1 %vm91_vm1, %v16083_v11 }
 0x577   :  { %11704 = vmatmul.mubr.msk.f32.gmra.mrb[104].mxu1 %vm91_vm1, %v16084_v14 }
 0x578   :  { %11706 = vmatprep.mubr.msk.f32.mxu1 %vm91_vm1, %v16085_v16 }
 0x57b   :  { %11707 = vmatmul.mubr.msk.f32.gmra.mrb[106].mxu1 %vm91_vm1, %v16086_v13 }
 0x57c   :  { %11709 = vmatprep.mubr.msk.f32.mxu1 %vm91_vm1, %v16087_v17 }
 0x57f   :  { %11710 = vmatmul.mubr.msk.f32.gmra.mrb[108].mxu1 %vm91_vm1, %v16088_v25 }
 0x580   :  { %11712 = vmatprep.mubr.msk.f32.mxu1 %vm91_vm1, %v16089_v52 }
 0x583   :  { %11713 = vmatmul.mubr.msk.f32.gmra.mrb[110].mxu1 %vm91_vm1, %v14777_v49  ;;  %v7359_v49 = vld [vmem:[%s15893_s0 + $0x1fa] sm:$0x3f] }
 0x584   :  { %11715 = vmatprep.mubr.msk.f32.mxu1 %vm91_vm1, %v14782_v12  ;;  %v8001_v12 = vld [vmem:[%s15896_s3 + $0x14] sm:$0xff] }
 0x585   :  { %v11958_v45 = vpack.c.bf16 %v8002_v31, %v8001_v12 }
 0x587   :  { %11716 = vmatmul.mubr.msk.f32.gmra.mrb[112].mxu1 %vm91_vm1, %v15010_v39  ;;  %11959 = vmatpush3.bf16.msra.mxu0 %v11958_v45 }
 0x588   :  { %11718 = vmatprep.mubr.msk.f32.mxu1 %vm91_vm1, %v15015_v27  ;;  %11728 = vmatprep.subr.mxu0 %v16096_v59 }
 0x58b   :  { %11719 = vmatmul.mubr.msk.f32.gmra.mrb[114].mxu1 %vm91_vm1, %v7357_v22  ;;  %11729 = vmatpush3.msk.msra.mxu0 %vm176_vm0, %v8003_v32 }
 0x58c   :  { %11721 = vmatprep.mubr.msk.f32.mxu1 %vm91_vm1, %v7358_v42  ;;  %11960 = vmatprep.subr.bf16.mxu0 %v16095_v62 }
 0x58f   :  { %11722 = vmatmul.mubr.msk.f32.gmra.mrb[116].mxu1 %vm91_vm1, %v7359_v49 }
 0x62e   :  { %v11684_v63 = vpop.f32.mrb[90].mxu1 }
 0x62f   :  { %v15282_v46 = vadd.f32 %v11684_v63, %v15279_v33  ;;  %v7514_v0 = vpop.f32.mrb[91].mxu1 }
 0x630   :  { %v15285_v51 = vadd.f32 %v15279_v33, %v7514_v0 }
 0x631   :  { %v7745_v37 = vmin.f32 %v15282_v46, 0.0  ;;  %vm7717_vm1 = vcmp.gt.f32.partialorder %v15282_v46, 0.0 }
 0x632   :  { %v7744_v38 = vmin.f32 %v15285_v51, 0.0  ;;  %v11687_v7 = vpop.f32.mrb[92].mxu1  ;;  %vm7716_vm14 = vcmp.gt.f32.partialorder %v15285_v51, 0.0 }
 0x633   :  { %v7774_v8 = vmul.f32 1.442695, %v7745_v37  ;;  %v7691_v4 = vadd.f32 %v11687_v7, %v15279_v33  ;;  %v7524_v11 = vpop.f32.mrb[93].mxu1 }
 0x634   :  { %v7772_v14 = vmul.f32 1.442695, %v7744_v38  ;;  %v15291_v16 = vadd.f32 %v15279_v33, %v7524_v11 }
 0x635   :  { %12553 = vpow2.f32 %v7774_v8  ;;  %v7747_v13 = vmin.f32 %v7691_v4, 0.0  ;;  %vm7719_vm6 = vcmp.gt.f32.partialorder %v7691_v4, 0.0 }
 0x636   :  { %12555 = vpow2.f32 %v7772_v14  ;;  %v7746_v17 = vmin.f32 %v15291_v16, 0.0  ;;  %v11690_v25 = vpop.f32.mrb[94].mxu1  ;;  %vm7718_vm7 = vcmp.gt.f32.partialorder %v15291_v16, 0.0 }
 0x637   :  { %v7778_v52 = vmul.f32 1.442695, %v7747_v13  ;;  %v15295_v39 = vadd.f32 %v11690_v25, %v15279_v33  ;;  %v7534_v27 = vpop.f32.mrb[95].mxu1 }
 0x638   :  { %v7776_v20 = vmul.f32 1.442695, %v7746_v17  ;;  %v15298_v23 = vadd.f32 %v15279_v33, %v7534_v27 }
 0x639   :  { %12557 = vpow2.f32 %v7778_v52  ;;  %v7749_v29 = vmin.f32 %v15295_v39, 0.0 }
 0x63a   :  { %12559 = vpow2.f32 %v7776_v20  ;;  %v7748_v44 = vmin.f32 %v15298_v23, 0.0  ;;  %v11693_v47 = vpop.f32.mrb[96].mxu1 }
 0x63b   :  { %v7782_v61 = vmul.f32 1.442695, %v7749_v29  ;;  %v15303_v50 = vadd.f32 %v11693_v47, %v15279_v33  ;;  %v7544_v53 = vpop.f32.mrb[97].mxu1 }
 0x63c   :  { %v7780_v55 = vmul.f32 1.442695, %v7748_v44  ;;  %v15306_v15 = vadd.f32 %v15279_v33, %v7544_v53 }
 0x63d   :  { %12561 = vpow2.f32 %v7782_v61  ;;  %v7751_v34 = vmin.f32 %v15303_v50, 0.0 }
 0x63e   :  { %12563 = vpow2.f32 %v7780_v55  ;;  %v7750_v24 = vmin.f32 %v15306_v15, 0.0  ;;  %v11696_v36 = vpop.f32.mrb[98].mxu1 }
 0x63f   :  { %v12554_v48 = vpop.eup %12553  ;;  %v7786_v35 = vmul.f32 1.442695, %v7751_v34  ;;  %v15311_v18 = vadd.f32 %v11696_v36, %v15279_v33  ;;  %v7554_v21 = vpop.f32.mrb[99].mxu1 }
 0x640   :  { %v12556_v6 = vpop.eup %12555  ;;  %v7784_v43 = vmul.f32 1.442695, %v7750_v24  ;;  %v15314_v60 = vadd.f32 %v15279_v33, %v7554_v21  ;;  %v9978_v2 = vadd.f32 -1.0, %v12554_v48 }
 0x641   :  { %12565 = vpow2.f32 %v7786_v35  ;;  %v7753_v26 = vmin.f32 %v15311_v18, 0.0  ;;  %v9977_v41 = vadd.f32 -1.0, %v12556_v6 }
 0x642   :  { %12567 = vpow2.f32 %v7784_v43  ;;  %v7752_v9 = vmin.f32 %v15314_v60, 0.0  ;;  %v11699_v10 = vpop.f32.mrb[100].mxu1  ;;  %v7857_v58 = vsel %vm7717_vm1, %v15282_v46, %v9978_v2  ;;  %vm7721_vm1 = vcmp.gt.f32.partialorder %v15295_v39, 0.0 }
 0x643   :  { %v12558_v28 = vpop.eup %12557  ;;  %v7790_v1 = vmul.f32 1.442695, %v7753_v26  ;;  %v15321_v40 = vadd.f32 %v11699_v10, %v15279_v33  ;;  %v7564_v19 = vpop.f32.mrb[101].mxu1  ;;  %v7856_v22 = vsel %vm7716_vm14, %v15285_v51, %v9977_v41  ;;  %vm7723_vm14 = vcmp.gt.f32.partialorder %v15303_v50, 0.0 }
 0x644   :  { %v12560_v54 = vpop.eup %12559  ;;  %v9980_v5 = vadd.f32 -1.0, %v12558_v28  ;;  %v7788_v56 = vmul.f32 1.442695, %v7752_v9  ;;  %v15325_v57 = vadd.f32 %v15279_v33, %v7564_v19 }
 0x645   :  { %v9979_v3 = vadd.f32 -1.0, %v12560_v54  ;;  %12569 = vpow2.f32 %v7790_v1  ;;  %v7755_v30 = vmin.f32 %v15321_v40, 0.0 }
 0x646   :  { %v7859_v42 = vsel %vm7719_vm6, %v7691_v4, %v9980_v5  ;;  %12571 = vpow2.f32 %v7788_v56  ;;  %v7754_v49 = vmin.f32 %v15325_v57, 0.0  ;;  %v11702_v12 = vpop.f32.mrb[102].mxu1  ;;  %vm7722_vm6 = vcmp.gt.f32.partialorder %v15306_v15, 0.0 }
 0x647   :  { %v12562_v31 = vpop.eup %12561  ;;  %v7885_v45 = vmax.f32 %v7857_v58, %v7859_v42  ;;  %v7858_v32 = vsel %vm7718_vm7, %v15291_v16, %v9979_v3  ;;  %v7794_v63 = vmul.f32 1.442695, %v7755_v30  ;;  %v15335_v0 = vadd.f32 %v11702_v12, %v15279_v33  ;;  %v7574_v46 = vpop.f32.mrb[103].mxu1 }
 0x648   :  { %v12564_v37 = vpop.eup %12563  ;;  %v7884_v38 = vmax.f32 %v7856_v22, %v7858_v32  ;;  %v9982_v7 = vadd.f32 -1.0, %v12562_v31  ;;  %v7792_v8 = vmul.f32 1.442695, %v7754_v49  ;;  %v15338_v51 = vadd.f32 %v15279_v33, %v7574_v46 }
 0x649   :  { %7911 = vst.msk [vmem:[#allocation2 + $0x8] sm:$0xff] %vm3349_vm3, %v7885_v45  ;;  %v9981_v4 = vadd.f32 -1.0, %v12564_v37  ;;  %12573 = vpow2.f32 %v7794_v63  ;;  %v7757_v11 = vmin.f32 %v15335_v0, 0.0  ;;  %vm7720_vm7 = vcmp.gt.f32.partialorder %v15298_v23, 0.0 }
 0x64a   :  { %7910 = vst.msk [vmem:[#allocation2] sm:$0xff] %vm3349_vm3, %v7884_v38  ;;  %v7861_v14 = vsel %vm7721_vm1, %v15295_v39, %v9982_v7  ;;  %12575 = vpow2.f32 %v7792_v8  ;;  %v7756_v16 = vmin.f32 %v15338_v51, 0.0  ;;  %v11705_v13 = vpop.f32.mrb[104].mxu1  ;;  %vm7725_vm1 = vcmp.gt.f32.partialorder %v15311_v18, 0.0 }
 0x64b   :  { %v12566_v17 = vpop.eup %12565  ;;  %v7860_v25 = vsel %vm7720_vm7, %v15298_v23, %v9981_v4  ;;  %v7798_v52 = vmul.f32 1.442695, %v7757_v11  ;;  %v15349_v27 = vadd.f32 %v11705_v13, %v15279_v33  ;;  %v7584_v20 = vpop.f32.mrb[105].mxu1  ;;  %vm7724_vm7 = vcmp.gt.f32.partialorder %v15314_v60, 0.0 }
 0x64c   :  { %v12568_v29 = vpop.eup %12567  ;;  %v9984_v44 = vadd.f32 -1.0, %v12566_v17  ;;  %v7796_v47 = vmul.f32 1.442695, %v7756_v16  ;;  %v15352_v61 = vadd.f32 %v15279_v33, %v7584_v20 }
 0x64d   :  { %v9983_v39 = vadd.f32 -1.0, %v12568_v29  ;;  %12577 = vpow2.f32 %v7798_v52  ;;  %v7759_v53 = vmin.f32 %v15349_v27, 0.0 }
 0x64e   :  { %v7863_v55 = vsel %vm7723_vm14, %v15303_v50, %v9984_v44  ;;  %12579 = vpow2.f32 %v7796_v47  ;;  %v7758_v23 = vmin.f32 %v15352_v61, 0.0  ;;  %v11708_v34 = vpop.f32.mrb[106].mxu1  ;;  %vm7727_vm14 = vcmp.gt.f32.partialorder %v15321_v40, 0.0 }
 0x64f   :  { %v12570_v24 = vpop.eup %12569  ;;  %v7889_v36 = vmax.f32 %v7861_v14, %v7863_v55  ;;  %v7862_v48 = vsel %vm7722_vm6, %v15306_v15, %v9983_v39  ;;  %v7802_v35 = vmul.f32 1.442695, %v7759_v53  ;;  %v15361_v21 = vadd.f32 %v11708_v34, %v15279_v33  ;;  %v7594_v6 = vpop.f32.mrb[107].mxu1 }
 0x650   :  { %v12572_v43 = vpop.eup %12571  ;;  %v7888_v2 = vmax.f32 %v7860_v25, %v7862_v48  ;;  %v9986_v26 = vadd.f32 -1.0, %v12570_v24  ;;  %v7800_v41 = vmul.f32 1.442695, %v7758_v23  ;;  %v15364_v50 = vadd.f32 %v15279_v33, %v7594_v6 }
 0x651   :  { %7915 = vst.msk [vmem:[#allocation2 + $0x28] sm:$0xff] %vm3349_vm3, %v7889_v36  ;;  %v9985_v9 = vadd.f32 -1.0, %v12572_v43  ;;  %12581 = vpow2.f32 %v7802_v35  ;;  %v7761_v15 = vmin.f32 %v15361_v21, 0.0  ;;  %vm7726_vm6 = vcmp.gt.f32.partialorder %v15325_v57, 0.0 }
 0x652   :  { %7914 = vst.msk [vmem:[#allocation2 + $0x20] sm:$0xff] %vm3349_vm3, %v7888_v2  ;;  %v7865_v10 = vsel %vm7725_vm1, %v15311_v18, %v9986_v26  ;;  %12583 = vpow2.f32 %v7800_v41  ;;  %v7760_v28 = vmin.f32 %v15364_v50, 0.0  ;;  %v11711_v1 = vpop.f32.mrb[108].mxu1  ;;  %vm7729_vm1 = vcmp.gt.f32.partialorder %v15335_v0, 0.0 }
 0x653   :  { %v12574_v19 = vpop.eup %12573  ;;  %v7864_v54 = vsel %vm7724_vm7, %v15314_v60, %v9985_v9  ;;  %v7806_v5 = vmul.f32 1.442695, %v7761_v15  ;;  %v15375_v56 = vadd.f32 %v11711_v1, %v15279_v33  ;;  %v7604_v58 = vpop.f32.mrb[109].mxu1  ;;  %vm7728_vm7 = vcmp.gt.f32.partialorder %v15338_v51, 0.0 }
 0x654   :  { %v12576_v3 = vpop.eup %12575  ;;  %v9988_v30 = vadd.f32 -1.0, %v12574_v19  ;;  %v7804_v22 = vmul.f32 1.442695, %v7760_v28  ;;  %v15378_v42 = vadd.f32 %v15279_v33, %v7604_v58 }
 0x655   :  { %v9987_v18 = vadd.f32 -1.0, %v12576_v3  ;;  %12585 = vpow2.f32 %v7806_v5  ;;  %v7763_v49 = vmin.f32 %v15375_v56, 0.0 }
 0x656   :  { %v7867_v12 = vsel %vm7727_vm14, %v15321_v40, %v9988_v30  ;;  %12587 = vpow2.f32 %v7804_v22  ;;  %v7762_v60 = vmin.f32 %v15378_v42, 0.0  ;;  %v11714_v31 = vpop.f32.mrb[110].mxu1  ;;  %vm7731_vm14 = vcmp.gt.f32.partialorder %v15349_v27, 0.0 }
 0x657   :  { %v12578_v45 = vpop.eup %12577  ;;  %v7893_v32 = vmax.f32 %v7865_v10, %v7867_v12  ;;  %v7866_v63 = vsel %vm7726_vm6, %v15325_v57, %v9987_v18  ;;  %v7810_v46 = vmul.f32 1.442695, %v7763_v49  ;;  %v15387_v37 = vadd.f32 %v11714_v31, %v15279_v33  ;;  %v7614_v38 = vpop.f32.mrb[111].mxu1 }
 0x658   :  { %v12580_v7 = vpop.eup %12579  ;;  %v7892_v8 = vmax.f32 %v7864_v54, %v7866_v63  ;;  %v9990_v4 = vadd.f32 -1.0, %v12578_v45  ;;  %v7808_v11 = vmul.f32 1.442695, %v7762_v60  ;;  %v15390_v40 = vadd.f32 %v15279_v33, %v7614_v38 }
 0x659   :  { %7919 = vst.msk [vmem:[#allocation2 + $0x48] sm:$0xff] %vm3349_vm3, %v7893_v32  ;;  %v9989_v14 = vadd.f32 -1.0, %v12580_v7  ;;  %12589 = vpow2.f32 %v7810_v46  ;;  %v7765_v57 = vmin.f32 %v15387_v37, 0.0  ;;  %vm7730_vm6 = vcmp.gt.f32.partialorder %v15352_v61, 0.0 }
 0x65a   :  { %7918 = vst.msk [vmem:[#allocation2 + $0x40] sm:$0xff] %vm3349_vm3, %v7892_v8  ;;  %v7869_v16 = vsel %vm7729_vm1, %v15335_v0, %v9990_v4  ;;  %12591 = vpow2.f32 %v7808_v11  ;;  %v7764_v13 = vmin.f32 %v15390_v40, 0.0  ;;  %v11717_v17 = vpop.f32.mrb[112].mxu1  ;;  %vm7733_vm1 = vcmp.gt.f32.partialorder %v15361_v21, 0.0 }
 0x65b   :  { %v12582_v25 = vpop.eup %12581  ;;  %v7868_v52 = vsel %vm7728_vm7, %v15338_v51, %v9989_v14  ;;  %v7814_v20 = vmul.f32 1.442695, %v7765_v57  ;;  %v15401_v29 = vadd.f32 %v11717_v17, %v15279_v33  ;;  %v7624_v44 = vpop.f32.mrb[113].mxu1  ;;  %vm7732_vm7 = vcmp.gt.f32.partialorder %v15364_v50, 0.0 }
 0x65c   :  { %v12584_v47 = vpop.eup %12583  ;;  %v9992_v39 = vadd.f32 -1.0, %v12582_v25  ;;  %v7812_v53 = vmul.f32 1.442695, %v7764_v13  ;;  %v15404_v55 = vadd.f32 %v15279_v33, %v7624_v44  ;;  %v7939_v22 = vld [vmem:[#allocation2 + $0x20] ss:$2 sm:$0x7f] }
 0x65d   :  { %v9991_v0 = vadd.f32 -1.0, %v12584_v47  ;;  %12593 = vpow2.f32 %v7814_v20  ;;  %v7767_v23 = vmin.f32 %v15401_v29, 0.0  ;;  %v7940_v60 = vld [vmem:[#allocation2 + $0x21] ss:$2 sm:$0x7f] }
 0x65e   :  { %v7871_v34 = vsel %vm7731_vm14, %v15349_v27, %v9992_v39  ;;  %12595 = vpow2.f32 %v7812_v53  ;;  %v7766_v51 = vmin.f32 %v15404_v55, 0.0  ;;  %v11720_v24 = vpop.f32.mrb[114].mxu1  ;;  %vm7735_vm14 = vcmp.gt.f32.partialorder %v15375_v56, 0.0  ;;  %v7937_v11 = vld [vmem:[#allocation2 + $0x1] ss:$2 sm:$0x7f] }
 0x65f   :  { %v12586_v36 = vpop.eup %12585  ;;  %v7897_v48 = vmax.f32 %v7869_v16, %v7871_v34  ;;  %v7870_v35 = vsel %vm7730_vm6, %v15352_v61, %v9991_v0  ;;  %v7818_v6 = vmul.f32 1.442695, %v7767_v23  ;;  %v15413_v43 = vadd.f32 %v11720_v24, %v15279_v33  ;;  %v7634_v2 = vpop.f32.mrb[115].mxu1 }
 0x660   :  { %v12588_v26 = vpop.eup %12587  ;;  %v7896_v41 = vmax.f32 %v7868_v52, %v7870_v35  ;;  %v9994_v9 = vadd.f32 -1.0, %v12586_v36  ;;  %v7816_v15 = vmul.f32 1.442695, %v7766_v51  ;;  %v15416_v27 = vadd.f32 %v15279_v33, %v7634_v2 }
 0x661   :  { %7923 = vst.msk [vmem:[#allocation2 + $0x68] sm:$0xff] %vm3349_vm3, %v7897_v48  ;;  %v9993_v10 = vadd.f32 -1.0, %v12588_v26  ;;  %12597 = vpow2.f32 %v7818_v6  ;;  %v7769_v61 = vmin.f32 %v15413_v43, 0.0  ;;  %v7942_v32 = vld [vmem:[#allocation2 + $0x40] ss:$2 sm:$0x7f]  ;;  %v7941_v17 = vmax.f32 %v7939_v22, %v7940_v60 }
 0x662   :  { %7922 = vst.msk [vmem:[#allocation2 + $0x60] sm:$0xff] %vm3349_vm3, %v7896_v41  ;;  %v7873_v28 = vsel %vm7733_vm1, %v15361_v21, %v9994_v9  ;;  %12599 = vpow2.f32 %v7816_v15  ;;  %v7768_v1 = vmin.f32 %v15416_v27, 0.0  ;;  %v11723_v19 = vpop.f32.mrb[116].mxu1  ;;  %vm7734_vm6 = vcmp.gt.f32.partialorder %v15378_v42, 0.0 }
 0x663   :  { %v12590_v54 = vpop.eup %12589  ;;  %v7872_v5 = vsel %vm7732_vm7, %v15364_v50, %v9993_v10  ;;  %v7822_v58 = vmul.f32 1.442695, %v7769_v61  ;;  %v15427_v3 = vadd.f32 %v11723_v19, %v15279_v33  ;;  %v7644_v30 = vpop.f32.mrb[117].mxu1  ;;  %v7936_v50 = vld [vmem:[#allocation2] ss:$2 sm:$0x7f] }
 0x664   :  { %v12592_v18 = vpop.eup %12591  ;;  %v9996_v49 = vadd.f32 -1.0, %v12590_v54  ;;  %v7820_v12 = vmul.f32 1.442695, %v7768_v1  ;;  %v15430_v21 = vadd.f32 %v15279_v33, %v7644_v30  ;;  %v7943_v38 = vld [vmem:[#allocation2 + $0x41] ss:$2 sm:$0x7f]  ;;  %v7938_v20 = vmax.f32 %v7936_v50, %v7937_v11 }
 0x665   :  { %v9995_v31 = vadd.f32 -1.0, %v12592_v18  ;;  %12601 = vpow2.f32 %v7822_v58  ;;  %v7771_v45 = vmin.f32 %v15427_v3, 0.0  ;;  %vm7737_vm1 = vcmp.gt.f32.partialorder %v15387_v37, 0.0  ;;  %v7993_v10 = vld [vmem:[%s15896_s3] sm:$0xff] }
 0x666   :  { %v7875_v63 = vsel %vm7735_vm14, %v15375_v56, %v9996_v49  ;;  %12603 = vpow2.f32 %v7820_v12  ;;  %v7770_v46 = vmin.f32 %v15430_v21, 0.0  ;;  %vm7736_vm7 = vcmp.gt.f32.partialorder %v15390_v40, 0.0 }
 0x667   :  { %v12594_v7 = vpop.eup %12593  ;;  %v7901_v33 = vmax.f32 %v7873_v28, %v7875_v63  ;;  %v7874_v8 = vsel %vm7734_vm6, %v15378_v42, %v9995_v31  ;;  %v7826_v4 = vmul.f32 1.442695, %v7771_v45  ;;  %v7944_v25 = vmax.f32 %v7942_v32, %v7943_v38 }
 0x668   :  { %v12596_v14 = vpop.eup %12595  ;;  %v7900_v57 = vmax.f32 %v7872_v5, %v7874_v8  ;;  %v9998_v16 = vadd.f32 -1.0, %v12594_v7  ;;  %v7824_v13 = vmul.f32 1.442695, %v7770_v46  ;;  %v7958_v44 = vrot.slane %v7941_v17, 1 }
 0x669   :  { %7927 = vst.msk [vmem:[#allocation2 + $0x88] sm:$0xff] %vm3349_vm3, %v7901_v33  ;;  %v9997_v56 = vadd.f32 -1.0, %v12596_v14  ;;  %12605 = vpow2.f32 %v7826_v4  ;;  %v7945_v52 = vld [vmem:[#allocation2 + $0x60] ss:$2 sm:$0x7f]  ;;  %v7961_v0 = vrot.slane %v7944_v25, 2 }
 0x66a   :  { %7926 = vst.msk [vmem:[#allocation2 + $0x80] sm:$0xff] %vm3349_vm3, %v7900_v57  ;;  %v7877_v42 = vsel %vm7737_vm1, %v15387_v37, %v9998_v16  ;;  %12607 = vpow2.f32 %v7824_v13  ;;  %v7946_v47 = vld [vmem:[#allocation2 + $0x61] ss:$2 sm:$0x7f]  ;;  %v7975_v24 = vsel %vm3429_vm11, %v7938_v20, %v7958_v44  ;;  %vm7739_vm14 = vcmp.gt.f32.partialorder %v15401_v29, 0.0  ;;  %v8224_v13 = vld [vmem:[%s15896_s3 + $0x30] sm:$0xff] }
 0x66b   :  { %v12598_v39 = vpop.eup %12597  ;;  %v7876_v53 = vsel %vm7736_vm7, %v15390_v40, %v9997_v56  ;;  %v7947_v23 = vmax.f32 %v7945_v52, %v7946_v47  ;;  %v7976_v48 = vsel %vm3431_vm12, %v7958_v44, %v7961_v0  ;;  %7981 = vst.msk [vmem:[#allocation3 + $0x31] sm:$0xff] %vm3349_vm3, %v7975_v24  ;;  %vm7738_vm6 = vcmp.gt.f32.partialorder %v15404_v55, 0.0  ;;  %v8223_v16 = vld [vmem:[%s15896_s3 + $0x28] sm:$0xff]  ;;  %v8225_v52 = vld [vmem:[%s15896_s3 + $0x38] sm:$0xf]  ;;  %v8342_v47 = vld [vmem:[%s15896_s3 + $0x3c] sm:$0xff] }
 0x66c   :  { %v12600_v34 = vpop.eup %12599  ;;  %v10000_v51 = vadd.f32 -1.0, %v12598_v39  ;;  %7982 = vst.msk [vmem:[#allocation3 + $0x39] sm:$0xff] %vm3349_vm3, %v7976_v48  ;;  %vm7741_vm11 = vcmp.gt.f32.partialorder %v15413_v43, 0.0  ;;  %vm7740_vm12 = vcmp.gt.f32.partialorder %v15416_v27, 0.0  ;;  %vm7742_vm1 = vcmp.gt.f32.partialorder %v15430_v21, 0.0  ;;  %v8343_v39 = vld [vmem:[%s15896_s3 + $0x44] sm:$0xff] }
 0x66d   :  { %v9999_v36 = vadd.f32 -1.0, %v12600_v34  ;;  %v7964_v37 = vrot.slane %v7947_v23, 3  ;;  %v11964_v56 = vpack.c.bf16 %v8224_v13, %v8223_v16  ;;  %v8344_v34 = vld [vmem:[%s15896_s3 + $0x4c] sm:$0xf]  ;;  %v8461_v48 = vld [vmem:[%s15896_s3 + $0x50] sm:$0xff]  ;;  %vm4594_vm7 = vcmask 179200  }
 0x66e   :  { %v7879_v35 = vsel %vm7739_vm14, %v15401_v29, %v10000_v51  ;;  %v7994_v29 = vld [vmem:[%s15896_s3 + $0x8] sm:$0xff]  ;;  %vm9168_vm14 = vcmask 588800  }
 0x66f   :  { %v12602_v40 = vpop.eup %12601  ;;  %v7905_v6 = vmax.f32 %v7877_v42, %v7879_v35  ;;  %v7878_v2 = vsel %vm7738_vm6, %v15404_v55, %v9999_v36  ;;  %v7977_v26 = vsel %vm3433_vm13, %v7961_v0, %v7964_v37  ;;  %v11961_v5 = vpack.c.bf16 %v7994_v29, %v7993_v10  ;;  %v8581_v10 = vld [vmem:[%s15896_s3 + $0x6c] sm:$0xff] }
 0x670   :  { %v12604_v41 = vpop.eup %12603  ;;  %v7904_v9 = vmax.f32 %v7876_v53, %v7878_v2  ;;  %v10002_v15 = vadd.f32 -1.0, %v12602_v40  ;;  %7983 = vst.msk [vmem:[#allocation3 + $0x41] sm:$0xff] %vm3349_vm3, %v7977_v26  ;;  %vm7743_vm13 = vcmp.gt.f32.partialorder %v15427_v3, 0.0  ;;  %v11967_v0 = vpack.c.bf16 %v8343_v39, %v8342_v47  ;;  %v8463_v2 = vld [vmem:[%s15896_s3 + $0x60] sm:$0xf] }
 0x671   :  { %7931 = vst.msk [vmem:[#allocation2 + $0xa8] sm:$0xff] %vm3349_vm3, %v7905_v6  ;;  %v10001_v55 = vadd.f32 -1.0, %v12604_v41  ;;  %v7948_v61 = vld [vmem:[#allocation2 + $0x80] ss:$2 sm:$0x7f] }
 0x672   :  { %7930 = vst.msk [vmem:[#allocation2 + $0xa0] sm:$0xff] %vm3349_vm3, %v7904_v9  ;;  %v7881_v28 = vsel %vm7741_vm11, %v15413_v43, %v10002_v15  ;;  %v7949_v1 = vld [vmem:[#allocation2 + $0x81] ss:$2 sm:$0x7f] }
 0x673   :  { %v12606_v19 = vpop.eup %12605  ;;  %v7880_v54 = vsel %vm7740_vm12, %v15416_v27, %v10001_v55  ;;  %v7950_v58 = vmax.f32 %v7948_v61, %v7949_v1  ;;  %v7996_v49 = vld [vmem:[#allocation3 + $0x32] sm:$0xff]  ;;  %v8582_v61 = vld [vmem:[%s15896_s3 + $0x74] sm:$0xf]  ;;  %v8699_v1 = vld [vmem:[%s15896_s3 + $0x78] sm:$0xff] }
 0x674   :  { %v12608_v30 = vpop.eup %12607  ;;  %v10004_v22 = vadd.f32 -1.0, %v12606_v19  ;;  %11731 = vmatmul.mubr.msk.f32.vlgmr.msra.gmra.mrb[28].mxu0 %vm3349_vm3, %v7996_v49  ;;  %v7988_v25 = vld [vmem:[#allocation3 + $0x31] sm:$0xff]  ;;  %v15522_v42 = vld [vmem:[#allocation3 + $0x39] sm:$0xff] }
 0x675   :  { %v10003_v18 = vadd.f32 -1.0, %v12608_v30  ;;  %v7967_v12 = vrot.slane %v7950_v58, 4  ;;  %11733 = vmatprep.mubr.msk.f32.mxu0 %vm12651_vm2, %v16096_v59  ;;  %11962 = vmatpush3.bf16.msra.mxu0 %v11961_v5  ;;  %v8218_v23 = vld [vmem:[#allocation3 + $0x33] sm:$0xff] }
 0x676   :  { %v7883_v60 = vsel %vm7743_vm13, %v15427_v3, %v10004_v22  ;;  %11749 = vmatprep.subr.mxu0 %v16096_v59  ;;  %v7995_v3 = vld [vmem:[%s15896_s3 + $0x10] sm:$0xf]  ;;  %v8337_v6 = vld [vmem:[#allocation3 + $0x38] sm:$0xff]  ;;  %v8700_v19 = vld [vmem:[%s15896_s3 + $0x80] sm:$0xff] }
 0x677   :  { %v7909_v43 = vmax.f32 %v7881_v28, %v7883_v60  ;;  %v7882_v31 = vsel %vm7742_vm1, %v15430_v21, %v10003_v18  ;;  %v15473_v27 = vld [vmem:[#allocation3 + $0x3a] sm:$0xff]  ;;  %v7978_v45 = vsel %vm176_vm0, %v7964_v37, %v7967_v12  ;;  %v8462_v37 = vld [vmem:[%s15896_s3 + $0x58] sm:$0xff]  ;;  %v11976_v5 = vpack.c.bf16 %v8700_v19, %v8699_v1 }
 0x678   :  { %v7908_v50 = vmax.f32 %v7880_v54, %v7882_v31  ;;  %7984 = vst.msk [vmem:[#allocation3 + $0x49] sm:$0xff] %vm3349_vm3, %v7978_v45  ;;  %11734 = vmatmul.mubr.msk.f32.gmra.mrb[30].mxu0 %vm3349_vm3, %v15473_v27  ;;  %v15530_v20 = vld [vmem:[#allocation3 + $0x41] sm:$0xff]  ;;  %v11970_v40 = vpack.c.bf16 %v8462_v37, %v8461_v48  ;;  %v8580_v15 = vld [vmem:[%s15896_s3 + $0x64] sm:$0xff] }
 0x679   :  { %7935 = vst.msk [vmem:[#allocation2 + $0xc8] sm:$0x3f] %vm3375_vm10, %v7909_v43  ;;  %v7951_v21 = vld [vmem:[#allocation2 + $0xa0] ss:$2 sm:$0x7f]  ;;  %11736 = vmatprep.mubr.msk.f32.mxu0 %vm12651_vm2, %v16096_v59  ;;  %11750 = vmatpush3.msk.msra.mxu0 %vm176_vm0, %v7995_v3  ;;  %v15585_v26 = vld [vmem:[#allocation3 + $0x40] sm:$0xff]  ;;  %v11973_v55 = vpack.c.bf16 %v8581_v10, %v8580_v15 }
 0x67a   :  { %v7952_v32 = vld [vmem:[#allocation2 + $0xa1] ss:$2 sm:$0x7f]  ;;  %7934 = vst.msk [vmem:[#allocation2 + $0xc0] sm:$0xff] %vm3349_vm3, %v7908_v50  ;;  %11963 = vmatprep.subr.bf16.mxu0 %v16095_v62  ;;  %v8819_v18 = vld [vmem:[%s15896_s3 + $0x94] sm:$0xff] }
 0x67b   :  { %v7953_v63 = vmax.f32 %v7951_v21, %v7952_v32  ;;  %v8219_v51 = vld [vmem:[#allocation3 + $0x3b] sm:$0xff]  ;;  %v8820_v43 = vld [vmem:[%s15896_s3 + $0x9c] sm:$0xf]  ;;  %v8937_v50 = vld [vmem:[%s15896_s3 + $0xa0] sm:$0xff] }
 0x67c   :  { %v8701_v58 = vld [vmem:[%s15896_s3 + $0x88] sm:$0xf]  ;;  %v8818_v22 = vld [vmem:[%s15896_s3 + $0x8c] sm:$0xff] }
 0x67d   :  { %v7970_v46 = vrot.slane %v7953_v63, 5  ;;  %v8694_v60 = vld [vmem:[#allocation3 + $0x3f] sm:$0xff] }
 0x67e   :  { %v8938_v3 = vld [vmem:[%s15896_s3 + $0xa8] sm:$0xff]  ;;  %v8939_v63 = vld [vmem:[%s15896_s3 + $0xb0] sm:$0xf] }
 0x67f   :  { %v7979_v38 = vsel %vm3436_vm15, %v7967_v12, %v7970_v46  ;;  %v15490_v7 = vld [vmem:[#allocation3 + $0x42] sm:$0xff]  ;;  %v11979_v12 = vpack.c.bf16 %v8819_v18, %v8818_v22  ;;  %v11982_v32 = vpack.c.bf16 %v8938_v3, %v8937_v50  ;;  %vm16097_vm15 = vcmask 402432  }
 0x680   :  { %7985 = vst.msk [vmem:[#allocation3 + $0x51] sm:$0xff] %vm3349_vm3, %v7979_v38  ;;  %11737 = vmatmul.mubr.msk.f32.gmra.mrb[32].mxu0 %vm3349_vm3, %v15490_v7  ;;  %v15536_v44 = vld [vmem:[#allocation3 + $0x49] sm:$0xff] }
 0x681   :  { %11739 = vmatprep.mubr.msk.f32.mxu0 %vm12651_vm2, %v16096_v59  ;;  %v7954_v33 = vld [vmem:[#allocation2 + $0xc0] ss:$2 sm:$0x7f]  ;;  %v7955_v8 = vld [vmem:[#allocation2 + $0xc1] ss:$2 sm:$0x7f] }
 0x682   :  { %v7956_v4 = vmax.f32 %v7954_v33, %v7955_v8  ;;  %v8220_v24 = vld [vmem:[#allocation3 + $0x43] sm:$0xff] }
 0x683   :  { %v15593_v41 = vld [vmem:[#allocation3 + $0x48] sm:$0xff] }
 0x684   :  { %v7973_v11 = vrot.slane %v7956_v4, 6  ;;  %v8695_v31 = vld [vmem:[#allocation3 + $0x47] sm:$0xff] }
 0x686   :  { %v7980_v57 = vsel %vm3438_vm4, %v7970_v46, %v7973_v11  ;;  %7987 = vst.msk [vmem:[#allocation3 + $0x61] sm:$0x1] %vm3446_vm5, %v7973_v11  ;;  %vm4592_vm5 = vcmask 818176  }
 0x687   :  { %v15497_v14 = vld [vmem:[#allocation3 + $0x4a] sm:$0xff]  ;;  %7986 = vst.msk [vmem:[#allocation3 + $0x59] sm:$0xff] %vm3349_vm3, %v7980_v57  ;;  %v8000_v17 = vld [vmem:[#allocation3 + $0x52] sm:$0x1]  ;;  %v8222_v35 = vld [vmem:[#allocation3 + $0x53] sm:$0x1] }
 0x688   :  { %11740 = vmatmul.mubr.msk.f32.gmra.mrb[34].mxu0 %vm3349_vm3, %v15497_v14  ;;  %v7992_v53 = vld [vmem:[#allocation3 + $0x51] sm:$0x1]  ;;  %v8341_v29 = vld [vmem:[#allocation3 + $0x58] sm:$0x1] }
 0x689   :  { %11742 = vmatprep.mubr.msk.f32.mxu0 %vm12651_vm2, %v16096_v59  ;;  %v8221_v36 = vld [vmem:[#allocation3 + $0x4b] sm:$0xff] }
 0x68a   :  { %v15599_v9 = vld [vmem:[#allocation3 + $0x50] sm:$0xff] }
 0x68b   :  { %v15632_v28 = vld [vmem:[#allocation3 + $0x51] sm:$0xff] }
 0x68c   :  { %11743 = vmatmul.mubr.msk.f32.gmra.mrb[36].mxu0 %vm3349_vm3, %v8000_v17 }
 0x68d   :  { %11751 = vmatprep.mubr.msk.f32.mxu0 %vm12651_vm2, %v16096_v59  ;;  %v8936_v33 = vld [vmem:[#allocation3 + $0x61] sm:$0x1] }
 0x68e   :  { %v8460_v54 = vld [vmem:[#allocation3 + $0x59] sm:$0x1]  ;;  %v8579_v49 = vld [vmem:[#allocation3 + $0x5a] sm:$0x1]  ;;  %v8698_v21 = vld [vmem:[#allocation3 + $0x5f] sm:$0x1] }
 0x68f   :  { %v8578_v30 = vld [vmem:[#allocation3 + $0x52] sm:$0xff]  ;;  %v8817_v38 = vld [vmem:[#allocation3 + $0x60] sm:$0x1] }
 0x690   :  { %11752 = vmatmul.mubr.msk.f32.vlgmr.msra.gmra.mrb[38].mxu0 %vm3349_vm3, %v7988_v25  ;;  %v8697_v45 = vld [vmem:[#allocation3 + $0x57] sm:$0xff] }
 0x691   :  { %11965 = vmatpush3.bf16.msra.mxu0 %v11964_v56  ;;  %11754 = vmatprep.mubr.msk.f32.mxu0 %vm12651_vm2, %v16096_v59  ;;  %v8816_v46 = vld [vmem:[#allocation3 + $0x58] sm:$0xff] }
 0x692   :  { %11770 = vmatprep.subr.mxu0 %v16096_v59 }
 0x694   :  { %11755 = vmatmul.mubr.msk.f32.gmra.mrb[40].mxu0 %vm3349_vm3, %v15522_v42 }
 0x695   :  { %11757 = vmatprep.mubr.msk.f32.mxu0 %vm12651_vm2, %v16096_v59  ;;  %11771 = vmatpush3.msk.msra.mxu0 %vm176_vm0, %v8225_v52 }
 0x696   :  { %11966 = vmatprep.subr.bf16.mxu0 %v16095_v62 }
 0x698   :  { %11758 = vmatmul.mubr.msk.f32.gmra.mrb[42].mxu0 %vm3349_vm3, %v15530_v20 }
 0x699   :  { %11760 = vmatprep.mubr.msk.f32.mxu0 %vm12651_vm2, %v16096_v59 }
 0x69c   :  { %11761 = vmatmul.mubr.msk.f32.gmra.mrb[44].mxu0 %vm3349_vm3, %v15536_v44 }
 0x69d   :  { %11763 = vmatprep.mubr.msk.f32.mxu0 %vm12651_vm2, %v16096_v59 }
 0x6a0   :  { %11764 = vmatmul.mubr.msk.f32.gmra.mrb[46].mxu0 %vm3349_vm3, %v7992_v53 }
 0x6a1   :  { %11772 = vmatprep.mubr.msk.f32.mxu0 %vm12651_vm2, %v16096_v59 }
 0x6a4   :  { %11773 = vmatmul.mubr.msk.f32.vlgmr.msra.gmra.mrb[48].mxu0 %vm3349_vm3, %v8218_v23 }
 0x6a5   :  { %11968 = vmatpush3.bf16.msra.mxu0 %v11967_v0  ;;  %11775 = vmatprep.mubr.msk.f32.mxu0 %vm12651_vm2, %v16096_v59 }
 0x6a6   :  { %11791 = vmatprep.subr.mxu0 %v16096_v59 }
 0x6a8   :  { %11776 = vmatmul.mubr.msk.f32.gmra.mrb[50].mxu0 %vm3349_vm3, %v8219_v51 }
 0x6a9   :  { %11778 = vmatprep.mubr.msk.f32.mxu0 %vm12651_vm2, %v16096_v59  ;;  %11792 = vmatpush3.msk.msra.mxu0 %vm176_vm0, %v8344_v34 }
 0x6aa   :  { %11969 = vmatprep.subr.bf16.mxu0 %v16095_v62 }
 0x6ac   :  { %11779 = vmatmul.mubr.msk.f32.gmra.mrb[52].mxu0 %vm3349_vm3, %v8220_v24 }
 0x6ad   :  { %11781 = vmatprep.mubr.msk.f32.mxu0 %vm12651_vm2, %v16096_v59 }
 0x6b0   :  { %11782 = vmatmul.mubr.msk.f32.gmra.mrb[54].mxu0 %vm3349_vm3, %v8221_v36 }
 0x6b1   :  { %11784 = vmatprep.mubr.msk.f32.mxu0 %vm12651_vm2, %v16096_v59 }
 0x6b4   :  { %11785 = vmatmul.mubr.msk.f32.gmra.mrb[56].mxu0 %vm3349_vm3, %v8222_v35 }
 0x6b5   :  { %11793 = vmatprep.mubr.msk.f32.mxu0 %vm12651_vm2, %v16096_v59 }
 0x6b8   :  { %11794 = vmatmul.mubr.msk.f32.vlgmr.msra.gmra.mrb[58].mxu0 %vm3349_vm3, %v8337_v6 }
 0x6b9   :  { %11971 = vmatpush3.bf16.msra.mxu0 %v11970_v40  ;;  %11796 = vmatprep.mubr.msk.f32.mxu0 %vm12651_vm2, %v16096_v59 }
 0x6ba   :  { %11812 = vmatprep.subr.mxu0 %v16096_v59 }
 0x6bc   :  { %11797 = vmatmul.mubr.msk.f32.gmra.mrb[60].mxu0 %vm3349_vm3, %v15585_v26 }
 0x6bd   :  { %11799 = vmatprep.mubr.msk.f32.mxu0 %vm12651_vm2, %v16096_v59  ;;  %11813 = vmatpush3.msk.msra.mxu0 %vm176_vm0, %v8463_v2 }
 0x6be   :  { %11972 = vmatprep.subr.bf16.mxu0 %v16095_v62 }
 0x6c0   :  { %11800 = vmatmul.mubr.msk.f32.gmra.mrb[62].mxu0 %vm3349_vm3, %v15593_v41 }
 0x6c1   :  { %11802 = vmatprep.mubr.msk.f32.mxu0 %vm12651_vm2, %v16096_v59 }
 0x6c4   :  { %11803 = vmatmul.mubr.msk.f32.gmra.mrb[64].mxu0 %vm3349_vm3, %v15599_v9 }
 0x6c5   :  { %11805 = vmatprep.mubr.msk.f32.mxu0 %vm12651_vm2, %v16096_v59 }
 0x6c8   :  { %11806 = vmatmul.mubr.msk.f32.gmra.mrb[66].mxu0 %vm3349_vm3, %v8341_v29 }
 0x6c9   :  { %11814 = vmatprep.mubr.msk.f32.mxu0 %vm12651_vm2, %v16096_v59 }
 0x6cc   :  { %11815 = vmatmul.mubr.msk.f32.vlgmr.msra.gmra.mrb[68].mxu0 %vm3349_vm3, %v15522_v42 }
 0x6cd   :  { %11974 = vmatpush3.bf16.msra.mxu0 %v11973_v55  ;;  %11817 = vmatprep.mubr.msk.f32.mxu0 %vm12651_vm2, %v16096_v59 }
 0x6ce   :  { %11833 = vmatprep.subr.mxu0 %v16096_v59 }
 0x6d0   :  { %11818 = vmatmul.mubr.msk.f32.gmra.mrb[70].mxu0 %vm3349_vm3, %v15530_v20 }
 0x6d1   :  { %11820 = vmatprep.mubr.msk.f32.mxu0 %vm12651_vm2, %v16096_v59  ;;  %11834 = vmatpush3.msk.msra.mxu0 %vm176_vm0, %v8582_v61 }
 0x6d2   :  { %11975 = vmatprep.subr.bf16.mxu0 %v16095_v62 }
 0x6d4   :  { %11821 = vmatmul.mubr.msk.f32.gmra.mrb[72].mxu0 %vm3349_vm3, %v15536_v44 }
 0x6d5   :  { %11823 = vmatprep.mubr.msk.f32.mxu0 %vm12651_vm2, %v16096_v59 }
 0x6d8   :  { %11824 = vmatmul.mubr.msk.f32.gmra.mrb[74].mxu0 %vm3349_vm3, %v15632_v28 }
 0x6d9   :  { %11826 = vmatprep.mubr.msk.f32.mxu0 %vm12651_vm2, %v16096_v59 }
 0x6dc   :  { %11827 = vmatmul.mubr.msk.f32.gmra.mrb[76].mxu0 %vm3349_vm3, %v8460_v54 }
 0x6dd   :  { %11835 = vmatprep.mubr.msk.f32.mxu0 %vm12651_vm2, %v16096_v59 }
 0x6e0   :  { %11836 = vmatmul.mubr.msk.f32.vlgmr.msra.gmra.mrb[78].mxu0 %vm3349_vm3, %v15473_v27  ;;  %v8696_v27 = vld [vmem:[#allocation3 + $0x4f] sm:$0xff] }
 0x6e1   :  { %11977 = vmatpush3.bf16.msra.mxu0 %v11976_v5  ;;  %11838 = vmatprep.mubr.msk.f32.mxu0 %vm12651_vm2, %v16096_v59 }
 0x6e2   :  { %11854 = vmatprep.subr.mxu0 %v16096_v59 }
 0x6e4   :  { %11839 = vmatmul.mubr.msk.f32.gmra.mrb[80].mxu0 %vm3349_vm3, %v15490_v7  ;;  %v8935_v7 = vld [vmem:[#allocation3 + $0x59] sm:$0xff] }
 0x6e5   :  { %11841 = vmatprep.mubr.msk.f32.mxu0 %vm12651_vm2, %v16096_v59  ;;  %11855 = vmatpush3.msk.msra.mxu0 %vm176_vm0, %v8701_v58 }
 0x6e6   :  { %11978 = vmatprep.subr.bf16.mxu0 %v16095_v62 }
 0x6e8   :  { %11842 = vmatmul.mubr.msk.f32.gmra.mrb[82].mxu0 %vm3349_vm3, %v15497_v14 }
 0x6e9   :  { %11844 = vmatprep.mubr.msk.f32.mxu0 %vm12651_vm2, %v16096_v59 }
 0x6ec   :  { %11845 = vmatmul.mubr.msk.f32.gmra.mrb[84].mxu0 %vm3349_vm3, %v8578_v30 }
 0x6ed   :  { %11847 = vmatprep.mubr.msk.f32.mxu0 %vm12651_vm2, %v16096_v59 }
 0x6f0   :  { %11848 = vmatmul.mubr.msk.f32.gmra.mrb[86].mxu0 %vm3349_vm3, %v8579_v49 }
 0x6f1   :  { %11856 = vmatprep.mubr.msk.f32.mxu0 %vm12651_vm2, %v16096_v59 }
 0x6f4   :  { %11857 = vmatmul.mubr.msk.f32.vlgmr.msra.gmra.mrb[88].mxu0 %vm3349_vm3, %v8694_v60 }
 0x6f5   :  { %11980 = vmatpush3.bf16.msra.mxu0 %v11979_v12  ;;  %11859 = vmatprep.mubr.msk.f32.mxu0 %vm12651_vm2, %v16096_v59 }
 0x6f6   :  { %11875 = vmatprep.subr.mxu0 %v16096_v59 }
 0x6f8   :  { %11860 = vmatmul.mubr.msk.f32.gmra.mrb[90].mxu0 %vm3349_vm3, %v8695_v31 }
 0x6f9   :  { %11862 = vmatprep.mubr.msk.f32.mxu0 %vm12651_vm2, %v16096_v59  ;;  %11876 = vmatpush3.msk.msra.mxu0 %vm176_vm0, %v8820_v43 }
 0x6fa   :  { %11981 = vmatprep.subr.bf16.mxu0 %v16095_v62 }
 0x6fc   :  { %11863 = vmatmul.mubr.msk.f32.gmra.mrb[92].mxu0 %vm3349_vm3, %v8696_v27 }
 0x6fd   :  { %11865 = vmatprep.mubr.msk.f32.mxu0 %vm12651_vm2, %v16096_v59 }
 0x700   :  { %11866 = vmatmul.mubr.msk.f32.gmra.mrb[94].mxu0 %vm3349_vm3, %v8697_v45 }
 0x701   :  { %11868 = vmatprep.mubr.msk.f32.mxu0 %vm12651_vm2, %v16096_v59 }
 0x704   :  { %11869 = vmatmul.mubr.msk.f32.gmra.mrb[96].mxu0 %vm3349_vm3, %v8698_v21 }
 0x705   :  { %11877 = vmatprep.mubr.msk.f32.mxu0 %vm12651_vm2, %v16096_v59 }
 0x708   :  { %11878 = vmatmul.mubr.msk.f32.vlgmr.msra.gmra.mrb[98].mxu0 %vm3349_vm3, %v15585_v26 }
 0x709   :  { %11983 = vmatpush3.bf16.msra.mxu0 %v11982_v32  ;;  %11880 = vmatprep.mubr.msk.f32.mxu0 %vm12651_vm2, %v16096_v59 }
 0x70a   :  { %11896 = vmatprep.subr.mxu0 %v16096_v59 }
 0x70c   :  { %11881 = vmatmul.mubr.msk.f32.gmra.mrb[100].mxu0 %vm3349_vm3, %v15593_v41 }
 0x70d   :  { %11883 = vmatprep.mubr.msk.f32.mxu0 %vm12651_vm2, %v16096_v59  ;;  %11897 = vmatpush3.msk.msra.mxu0 %vm176_vm0, %v8939_v63 }
 0x70e   :  { %12020 = vmatprep.subr.bf16.mxu0 %v16095_v62 }
 0x710   :  { %11884 = vmatmul.mubr.msk.f32.gmra.mrb[102].mxu0 %vm3349_vm3, %v15599_v9 }
 0x711   :  { %11886 = vmatprep.mubr.msk.f32.mxu0 %vm12651_vm2, %v16096_v59 }
 0x714   :  { %11887 = vmatmul.mubr.msk.f32.gmra.mrb[104].mxu0 %vm3349_vm3, %v8816_v46 }
 0x715   :  { %11889 = vmatprep.mubr.msk.f32.mxu0 %vm12651_vm2, %v16096_v59 }
 0x718   :  { %11890 = vmatmul.mubr.msk.f32.gmra.mrb[106].mxu0 %vm3349_vm3, %v8817_v38  ;;  %v9136_v38 = vld [vmem:[%s15898_s5] sm:$0xff] }
 0x719   :  { %11898 = vmatprep.mubr.msk.f32.mxu0 %vm12651_vm2, %v16096_v59 }
 0x71c   :  { %11899 = vmatmul.mubr.msk.f32.vlgmr.msra.gmra.mrb[108].mxu0 %vm3349_vm3, %v15530_v20 }
 0x71d   :  { %11901 = vmatprep.mubr.msk.f32.mxu0 %vm12651_vm2, %v16096_v59 }
 0x720   :  { %11902 = vmatmul.mubr.msk.f32.gmra.mrb[110].mxu0 %vm3349_vm3, %v15536_v44 }
 0x721   :  { %11904 = vmatprep.mubr.msk.f32.mxu0 %vm12651_vm2, %v16096_v59 }
 0x724   :  { %11905 = vmatmul.mubr.msk.f32.gmra.mrb[112].mxu0 %vm3349_vm3, %v15632_v28 }
 0x725   :  { %11907 = vmatprep.mubr.msk.f32.mxu0 %vm12651_vm2, %v16096_v59 }
 0x728   :  { %11908 = vmatmul.mubr.msk.f32.gmra.mrb[114].mxu0 %vm3349_vm3, %v8935_v7  ;;  %v9137_v7 = vld [vmem:[%s15898_s5 + $0x8] sm:$0xff] }
 0x729   :  { %11910 = vmatprep.mubr.msk.f32.mxu0 %vm12651_vm2, %v16096_v59 }
 0x72c   :  { %11911 = vmatmul.mubr.msk.f32.gmra.mrb[116].mxu0 %vm3349_vm3, %v8936_v33  ;;  %v9138_v33 = vld [vmem:[%s15898_s5 + $0x10] sm:$0xff] }
 0x72d   :  { %11927 = vmatprep.mubr.msk.f32.mxu0 %vm12651_vm2, %v16096_v59 }
 0x747   :  { %v8088_v8 = vpop.f32.mrb[28].mxu0 }
 0x748   :  { %v11732_v4 = vpop.f32.mrb[29].mxu0 }
 0x74b   :  { %v8093_v11 = vpop.f32.mrb[30].mxu0 }
 0x74c   :  { %v11735_v14 = vpop.f32.mrb[31].mxu0 }
 0x74d   :  { %v9139_v14 = vld [vmem:[%s15898_s5 + $0x18] sm:$0xff] }
 0x753   :  { %v8098_v57 = vpop.f32.mrb[32].mxu0 }
 0x754   :  { %v11738_v16 = vpop.f32.mrb[33].mxu0 }
 0x75b   :  { %v8103_v13 = vpop.f32.mrb[34].mxu0 }
 0x75c   :  { %v11741_v17 = vpop.f32.mrb[35].mxu0 }
 0x75d   :  { %v9141_v17 = vld [vmem:[%s15898_s5 + $0x28] sm:$0xff] }
 0x75f   :  { %v8108_v56 = vpop.f32.mrb[36].mxu0 }
 0x760   :  { %v11744_v25 = vpop.f32.mrb[37].mxu0 }
 0x763   :  { %v8195_v52 = vpop.f32.mrb[38].mxu0 }
 0x764   :  { %v8196_v42 = vadd.f32 %v8195_v52, %v8088_v8  ;;  %v11753_v20 = vpop.f32.mrb[39].mxu0 }
 0x765   :  { %v9142_v20 = vld [vmem:[%s15898_s5 + $0x30] sm:$0xff] }
 0x767   :  { %v8200_v44 = vpop.f32.mrb[40].mxu0 }
 0x768   :  { %v8201_v47 = vadd.f32 %v8200_v44, %v8093_v11  ;;  %v11756_v39 = vpop.f32.mrb[41].mxu0  ;;  %v11985_v11 = vpack.c.bf16 %v9137_v7, %v9136_v38  ;;  %v9143_v44 = vld [vmem:[%s15898_s5 + $0x38] sm:$0xff] }
 0x769   :  { %v11994_v39 = vpack.c.bf16 %v9143_v44, %v9142_v20 }
 0x76a   :  { %11986 = vmatpush1.bf16.msra.mxu1 %v11985_v11 }
 0x76b   :  { %v8205_v53 = vpop.f32.mrb[42].mxu0  ;;  %11987 = vmatprep.subr.bf16.mxu1 %v16095_v62 }
 0x76c   :  { %v8206_v0 = vadd.f32 %v8205_v53, %v8098_v57  ;;  %v11759_v23 = vpop.f32.mrb[43].mxu0  ;;  %v11988_v57 = vpack.c.bf16 %v9139_v14, %v9138_v33 }
 0x76d   :  { %v9145_v23 = vld [vmem:[%s15898_s5 + $0x48] sm:$0xff] }
 0x76e   :  { %11989 = vmatpush1.bf16.msra.mxu1 %v11988_v57 }
 0x76f   :  { %v8210_v34 = vpop.f32.mrb[44].mxu0  ;;  %11990 = vmatprep.subr.bf16.mxu1 %v16095_v62 }
 0x770   :  { %v8211_v51 = vadd.f32 %v8210_v34, %v8103_v13  ;;  %v11762_v24 = vpop.f32.mrb[45].mxu0  ;;  %v9140_v13 = vld [vmem:[%s15898_s5 + $0x20] sm:$0xff] }
 0x771   :  { %v11991_v52 = vpack.c.bf16 %v9141_v17, %v9140_v13 }
 0x773   :  { %v8215_v36 = vpop.f32.mrb[46].mxu0  ;;  %11992 = vmatpush1.bf16.msra.mxu1 %v11991_v52 }
 0x774   :  { %v11765_v48 = vpop.f32.mrb[47].mxu0  ;;  %11993 = vmatprep.subr.bf16.mxu1 %v16095_v62 }
 0x775   :  { %v9146_v48 = vld [vmem:[%s15898_s5 + $0x50] sm:$0xff] }
 0x777   :  { %v8310_v37 = vpop.f32.mrb[48].mxu0  ;;  %11995 = vmatpush1.bf16.msra.mxu1 %v11994_v39  ;;  %v10059_v39 = vld [vmem:[%s15897_s4] ss:$0 sm:$0xff] }
 0x778   :  { %v8333_v35 = vadd.f32 %v8310_v37, %v8196_v42  ;;  %v11774_v40 = vpop.f32.mrb[49].mxu0  ;;  %11996 = vmatprep.subr.bf16.mxu1 %v16095_v62  ;;  %v9147_v37 = vld [vmem:[%s15898_s5 + $0x58] sm:$0xff] }
 0x77b   :  { %v8315_v6 = vpop.f32.mrb[50].mxu0 }
 0x77c   :  { %v8334_v2 = vadd.f32 %v8315_v6, %v8201_v47  ;;  %v11777_v26 = vpop.f32.mrb[51].mxu0  ;;  %v12000_v6 = vpack.c.bf16 %v9147_v37, %v9146_v48 }
 0x77d   :  { %v9148_v26 = vld [vmem:[%s15898_s5 + $0x60] sm:$0xff] }
 0x77f   :  { %v8320_v41 = vpop.f32.mrb[52].mxu0 }
 0x780   :  { %v8335_v9 = vadd.f32 %v8320_v41, %v8206_v0  ;;  %v11780_v15 = vpop.f32.mrb[53].mxu0  ;;  %v9144_v0 = vld [vmem:[%s15898_s5 + $0x40] sm:$0xff]  ;;  %v9149_v41 = vld [vmem:[%s15898_s5 + $0x68] sm:$0xff] }
 0x781   :  { %v11997_v24 = vpack.c.bf16 %v9145_v23, %v9144_v0 }
 0x783   :  { %v8325_v10 = vpop.f32.mrb[54].mxu0  ;;  %11998 = vmatpush1.bf16.msra.mxu1 %v11997_v24 }
 0x784   :  { %v8336_v29 = vadd.f32 %v8325_v10, %v8211_v51  ;;  %v11783_v55 = vpop.f32.mrb[55].mxu0  ;;  %11999 = vmatprep.subr.bf16.mxu1 %v16095_v62  ;;  %v12003_v10 = vpack.c.bf16 %v9149_v41, %v9148_v26 }
 0x785   :  { %v9150_v55 = vld [vmem:[%s15898_s5 + $0x70] sm:$0xff] }
 0x787   :  { %v8330_v61 = vpop.f32.mrb[56].mxu0  ;;  %12001 = vmatpush1.bf16.msra.mxu1 %v12000_v6 }
 0x788   :  { %v11786_v28 = vpop.f32.mrb[57].mxu0  ;;  %12002 = vmatprep.subr.bf16.mxu1 %v16095_v62  ;;  %v9151_v61 = vld [vmem:[%s15898_s5 + $0x78] sm:$0xff] }
 0x78b   :  { %v8429_v1 = vpop.f32.mrb[58].mxu0  ;;  %12004 = vmatpush1.bf16.msra.mxu1 %v12003_v10 }
 0x78c   :  { %v8452_v19 = vadd.f32 %v8429_v1, %v8333_v35  ;;  %v11795_v54 = vpop.f32.mrb[59].mxu0  ;;  %12005 = vmatprep.subr.bf16.mxu1 %v16095_v62 }
 0x78f   :  { %v8434_v5 = vpop.f32.mrb[60].mxu0 }
 0x790   :  { %v8453_v58 = vadd.f32 %v8434_v5, %v8334_v2  ;;  %v11798_v30 = vpop.f32.mrb[61].mxu0  ;;  %v9152_v5 = vld [vmem:[%s15898_s5 + $0x80] sm:$0xff] }
 0x793   :  { %v8439_v22 = vpop.f32.mrb[62].mxu0 }
 0x794   :  { %v8454_v18 = vadd.f32 %v8439_v22, %v8335_v9  ;;  %v11801_v49 = vpop.f32.mrb[63].mxu0 }
 0x795   :  { %v9154_v49 = vld [vmem:[%s15898_s5 + $0x90] sm:$0xff] }
 0x797   :  { %v8444_v12 = vpop.f32.mrb[64].mxu0 }
 0x798   :  { %v8455_v60 = vadd.f32 %v8444_v12, %v8336_v29  ;;  %v11804_v43 = vpop.f32.mrb[65].mxu0  ;;  %v9155_v12 = vld [vmem:[%s15898_s5 + $0x98] sm:$0xff] }
 0x79b   :  { %v8449_v31 = vpop.f32.mrb[66].mxu0 }
 0x79c   :  { %v11807_v27 = vpop.f32.mrb[67].mxu0  ;;  %v12012_v31 = vpack.c.bf16 %v9155_v12, %v9154_v49 }
 0x79f   :  { %v8548_v45 = vpop.f32.mrb[68].mxu0 }
 0x7a0   :  { %v8571_v50 = vadd.f32 %v8548_v45, %v8452_v19  ;;  %v11816_v3 = vpop.f32.mrb[69].mxu0  ;;  %v12006_v19 = vpack.c.bf16 %v9151_v61, %v9150_v55 }
 0x7a2   :  { %12007 = vmatpush1.bf16.msra.mxu1 %v12006_v19 }
 0x7a3   :  { %v8553_v21 = vpop.f32.mrb[70].mxu0  ;;  %12008 = vmatprep.subr.bf16.mxu1 %v16095_v62 }
 0x7a4   :  { %v8572_v32 = vadd.f32 %v8553_v21, %v8453_v58  ;;  %v11819_v63 = vpop.f32.mrb[71].mxu0  ;;  %v9153_v58 = vld [vmem:[%s15898_s5 + $0x88] sm:$0xff] }
 0x7a5   :  { %v12009_v22 = vpack.c.bf16 %v9153_v58, %v9152_v5 }
 0x7a7   :  { %v8558_v46 = vpop.f32.mrb[72].mxu0  ;;  %12010 = vmatpush1.bf16.msra.mxu1 %v12009_v22 }
 0x7a8   :  { %v8573_v8 = vadd.f32 %v8558_v46, %v8454_v18  ;;  %v11822_v4 = vpop.f32.mrb[73].mxu0  ;;  %12011 = vmatprep.subr.bf16.mxu1 %v16095_v62 }
 0x7ab   :  { %v8563_v16 = vpop.f32.mrb[74].mxu0  ;;  %12013 = vmatpush1.bf16.msra.mxu1 %v12012_v31 }
 0x7ac   :  { %v8574_v56 = vadd.f32 %v8563_v16, %v8455_v60  ;;  %v11825_v25 = vpop.f32.mrb[75].mxu0  ;;  %12014 = vmatprep.subr.bf16.mxu1 %v16095_v62 }
 0x7af   :  { %v8568_v42 = vpop.f32.mrb[76].mxu0 }
 0x7b0   :  { %v11828_v47 = vpop.f32.mrb[77].mxu0 }
 0x7b3   :  { %v8667_v53 = vpop.f32.mrb[78].mxu0 }
 0x7b4   :  { %v8690_v34 = vadd.f32 %v8667_v53, %v8571_v50  ;;  %v11837_v51 = vpop.f32.mrb[79].mxu0 }
 0x7b7   :  { %v8672_v36 = vpop.f32.mrb[80].mxu0 }
 0x7b8   :  { %v8691_v35 = vadd.f32 %v8672_v36, %v8572_v32  ;;  %v11840_v40 = vpop.f32.mrb[81].mxu0 }
 0x7bb   :  { %v8677_v2 = vpop.f32.mrb[82].mxu0 }
 0x7bc   :  { %v8692_v9 = vadd.f32 %v8677_v2, %v8573_v8  ;;  %v11843_v15 = vpop.f32.mrb[83].mxu0 }
 0x7bf   :  { %v8682_v29 = vpop.f32.mrb[84].mxu0 }
 0x7c0   :  { %v8693_v28 = vadd.f32 %v8682_v29, %v8574_v56  ;;  %v11846_v1 = vpop.f32.mrb[85].mxu0 }
 0x7c3   :  { %v8687_v54 = vpop.f32.mrb[86].mxu0 }
 0x7c4   :  { %v11849_v30 = vpop.f32.mrb[87].mxu0 }
 0x7c7   :  { %v8786_v18 = vpop.f32.mrb[88].mxu0 }
 0x7c8   :  { %v8809_v60 = vadd.f32 %v8786_v18, %v8690_v34  ;;  %v11858_v43 = vpop.f32.mrb[89].mxu0 }
 0x7cb   :  { %v8791_v27 = vpop.f32.mrb[90].mxu0 }
 0x7cc   :  { %v8810_v45 = vadd.f32 %v8791_v27, %v8691_v35  ;;  %v11861_v50 = vpop.f32.mrb[91].mxu0 }
 0x7cf   :  { %v8796_v3 = vpop.f32.mrb[92].mxu0 }
 0x7d0   :  { %v8811_v21 = vadd.f32 %v8796_v3, %v8692_v9  ;;  %v11864_v32 = vpop.f32.mrb[93].mxu0  ;;  %v4569_v3 = vld [vmem:[#allocation4] ss:$2 sm:$0x3] }
 0x7d3   :  { %v8801_v63 = vpop.f32.mrb[94].mxu0 }
 0x7d4   :  { %v8812_v46 = vadd.f32 %v8801_v63, %v8693_v28  ;;  %v11867_v38 = vpop.f32.mrb[95].mxu0  ;;  %v4571_v63 = vld [vmem:[#allocation4 + $0x1] ss:$2 sm:$0x3] }
 0x7d7   :  { %v8806_v7 = vpop.f32.mrb[96].mxu0 }
 0x7d8   :  { %v11870_v33 = vpop.f32.mrb[97].mxu0  ;;  %v9156_v7 = vld [vmem:[%s15898_s5 + $0xa0] sm:$0xff] }
 0x7d9   :  { %v9157_v33 = vld [vmem:[%s15898_s5 + $0xa8] sm:$0xff] }
 0x7db   :  { %v8905_v8 = vpop.f32.mrb[98].mxu0 }
 0x7dc   :  { %v8928_v4 = vadd.f32 %v8905_v8, %v8809_v60  ;;  %v11879_v11 = vpop.f32.mrb[99].mxu0  ;;  %v4574_v8 = vld [vmem:[#allocation4 + $0xe] ss:$2 sm:$0x3] }
 0x7df   :  { %v8910_v14 = vpop.f32.mrb[100].mxu0 }
 0x7e0   :  { %v8929_v57 = vadd.f32 %v8910_v14, %v8810_v45  ;;  %v11882_v16 = vpop.f32.mrb[101].mxu0  ;;  %v12015_v14 = vpack.c.bf16 %v9157_v33, %v9156_v7 }
 0x7e2   :  { %12016 = vmatpush1.bf16.msra.mxu1 %v12015_v14 }
 0x7e3   :  { %v8915_v13 = vpop.f32.mrb[102].mxu0  ;;  %12017 = vmatprep.subr.bf16.mxu1 %v16095_v62 }
 0x7e4   :  { %v8930_v17 = vadd.f32 %v8915_v13, %v8811_v21  ;;  %v11885_v56 = vpop.f32.mrb[103].mxu0 }
 0x7e5   :  { %v4572_v56 = vmax.f32 %v4569_v3, %v4571_v63 }
 0x7e7   :  { %v8920_v25 = vpop.f32.mrb[104].mxu0 }
 0x7e8   :  { %v8931_v52 = vadd.f32 %v8920_v25, %v8812_v46  ;;  %v11888_v42 = vpop.f32.mrb[105].mxu0 }
 0x7eb   :  { %v8925_v20 = vpop.f32.mrb[106].mxu0 }
 0x7ec   :  { %v11891_v44 = vpop.f32.mrb[107].mxu0  ;;  %v9158_v20 = vld [vmem:[%s15898_s5 + $0xb0] sm:$0xff] }
 0x7ed   :  { %v9159_v44 = vld [vmem:[%s15898_s5 + $0xb8] sm:$0xff] }
 0x7ef   :  { %v9024_v47 = vpop.f32.mrb[108].mxu0 }
 0x7f0   :  { %v9047_v53 = vadd.f32 %v9024_v47, %v8928_v4  ;;  %v11900_v0 = vpop.f32.mrb[109].mxu0  ;;  %v12018_v47 = vpack.c.bf16 %v9159_v44, %v9158_v20 }
 0x7f2   :  { %v9058_v23 = vadd.f32 %v10059_v39, %v9047_v53  ;;  %12019 = vmatpush1.bf16.msra.mxu1 %v12018_v47 }
 0x7f3   :  { %v9029_v34 = vpop.f32.mrb[110].mxu0  ;;  %9220 = vmatprep.subr.mxu1 %v16096_v59 }
 0x7f4   :  { %v9066_v51 = vmin.f32 %v9058_v23, 0.0  ;;  %v9048_v24 = vadd.f32 %v9029_v34, %v8929_v57  ;;  %v11903_v36 = vpop.f32.mrb[111].mxu0  ;;  %vm9062_vm0 = vcmp.gt.f32.partialorder %v9058_v23, 0.0  ;;  %v4576_v57 = vld [vmem:[#allocation4 + $0xf] ss:$2 sm:$0x3] }
 0x7f5   :  { %v4577_v36 = vmax.f32 %v4574_v8, %v4576_v57 }
 0x7f6   :  { %v9070_v48 = vmul.f32 1.442695, %v9066_v51  ;;  %v9059_v37 = vadd.f32 %v10059_v39, %v9048_v24 }
 0x7f7   :  { %v9034_v35 = vpop.f32.mrb[112].mxu0 }
 0x7f8   :  { %12609 = vpow2.f32 %v9070_v48  ;;  %v9067_v40 = vmin.f32 %v9059_v37, 0.0  ;;  %v9049_v6 = vadd.f32 %v9034_v35, %v8930_v17  ;;  %v11906_v2 = vpop.f32.mrb[113].mxu0  ;;  %vm9063_vm2 = vcmp.gt.f32.partialorder %v9059_v37, 0.0 }
 0x7fa   :  { %v9072_v26 = vmul.f32 1.442695, %v9067_v40  ;;  %v9060_v41 = vadd.f32 %v10059_v39, %v9049_v6 }
 0x7fb   :  { %v9039_v9 = vpop.f32.mrb[114].mxu0 }
 0x7fc   :  { %12611 = vpow2.f32 %v9072_v26  ;;  %v9068_v15 = vmin.f32 %v9060_v41, 0.0  ;;  %v9050_v10 = vadd.f32 %v9039_v9, %v8931_v52  ;;  %v11909_v29 = vpop.f32.mrb[115].mxu0  ;;  %vm9064_vm3 = vcmp.gt.f32.partialorder %v9060_v41, 0.0 }
 0x7fe   :  { %v9074_v55 = vmul.f32 1.442695, %v9068_v15  ;;  %v9061_v61 = vadd.f32 %v10059_v39, %v9050_v10  ;;  %v4579_v39 = vrot.slane %v4572_v56, 1 }
 0x7ff   :  { %v9044_v28 = vpop.f32.mrb[116].mxu0 }
 0x800   :  { %12613 = vpow2.f32 %v9074_v55  ;;  %v9069_v1 = vmin.f32 %v9061_v61, 0.0  ;;  %v11912_v19 = vpop.f32.mrb[117].mxu0  ;;  %vm9065_vm10 = vcmp.gt.f32.partialorder %v9061_v61, 0.0 }
 0x802   :  { %v12610_v54 = vpop.eup %12609  ;;  %v9076_v5 = vmul.f32 1.442695, %v9069_v1 }
 0x803   :  { %v10060_v58 = vadd.f32 -1.0, %v12610_v54 }
 0x804   :  { %12615 = vpow2.f32 %v9076_v5 }
 0x805   :  { %v9082_v22 = vsel %vm9062_vm0, %v9058_v23, %v10060_v58  ;;  %v9160_v23 = vld [vmem:[%s15898_s5 + $0xc0] sm:$0xff] }
 0x806   :  { %v12612_v30 = vpop.eup %12611  ;;  %v9090_v60 = vrot.slane %v9082_v22, 7  ;;  %9221 = vmatpush1.msra.mxu1 %v9160_v23  ;;  %v9248_v58 = vld [vmem:[%s15900_s7] sm:$0xff] }
 0x807   :  { %v10061_v18 = vadd.f32 -1.0, %v12612_v30  ;;  %v9249_v30 = vld [vmem:[%s15900_s7 + $0x8] sm:$0xff] }
 0x809   :  { %v9083_v49 = vsel %vm9063_vm2, %v9059_v37, %v10061_v18  ;;  %v4587_v37 = vrot.slane %v4577_v36, 1  ;;  %v12021_v18 = vpack.c.bf16 %v9249_v30, %v9248_v58 }
 0x80a   :  { %v12614_v12 = vpop.eup %12613  ;;  %v9091_v43 = vrot.slane %v9083_v49, 7 }
 0x80b   :  { %v10062_v31 = vadd.f32 -1.0, %v12614_v12  ;;  %12022 = vmatpush3.bf16.msra.mxu0 %v12021_v18 }
 0x80c   :  { %v9092_v27 = vsel %vm4550_vm8, %v9090_v60, %v9091_v43  ;;  %12023 = vmatprep.subr.bf16.mxu0 %v16095_v62  ;;  %v9252_v60 = vld [vmem:[%s15900_s7 + $0x20] sm:$0xff] }
 0x80d   :  { %v9100_v45 = vmax.f32 %v9082_v22, %v9092_v27  ;;  %v9084_v50 = vsel %vm9064_vm3, %v9060_v41, %v10062_v31  ;;  %v9250_v22 = vld [vmem:[%s15900_s7 + $0x10] sm:$0xff] }
 0x80e   :  { %v12616_v21 = vpop.eup %12615  ;;  %v9093_v32 = vrot.slane %v9084_v50, 7  ;;  %v9254_v27 = vld [vmem:[%s15900_s7 + $0x30] sm:$0x3] }
 0x80f   :  { %v10063_v46 = vadd.f32 -1.0, %v12616_v21  ;;  %9103 = vst.msk [vmem:[#allocation4] sm:$0xff] %vm4564_vm9, %v9100_v45  ;;  %v10064_v45 = vld [vmem:[%s15899_s6] ss:$0 sm:$0xff]  ;;  %s12655_s6 = smov [#allocation5]  }
 0x810   :  { %v9094_v38 = vsel %vm4550_vm8, %v9091_v43, %v9093_v32  ;;  %v9253_v43 = vld [vmem:[%s15900_s7 + $0x28] sm:$0xff] }
 0x811   :  { %v9101_v4 = vmax.f32 %v9083_v49, %v9094_v38  ;;  %v9085_v11 = vsel %vm9065_vm10, %v9061_v61, %v10063_v46  ;;  %v9251_v49 = vld [vmem:[%s15900_s7 + $0x18] sm:$0xff]  ;;  %v12027_v31 = vpack.c.bf16 %v9253_v43, %v9252_v60  ;;  %v10066_v38 = vld [vmem:[%s15901_s8] ss:$0 sm:$0xff]  ;;  %s9358_s8 = sshll.u32 %s12655_s6, 4  ;;  %s9359_s8 = int_to_ptr.vmem [resolvable:$true] %s9358_s8 }
 0x812   :  { %v9095_v16 = vrot.slane %v9085_v11, 7  ;;  %v12024_v12 = vpack.c.bf16 %v9251_v49, %v9250_v22  ;;  %s12625_s1 = scalar_lea.vmem %s9359_s8, 32  ;;  %p12630_p1 = scmp.lt.s32.totalorder %s9359_s8, %s9359_s8 }
 0x813   :  { %9104 = vst.msk [vmem:[#allocation4 + $0x8] sm:$0xff] %vm4564_vm9, %v9101_v4  ;;  %p12626_p0 = scmp.ne.s32.totalorder %s9359_s8, %s12625_s1  ;;  %p12631_p2 = scmp.lt.s32.totalorder %s12625_s1, %s12625_s1 }
 0x814   :  { %v9096_v13 = vsel %vm4550_vm8, %v9093_v32, %v9095_v16  ;;  %12025 = vmatpush3.bf16.msra.mxu0 %v12024_v12 }
 0x815   :  { %v9102_v17 = vmax.f32 %v9084_v50, %v9096_v13  ;;  %12026 = vmatprep.subr.bf16.mxu0 %v16095_v62  ;;  %p12632_p3 = por %p12631_p2, %p12630_p1 }
 0x816   :  { %v9106_v25 = vld [vmem:[#allocation4] ss:$2 sm:$0x3]  ;;  %v9107_v52 = vld [vmem:[#allocation4 + $0x1] ss:$2 sm:$0x3] }
 0x817   :  { %9105 = vst.msk [vmem:[#allocation4 + $0x10] sm:$0x3] %vm16097_vm15, %v9102_v17  ;;  %v9108_v42 = vmax.f32 %v9106_v25, %v9107_v52  ;;  %p12633_p4 = pnand %p12632_p3, %p12626_p0 }
 0x818   :  { %12028 = vmatpush3.bf16.msra.mxu0 %v12027_v31 }
 0x819   :  { %v9113_v53 = vrot.slane %v9108_v42, 1  ;;  %11925 = vmatprep.subr.mxu0 %v16096_v59 }
 0x81b   :  { %v12484_v0 = vpack.i.bf16 %v4579_v39, %v9113_v53 }
 0x81c   :  { %11926 = vmatpush3.msk.msra.mxu0 %vm3438_vm4, %v9254_v27  ;;  %vm9338_vm4 = vcmask 9216  }
 0x81d   :  { %12485 = vrot.lane.b32.xlu0 %v12484_v0, %s12652_s2 }
 0x81e   :  { %v9109_v34 = vld [vmem:[#allocation4 + $0xe] ss:$2 sm:$0x3]  ;;  %v9110_v51 = vld [vmem:[#allocation4 + $0xf] ss:$2 sm:$0x3] }
 0x81f   :  { %v9111_v24 = vmax.f32 %v9109_v34, %v9110_v51 }
 0x821   :  { %9118 = vrot.lane.b32.xlu0 %v9111_v24, %s12653_s14  ;;  %v9121_v48 = vrot.slane %v9111_v24, 1 }
 0x823   :  { %9122 = vrot.lane.b32.xlu1 %v9121_v48, %s12654_s15 }
 0x825   :  { %4588 = vrot.lane.b32.xlu0 %v4587_v37, %s12654_s15 }
 0x827   :  { %4584 = vrot.lane.b32.xlu1 %v4577_v36, %s12653_s14 }
 0x88f   :  { %v12486_v35 = vpop.permute.xlu0 %12485 }
 0x890   :  { %v12487_v40 = vunpack.i.l.bf16 %v12486_v35  ;;  %v12488_v26 = vunpack.i.h.bf16 %v12486_v35 }
 0x892   :  { %v9125_v6 = vsel %vm4564_vm9, %v9108_v42, %v12487_v40  ;;  %v4591_v61 = vsel %vm4564_vm9, %v4572_v56, %v12488_v26 }
 0x893   :  { %v9119_v2 = vpop.permute.xlu0 %9118 }
 0x894   :  { %v9126_v9 = vsel %vm4592_vm5, %v9125_v6, %v9119_v2 }
 0x895   :  { %v9123_v41 = vpop.permute.xlu1 %9122  ;;  %v9130_v10 = vrot.slane %v9126_v9, 7 }
 0x896   :  { %v9127_v15 = vsel %vm4594_vm7, %v9119_v2, %v9123_v41 }
 0x897   :  { %v9131_v29 = vrot.slane %v9127_v15, 7  ;;  %v4589_v55 = vpop.permute.xlu0 %4588 }
 0x899   :  { %v4585_v28 = vpop.permute.xlu1 %4584 }
 0x89a   :  { %v4593_v1 = vsel %vm4592_vm5, %v4591_v61, %v4585_v28  ;;  %v4595_v19 = vsel %vm4594_vm7, %v4585_v28, %v4589_v55 }
 0x89b   :  { %v9134_v54 = vsel %vm4550_vm8, %v4593_v1, %v9130_v10  ;;  %v9135_v5 = vsel %vm4550_vm8, %v4595_v19, %v9131_v29 }
 0x89c   :  { %10065 = vmatprep.mubr.msk.f32.mxu1 %vm9168_vm14, %v9135_v5 }
 0x89d   :  { %9237 = vmatmul.mubr.f32.vlgmr.msra.gmra.mrb[118].mxu1 %v9134_v54 }
 0x970   :  { %v9238_v50 = vpop.f32.mrb[118].mxu1 }
 0x971   :  { %v9239_v3 = vadd.f32 %v10064_v45, %v9238_v50  ;;  %v9240_v21 = vpop.f32.mrb[119].mxu1 }
 0x973   :  { %v9242_v32 = vsub.f32 0.0, %v9239_v3 }
 0x975   :  { %v9243_v63 = vmul.f32 1.442695, %v9242_v32 }
 0x977   :  { %12617 = vpow2.f32 %v9243_v63 }
 0x981   :  { %v12618_v62 = vpop.eup %12617 }
 0x982   :  { %v9245_v46 = vadd.f32 1.0, %v12618_v62 }
 0x984   :  { %12619 = vrcp.f32 %v9245_v46 }
 0x98e   :  { %v12620_v59 = vpop.eup %12619 }
 0x98f   :  { %11928 = vmatmul.mubr.msk.f32.vlgmr.msra.gmra.mrb[118].mxu0 %vm4564_vm9, %v12620_v59 }
 0xa62   :  { %v9334_v7 = vpop.f32.mrb[118].mxu0 }
 0xa63   :  { %v9335_v33 = vadd.f32 %v10066_v38, %v9334_v7  ;;  %v11929_v8 = vpop.f32.mrb[119].mxu0 }
 0xa65   :  { %v9339_v4 = vsel %vm9338_vm4, %v9335_v33, -inf }
 0xa66   :  { %9340 = vmax.xlane.f32.xlu1 %v9339_v4 }
 0xaf3   :  { %v9341_v11 = vpop.xlane.xlu1 %9340 }
 0xaf4   :  { %v9342_v14 = vsub.f32 %v9335_v33, %v9341_v11 }
 0xaf6   :  { %v9343_v57 = vmul.f32 1.442695, %v9342_v14 }
 0xaf8   :  { %12621 = vpow2.f32 %v9343_v57 }
 0xb02   :  { %v12622_v16 = vpop.eup %12621 }
 0xb03   :  { %v9345_v13 = vsel %vm9338_vm4, %v12622_v16, 0.0 }
 0xb04   :  { %9346 = vadd.xlane.f32.xlu0 %v9345_v13 }
 0xb91   :  { %v9347_v17 = vpop.xlane.xlu0 %9346 }
 0xb92   :  { %12623 = vlog2.f32 %v9347_v17 }
 0xb9c   :  { %v12624_v56 = vpop.eup %12623 }
 0xb9d   :  { %v9349_v25 = vmul.f32 0.6931472, %v12624_v56 }
 0xb9f   :  { %v9350_v52 = vsub.f32 %v9342_v14, %v9349_v25 }
 0xba1   :  { %9351 = vst.msk [vmem:[#allocation5] sm:$0x3] %vm9338_vm4, %v9350_v52 }
 0xba2   :  { %12636 = shalt.err (!%p12633_p4)
}
 0xba3   :  { %s12637_s12 = scalar_lea.hbm %s15902_s9, 32 }
 0xba4   :  { %p12638_p5 = scmp.ne.s32.totalorder %s15902_s9, %s12637_s12  ;;  %p12641_p6 = scmp.lt.u32.totalorder %s12637_s12, %s15902_s9 }
 0xba6   :  { %p12643_p7 = pnand %p12641_p6, %p12638_p5 }
 0xba8   :  { %12646 = shalt.err (!%p12643_p7)
}
 0xba9   :  { %9361 = dma.vmem_to_hbm [thread:$0]  %s9359_s8, 32, %s15902_s9, [#allocation6]  }
 0xbaa   :  { %12647 = dma.done.wait [#allocation6], 32  }
 0xbab   :  { %12648 = vsyncadd [#allocation6], 4294967264 }
 0xbac   :  { %9365 = vsyncpa [#allocation6], 1 }

</bundles_post_ra>
